<compile_context>
chip_gen: v7x
topology: tpu7x:2x2x1
jax: 0.10.0
libtpu: 0.0.40
codegen_flags: <defaults>
</compile_context>

<pallas_src>
import jax
import jax.numpy as jnp
from jax import lax
from jax.experimental import pallas as pl
from jax.experimental.pallas import tpu as pltpu

# ---------------- config (mirrors the PyTorch module's __init__) -------------
DIM = 32            # config.dim  (input_dim == output_dim == v_dim)
K_DIM = 16          # config.pkm_k_dim   (even, >= 2)
HALF = K_DIM // 2
N_KEYS = 16         # config.pkm_n_keys
SIZE = N_KEYS * N_KEYS          # 256 -- flat product-key index space
HEADS = 4           # config.pkm_heads
KNN = 4             # config.pkm_knn
HK = HEADS * K_DIM
HSIZE = HEADS * SIZE            # 1024 -- fused lane-dense score width

_HI = lax.Precision.HIGHEST


def _round_up(n, m):
    return ((n + m - 1) // m) * m


def pkm_kernel(x_ref, w_ref, b_ref, values_ref, out_ref):
    """One TN-token tile.

    scores[n, h*SIZE + i*N_KEYS + j] = q1_h(n)·k1_h[i] + q2_h(n)·k2_h[j]
    (full outer-sum product-key score), produced by a single matmul.  Per head
    we take the top-KNN of its 256 scores (same set as the reference two-stage
    product-key top-k), softmax them, add the weights straight into the
    (TN, SIZE) sparse weight slab at their flat index (== their lane), then
    hit the value table with one matmul (embedding-gather + weighted-sum).
    Tie-break: lowest flat index wins (min-over-iota).
    """
    tn = x_ref.shape[0]

    # Fused scoring matmul: (TN, DIM) @ (DIM, HEADS*SIZE).  HIGHEST so the
    # top-k index selection tracks the f32 reference exactly.
    scores = jnp.dot(x_ref[...], w_ref[...],
                     preferred_element_type=jnp.float32,
                     precision=_HI) + b_ref[...]                  # (TN, HSIZE) f32

    it = lax.broadcasted_iota(jnp.int32, (tn, SIZE), 1)           # hoisted, reused
    w_acc = jnp.zeros((tn, SIZE), jnp.float32)

    for h in range(HEADS):
        s = scores[:, h * SIZE:(h + 1) * SIZE]                    # lane-aligned view

        # ---- selection 0 (the max; softmax numerator exp(v1-v1) == 1) ------
        v1 = jnp.max(s, axis=-1, keepdims=True)                   # (TN, 1)
        pos = jnp.min(jnp.where(s == v1, it, SIZE), axis=-1, keepdims=True)
        hit = it == pos                                           # one-hot (TN, SIZE)
        w_num = jnp.where(hit, 1.0, 0.0)
        denom = jnp.ones((tn, 1), jnp.float32)
        s = jnp.where(hit, -jnp.inf, s)

        # ---- selections 1 .. KNN-1 ------------------------------------------
        for a in range(1, KNN):
            m = jnp.max(s, axis=-1, keepdims=True)
            pos = jnp.min(jnp.where(s == m, it, SIZE), axis=-1, keepdims=True)
            hit = it == pos
            e = jnp.exp(m - v1)                                   # (TN, 1), <= 1
            denom = denom + e
            w_num = w_num + jnp.where(hit, e, 0.0)
            if a + 1 < KNN:
                s = jnp.where(hit, -jnp.inf, s)

        # Per-head softmax over the KNN selected scores; EUP reciprocal.
        w_acc = w_acc + w_num * pl.reciprocal(denom, approx=True)

    # Embedding lookup + weighted sum == sparse-weights @ value table.
    out_ref[...] = jnp.dot(w_acc, values_ref[...],
                           preferred_element_type=jnp.float32).astype(out_ref.dtype)


def pkm_forward(x, wq, bq, keys, values, *, tn=256):
    """x: (..., DIM); wq: (DIM, HK); bq: (HK,); keys: (HEADS,2,N_KEYS,HALF);
    values: (SIZE, DIM)."""
    prefix = x.shape[:-1]
    xf = x.reshape(-1, DIM)
    n = xf.shape[0]

    # ---- wrapper-side fold (exact algebra, tiny one-time cost) --------------
    # K_full[h, :, i*N_KEYS + j] = concat(keys[h, 0, i], keys[h, 1, j])
    k1 = jnp.swapaxes(keys[:, 0], 1, 2)                  # (H, HALF, N_KEYS)
    k2 = jnp.swapaxes(keys[:, 1], 1, 2)
    k_full = jnp.concatenate(
        [jnp.repeat(k1, N_KEYS, axis=-1),                # column c -> k1[:, c // 16]
         jnp.tile(k2, (1, 1, N_KEYS))], axis=1)          # column c -> k2[:, c % 16]
    # Block-diagonal fold of the query projection into the key tables.
    w_full = jnp.einsum('dhk,hkc->dhc', wq.reshape(DIM, HEADS, K_DIM), k_full,
                        precision=_HI).reshape(DIM, HSIZE)
    b_full = jnp.einsum('hk,hkc->hc', bq.reshape(HEADS, K_DIM), k_full,
                        precision=_HI).reshape(1, HSIZE)

    # ---- token tiling: big tiles, pad the tail -------------------------------
    tile = max(8, min(tn, _round_up(n, 8)))
    n_pad = _round_up(n, tile)
    if n_pad != n:
        xf = jnp.pad(xf, ((0, n_pad - n), (0, 0)))

    out = pl.pallas_call(
        pkm_kernel,
        out_shape=jax.ShapeDtypeStruct((n_pad, DIM), x.dtype),
        grid_spec=pltpu.PrefetchScalarGridSpec(
            num_scalar_prefetch=0,
            grid=(n_pad // tile,),
            in_specs=[
                pl.BlockSpec((tile, DIM), lambda i: (i, 0)),
                pl.BlockSpec((DIM, HSIZE), lambda i: (0, 0)),    # resident params
                pl.BlockSpec((1, HSIZE), lambda i: (0, 0)),
                pl.BlockSpec((SIZE, DIM), lambda i: (0, 0)),
            ],
            out_specs=pl.BlockSpec((tile, DIM), lambda i: (i, 0)),
        ),
        # Token tiles are fully independent -> "parallel" lets v7x shard the
        # token axis across both TensorCores; harmless on single-TC v5e/v6e.
        compiler_params=pltpu.CompilerParams(dimension_semantics=("parallel",)),
    )(xf, w_full, b_full, values)

    return out[:n].reshape(prefix + (DIM,))


# ---------------------------- pure-JAX reference ------------------------------
def pkm_reference(x, wq, bq, keys, values):
    prefix = x.shape[:-1]
    xf = x.reshape(-1, DIM)
    q = (xf @ wq + bq).reshape(-1, HEADS, K_DIM)
    qh = q.reshape(-1, HEADS, 2, HALF)
    scores = jnp.einsum('nhsd,hskd->nhsk', qh, keys, precision=_HI)
    s1, i1 = lax.top_k(scores[:, :, 0, :], KNN)
    s2, i2 = lax.top_k(scores[:, :, 1, :], KNN)
    all_s = (s1[..., :, None] + s2[..., None, :]).reshape(-1, HEADS, KNN * KNN)
    all_i = (i1[..., :, None] * N_KEYS + i2[..., None, :]).reshape(-1, HEADS, KNN * KNN)
    sc, best = lax.top_k(all_s, KNN)
    idx = jnp.take_along_axis(all_i, best, axis=-1)
    p = jax.nn.softmax(sc.astype(jnp.float32), axis=-1)          # per-head softmax
    idx = idx.reshape(-1, HEADS * KNN)
    p = p.reshape(-1, HEADS * KNN)
    emb = values[idx]                                            # (N, H*KNN, DIM)
    out = (emb * p[..., None]).sum(axis=-2)
    return out.reshape(prefix + (DIM,)).astype(x.dtype)


if __name__ == "__main__":
    key = jax.random.PRNGKey(0)
    k_x, k_wq, k_bq, k_keys, k_vals = jax.random.split(key, 5)

    x = jax.random.normal(k_x, (2, 8, DIM), jnp.float32)          # prefix (2, 8)
    wq = jax.random.normal(k_wq, (DIM, HK), jnp.float32) * (DIM ** -0.5)
    bq = jax.random.normal(k_bq, (HK,), jnp.float32) * 0.01
    bound = HALF ** -0.5
    keys_p = jax.random.uniform(k_keys, (HEADS, 2, N_KEYS, HALF), jnp.float32,
                                minval=-bound, maxval=bound)
    values = jax.random.normal(k_vals, (SIZE, DIM), jnp.float32) * (DIM ** -0.5)

    out = pkm_forward(x, wq, bq, keys_p, values)
    out = jax.block_until_ready(out)

    ref = pkm_reference(x, wq, bq, keys_p, values)
    assert out.shape == ref.shape == (2, 8, DIM)
    # Tolerance budget: the value matmul runs at DEFAULT precision (bf16 MXU
    # passes) -> worst-case per-element error of the 16-term weighted sum is a
    # few 1e-3; any real selection/softmax/scatter bug produces errors >= 5e-2.
    assert jnp.allclose(out, ref, atol=5e-3, rtol=5e-3), \
        f"max abs err = {jnp.max(jnp.abs(out - ref))}"

    print("KERNEL_OK")
</pallas_src>

<mosaic_0001>
module attributes {stable_mosaic.version = 11 : i64} {
  func.func @pkm_kernel(%arg0: i32, %arg1: memref<16x32xf32, #tpu.memory_space<vmem>>, %arg2: memref<32x1024xf32, #tpu.memory_space<vmem>>, %arg3: memref<1x1024xf32, #tpu.memory_space<vmem>>, %arg4: memref<256x32xf32, #tpu.memory_space<vmem>>, %arg5: memref<16x32xf32, #tpu.memory_space<vmem>>) attributes {dimension_semantics = [#tpu.dimension_semantics<parallel>], iteration_bounds = array<i64: 1>, scalar_prefetch = 0 : i64, scratch_operands = 0 : i64, tpu.core_type = #tpu.core_type<tc>, window_params = [{transform_indices = @transform_0, window_bounds = array<i64: 16, 32>}, {pipeline_mode = #tpu.pipeline_mode<synchronous>, transform_indices = @transform_1, window_bounds = array<i64: 32, 1024>}, {pipeline_mode = #tpu.pipeline_mode<synchronous>, transform_indices = @transform_2, window_bounds = array<i64: 1, 1024>}, {pipeline_mode = #tpu.pipeline_mode<synchronous>, transform_indices = @transform_3, window_bounds = array<i64: 256, 32>}, {transform_indices = @transform_4, window_bounds = array<i64: 16, 32>}]} {
    %c0 = arith.constant 0 : index
    %c0_0 = arith.constant 0 : index
    %0 = vector.load %arg1[%c0, %c0_0] : memref<16x32xf32, #tpu.memory_space<vmem>>, vector<16x32xf32>
    %c0_1 = arith.constant 0 : index
    %c0_2 = arith.constant 0 : index
    %1 = vector.load %arg2[%c0_1, %c0_2] : memref<32x1024xf32, #tpu.memory_space<vmem>>, vector<32x1024xf32>
    %cst = arith.constant dense<0.000000e+00> : vector<16x1024xf32>
    %2 = tpu.matmul %0, %1, %cst {dimension_numbers = #tpu.dot_dimension_numbers<[1], [0], [0], [1], [0, 0, 1, 1], [], []>, precision = #tpu.contract_precision<fp32>} : vector<16x32xf32>, vector<32x1024xf32>, vector<16x1024xf32> -> vector<16x1024xf32>
    %c0_3 = arith.constant 0 : index
    %c0_4 = arith.constant 0 : index
    %3 = vector.load %arg3[%c0_3, %c0_4] : memref<1x1024xf32, #tpu.memory_space<vmem>>, vector<1x1024xf32>
    %4 = vector.broadcast %3 : vector<1x1024xf32> to vector<16x1024xf32>
    %5 = arith.addf %2, %4 : vector<16x1024xf32>
    %6 = tpu.iota {dimensions = array<i32: 1>} : vector<16x256xi32>
    %cst_5 = arith.constant 0.000000e+00 : f32
    %7 = vector.broadcast %cst_5 : f32 to vector<16x256xf32>
    %8 = vector.extract_strided_slice %5 {offsets = [0, 0], sizes = [16, 256], strides = [1, 1]} : vector<16x1024xf32> to vector<16x256xf32>
    %cst_6 = arith.constant dense<0xFF800000> : vector<16xf32>
    %9 = vector.multi_reduction <maximumf>, %8, %cst_6 [1] : vector<16x256xf32> to vector<16xf32>
    %10 = vector.shape_cast %9 : vector<16xf32> to vector<16x1xf32>
    %11 = vector.broadcast %10 : vector<16x1xf32> to vector<16x256xf32>
    %12 = arith.cmpf oeq, %8, %11 : vector<16x256xf32>
    %c256_i32 = arith.constant 256 : i32
    %13 = vector.broadcast %c256_i32 : i32 to vector<16x256xi32>
    %14 = arith.select %12, %6, %13 : vector<16x256xi1>, vector<16x256xi32>
    %cst_7 = arith.constant dense<2147483647> : vector<16xi32>
    %15 = vector.multi_reduction <minsi>, %14, %cst_7 [1] : vector<16x256xi32> to vector<16xi32>
    %16 = vector.shape_cast %15 : vector<16xi32> to vector<16x1xi32>
    %17 = vector.broadcast %16 : vector<16x1xi32> to vector<16x256xi32>
    %18 = arith.cmpi eq, %6, %17 : vector<16x256xi32>
    %cst_8 = arith.constant 1.000000e+00 : f32
    %cst_9 = arith.constant 0.000000e+00 : f32
    %19 = vector.broadcast %cst_8 : f32 to vector<16x256xf32>
    %20 = vector.broadcast %cst_9 : f32 to vector<16x256xf32>
    %21 = arith.select %18, %19, %20 : vector<16x256xi1>, vector<16x256xf32>
    %cst_10 = arith.constant 1.000000e+00 : f32
    %22 = vector.broadcast %cst_10 : f32 to vector<16x1xf32>
    %cst_11 = arith.constant 0xFF800000 : f32
    %23 = vector.broadcast %cst_11 : f32 to vector<16x256xf32>
    %24 = arith.select %18, %23, %8 : vector<16x256xi1>, vector<16x256xf32>
    %cst_12 = arith.constant dense<0xFF800000> : vector<16xf32>
    %25 = vector.multi_reduction <maximumf>, %24, %cst_12 [1] : vector<16x256xf32> to vector<16xf32>
    %26 = vector.shape_cast %25 : vector<16xf32> to vector<16x1xf32>
    %27 = vector.broadcast %26 : vector<16x1xf32> to vector<16x256xf32>
    %28 = arith.cmpf oeq, %24, %27 : vector<16x256xf32>
    %c256_i32_13 = arith.constant 256 : i32
    %29 = vector.broadcast %c256_i32_13 : i32 to vector<16x256xi32>
    %30 = arith.select %28, %6, %29 : vector<16x256xi1>, vector<16x256xi32>
    %cst_14 = arith.constant dense<2147483647> : vector<16xi32>
    %31 = vector.multi_reduction <minsi>, %30, %cst_14 [1] : vector<16x256xi32> to vector<16xi32>
    %32 = vector.shape_cast %31 : vector<16xi32> to vector<16x1xi32>
    %33 = vector.broadcast %32 : vector<16x1xi32> to vector<16x256xi32>
    %34 = arith.cmpi eq, %6, %33 : vector<16x256xi32>
    %35 = arith.subf %26, %10 : vector<16x1xf32>
    %36 = math.exp %35 : vector<16x1xf32>
    %37 = arith.addf %22, %36 : vector<16x1xf32>
    %cst_15 = arith.constant 0.000000e+00 : f32
    %38 = vector.shape_cast %36 : vector<16x1xf32> to vector<16x1xf32>
    %39 = vector.broadcast %38 : vector<16x1xf32> to vector<16x256xf32>
    %40 = vector.broadcast %cst_15 : f32 to vector<16x256xf32>
    %41 = arith.select %34, %39, %40 : vector<16x256xi1>, vector<16x256xf32>
    %42 = arith.addf %21, %41 : vector<16x256xf32>
    %cst_16 = arith.constant 0xFF800000 : f32
    %43 = vector.broadcast %cst_16 : f32 to vector<16x256xf32>
    %44 = arith.select %34, %43, %24 : vector<16x256xi1>, vector<16x256xf32>
    %cst_17 = arith.constant dense<0xFF800000> : vector<16xf32>
    %45 = vector.multi_reduction <maximumf>, %44, %cst_17 [1] : vector<16x256xf32> to vector<16xf32>
    %46 = vector.shape_cast %45 : vector<16xf32> to vector<16x1xf32>
    %47 = vector.broadcast %46 : vector<16x1xf32> to vector<16x256xf32>
    %48 = arith.cmpf oeq, %44, %47 : vector<16x256xf32>
    %c256_i32_18 = arith.constant 256 : i32
    %49 = vector.broadcast %c256_i32_18 : i32 to vector<16x256xi32>
    %50 = arith.select %48, %6, %49 : vector<16x256xi1>, vector<16x256xi32>
    %cst_19 = arith.constant dense<2147483647> : vector<16xi32>
    %51 = vector.multi_reduction <minsi>, %50, %cst_19 [1] : vector<16x256xi32> to vector<16xi32>
    %52 = vector.shape_cast %51 : vector<16xi32> to vector<16x1xi32>
    %53 = vector.broadcast %52 : vector<16x1xi32> to vector<16x256xi32>
    %54 = arith.cmpi eq, %6, %53 : vector<16x256xi32>
    %55 = arith.subf %46, %10 : vector<16x1xf32>
    %56 = math.exp %55 : vector<16x1xf32>
    %57 = arith.addf %37, %56 : vector<16x1xf32>
    %cst_20 = arith.constant 0.000000e+00 : f32
    %58 = vector.shape_cast %56 : vector<16x1xf32> to vector<16x1xf32>
    %59 = vector.broadcast %58 : vector<16x1xf32> to vector<16x256xf32>
    %60 = vector.broadcast %cst_20 : f32 to vector<16x256xf32>
    %61 = arith.select %54, %59, %60 : vector<16x256xi1>, vector<16x256xf32>
    %62 = arith.addf %42, %61 : vector<16x256xf32>
    %cst_21 = arith.constant 0xFF800000 : f32
    %63 = vector.broadcast %cst_21 : f32 to vector<16x256xf32>
    %64 = arith.select %54, %63, %44 : vector<16x256xi1>, vector<16x256xf32>
    %cst_22 = arith.constant dense<0xFF800000> : vector<16xf32>
    %65 = vector.multi_reduction <maximumf>, %64, %cst_22 [1] : vector<16x256xf32> to vector<16xf32>
    %66 = vector.shape_cast %65 : vector<16xf32> to vector<16x1xf32>
    %67 = vector.broadcast %66 : vector<16x1xf32> to vector<16x256xf32>
    %68 = arith.cmpf oeq, %64, %67 : vector<16x256xf32>
    %c256_i32_23 = arith.constant 256 : i32
    %69 = vector.broadcast %c256_i32_23 : i32 to vector<16x256xi32>
    %70 = arith.select %68, %6, %69 : vector<16x256xi1>, vector<16x256xi32>
    %cst_24 = arith.constant dense<2147483647> : vector<16xi32>
    %71 = vector.multi_reduction <minsi>, %70, %cst_24 [1] : vector<16x256xi32> to vector<16xi32>
    %72 = vector.shape_cast %71 : vector<16xi32> to vector<16x1xi32>
    %73 = vector.broadcast %72 : vector<16x1xi32> to vector<16x256xi32>
    %74 = arith.cmpi eq, %6, %73 : vector<16x256xi32>
    %75 = arith.subf %66, %10 : vector<16x1xf32>
    %76 = math.exp %75 : vector<16x1xf32>
    %77 = arith.addf %57, %76 : vector<16x1xf32>
    %cst_25 = arith.constant 0.000000e+00 : f32
    %78 = vector.shape_cast %76 : vector<16x1xf32> to vector<16x1xf32>
    %79 = vector.broadcast %78 : vector<16x1xf32> to vector<16x256xf32>
    %80 = vector.broadcast %cst_25 : f32 to vector<16x256xf32>
    %81 = arith.select %74, %79, %80 : vector<16x256xi1>, vector<16x256xf32>
    %82 = arith.addf %62, %81 : vector<16x256xf32>
    %83 = tpu.reciprocal %77 {approx = true} : vector<16x1xf32> -> vector<16x1xf32>
    %84 = vector.broadcast %83 : vector<16x1xf32> to vector<16x256xf32>
    %85 = arith.mulf %82, %84 : vector<16x256xf32>
    %86 = arith.addf %7, %85 : vector<16x256xf32>
    %87 = vector.extract_strided_slice %5 {offsets = [0, 256], sizes = [16, 256], strides = [1, 1]} : vector<16x1024xf32> to vector<16x256xf32>
    %cst_26 = arith.constant dense<0xFF800000> : vector<16xf32>
    %88 = vector.multi_reduction <maximumf>, %87, %cst_26 [1] : vector<16x256xf32> to vector<16xf32>
    %89 = vector.shape_cast %88 : vector<16xf32> to vector<16x1xf32>
    %90 = vector.broadcast %89 : vector<16x1xf32> to vector<16x256xf32>
    %91 = arith.cmpf oeq, %87, %90 : vector<16x256xf32>
    %c256_i32_27 = arith.constant 256 : i32
    %92 = vector.broadcast %c256_i32_27 : i32 to vector<16x256xi32>
    %93 = arith.select %91, %6, %92 : vector<16x256xi1>, vector<16x256xi32>
    %cst_28 = arith.constant dense<2147483647> : vector<16xi32>
    %94 = vector.multi_reduction <minsi>, %93, %cst_28 [1] : vector<16x256xi32> to vector<16xi32>
    %95 = vector.shape_cast %94 : vector<16xi32> to vector<16x1xi32>
    %96 = vector.broadcast %95 : vector<16x1xi32> to vector<16x256xi32>
    %97 = arith.cmpi eq, %6, %96 : vector<16x256xi32>
    %cst_29 = arith.constant 1.000000e+00 : f32
    %cst_30 = arith.constant 0.000000e+00 : f32
    %98 = vector.broadcast %cst_29 : f32 to vector<16x256xf32>
    %99 = vector.broadcast %cst_30 : f32 to vector<16x256xf32>
    %100 = arith.select %97, %98, %99 : vector<16x256xi1>, vector<16x256xf32>
    %cst_31 = arith.constant 1.000000e+00 : f32
    %101 = vector.broadcast %cst_31 : f32 to vector<16x1xf32>
    %cst_32 = arith.constant 0xFF800000 : f32
    %102 = vector.broadcast %cst_32 : f32 to vector<16x256xf32>
    %103 = arith.select %97, %102, %87 : vector<16x256xi1>, vector<16x256xf32>
    %cst_33 = arith.constant dense<0xFF800000> : vector<16xf32>
    %104 = vector.multi_reduction <maximumf>, %103, %cst_33 [1] : vector<16x256xf32> to vector<16xf32>
    %105 = vector.shape_cast %104 : vector<16xf32> to vector<16x1xf32>
    %106 = vector.broadcast %105 : vector<16x1xf32> to vector<16x256xf32>
    %107 = arith.cmpf oeq, %103, %106 : vector<16x256xf32>
    %c256_i32_34 = arith.constant 256 : i32
    %108 = vector.broadcast %c256_i32_34 : i32 to vector<16x256xi32>
    %109 = arith.select %107, %6, %108 : vector<16x256xi1>, vector<16x256xi32>
    %cst_35 = arith.constant dense<2147483647> : vector<16xi32>
    %110 = vector.multi_reduction <minsi>, %109, %cst_35 [1] : vector<16x256xi32> to vector<16xi32>
    %111 = vector.shape_cast %110 : vector<16xi32> to vector<16x1xi32>
    %112 = vector.broadcast %111 : vector<16x1xi32> to vector<16x256xi32>
    %113 = arith.cmpi eq, %6, %112 : vector<16x256xi32>
    %114 = arith.subf %105, %89 : vector<16x1xf32>
    %115 = math.exp %114 : vector<16x1xf32>
    %116 = arith.addf %101, %115 : vector<16x1xf32>
    %cst_36 = arith.constant 0.000000e+00 : f32
    %117 = vector.shape_cast %115 : vector<16x1xf32> to vector<16x1xf32>
    %118 = vector.broadcast %117 : vector<16x1xf32> to vector<16x256xf32>
    %119 = vector.broadcast %cst_36 : f32 to vector<16x256xf32>
    %120 = arith.select %113, %118, %119 : vector<16x256xi1>, vector<16x256xf32>
    %121 = arith.addf %100, %120 : vector<16x256xf32>
    %cst_37 = arith.constant 0xFF800000 : f32
    %122 = vector.broadcast %cst_37 : f32 to vector<16x256xf32>
    %123 = arith.select %113, %122, %103 : vector<16x256xi1>, vector<16x256xf32>
    %cst_38 = arith.constant dense<0xFF800000> : vector<16xf32>
    %124 = vector.multi_reduction <maximumf>, %123, %cst_38 [1] : vector<16x256xf32> to vector<16xf32>
    %125 = vector.shape_cast %124 : vector<16xf32> to vector<16x1xf32>
    %126 = vector.broadcast %125 : vector<16x1xf32> to vector<16x256xf32>
    %127 = arith.cmpf oeq, %123, %126 : vector<16x256xf32>
    %c256_i32_39 = arith.constant 256 : i32
    %128 = vector.broadcast %c256_i32_39 : i32 to vector<16x256xi32>
    %129 = arith.select %127, %6, %128 : vector<16x256xi1>, vector<16x256xi32>
    %cst_40 = arith.constant dense<2147483647> : vector<16xi32>
    %130 = vector.multi_reduction <minsi>, %129, %cst_40 [1] : vector<16x256xi32> to vector<16xi32>
    %131 = vector.shape_cast %130 : vector<16xi32> to vector<16x1xi32>
    %132 = vector.broadcast %131 : vector<16x1xi32> to vector<16x256xi32>
    %133 = arith.cmpi eq, %6, %132 : vector<16x256xi32>
    %134 = arith.subf %125, %89 : vector<16x1xf32>
    %135 = math.exp %134 : vector<16x1xf32>
    %136 = arith.addf %116, %135 : vector<16x1xf32>
    %cst_41 = arith.constant 0.000000e+00 : f32
    %137 = vector.shape_cast %135 : vector<16x1xf32> to vector<16x1xf32>
    %138 = vector.broadcast %137 : vector<16x1xf32> to vector<16x256xf32>
    %139 = vector.broadcast %cst_41 : f32 to vector<16x256xf32>
    %140 = arith.select %133, %138, %139 : vector<16x256xi1>, vector<16x256xf32>
    %141 = arith.addf %121, %140 : vector<16x256xf32>
    %cst_42 = arith.constant 0xFF800000 : f32
    %142 = vector.broadcast %cst_42 : f32 to vector<16x256xf32>
    %143 = arith.select %133, %142, %123 : vector<16x256xi1>, vector<16x256xf32>
    %cst_43 = arith.constant dense<0xFF800000> : vector<16xf32>
    %144 = vector.multi_reduction <maximumf>, %143, %cst_43 [1] : vector<16x256xf32> to vector<16xf32>
    %145 = vector.shape_cast %144 : vector<16xf32> to vector<16x1xf32>
    %146 = vector.broadcast %145 : vector<16x1xf32> to vector<16x256xf32>
    %147 = arith.cmpf oeq, %143, %146 : vector<16x256xf32>
    %c256_i32_44 = arith.constant 256 : i32
    %148 = vector.broadcast %c256_i32_44 : i32 to vector<16x256xi32>
    %149 = arith.select %147, %6, %148 : vector<16x256xi1>, vector<16x256xi32>
    %cst_45 = arith.constant dense<2147483647> : vector<16xi32>
    %150 = vector.multi_reduction <minsi>, %149, %cst_45 [1] : vector<16x256xi32> to vector<16xi32>
    %151 = vector.shape_cast %150 : vector<16xi32> to vector<16x1xi32>
    %152 = vector.broadcast %151 : vector<16x1xi32> to vector<16x256xi32>
    %153 = arith.cmpi eq, %6, %152 : vector<16x256xi32>
    %154 = arith.subf %145, %89 : vector<16x1xf32>
    %155 = math.exp %154 : vector<16x1xf32>
    %156 = arith.addf %136, %155 : vector<16x1xf32>
    %cst_46 = arith.constant 0.000000e+00 : f32
    %157 = vector.shape_cast %155 : vector<16x1xf32> to vector<16x1xf32>
    %158 = vector.broadcast %157 : vector<16x1xf32> to vector<16x256xf32>
    %159 = vector.broadcast %cst_46 : f32 to vector<16x256xf32>
    %160 = arith.select %153, %158, %159 : vector<16x256xi1>, vector<16x256xf32>
    %161 = arith.addf %141, %160 : vector<16x256xf32>
    %162 = tpu.reciprocal %156 {approx = true} : vector<16x1xf32> -> vector<16x1xf32>
    %163 = vector.broadcast %162 : vector<16x1xf32> to vector<16x256xf32>
    %164 = arith.mulf %161, %163 : vector<16x256xf32>
    %165 = arith.addf %86, %164 : vector<16x256xf32>
    %166 = vector.extract_strided_slice %5 {offsets = [0, 512], sizes = [16, 256], strides = [1, 1]} : vector<16x1024xf32> to vector<16x256xf32>
    %cst_47 = arith.constant dense<0xFF800000> : vector<16xf32>
    %167 = vector.multi_reduction <maximumf>, %166, %cst_47 [1] : vector<16x256xf32> to vector<16xf32>
    %168 = vector.shape_cast %167 : vector<16xf32> to vector<16x1xf32>
    %169 = vector.broadcast %168 : vector<16x1xf32> to vector<16x256xf32>
    %170 = arith.cmpf oeq, %166, %169 : vector<16x256xf32>
    %c256_i32_48 = arith.constant 256 : i32
    %171 = vector.broadcast %c256_i32_48 : i32 to vector<16x256xi32>
    %172 = arith.select %170, %6, %171 : vector<16x256xi1>, vector<16x256xi32>
    %cst_49 = arith.constant dense<2147483647> : vector<16xi32>
    %173 = vector.multi_reduction <minsi>, %172, %cst_49 [1] : vector<16x256xi32> to vector<16xi32>
    %174 = vector.shape_cast %173 : vector<16xi32> to vector<16x1xi32>
    %175 = vector.broadcast %174 : vector<16x1xi32> to vector<16x256xi32>
    %176 = arith.cmpi eq, %6, %175 : vector<16x256xi32>
    %cst_50 = arith.constant 1.000000e+00 : f32
    %cst_51 = arith.constant 0.000000e+00 : f32
    %177 = vector.broadcast %cst_50 : f32 to vector<16x256xf32>
    %178 = vector.broadcast %cst_51 : f32 to vector<16x256xf32>
    %179 = arith.select %176, %177, %178 : vector<16x256xi1>, vector<16x256xf32>
    %cst_52 = arith.constant 1.000000e+00 : f32
    %180 = vector.broadcast %cst_52 : f32 to vector<16x1xf32>
    %cst_53 = arith.constant 0xFF800000 : f32
    %181 = vector.broadcast %cst_53 : f32 to vector<16x256xf32>
    %182 = arith.select %176, %181, %166 : vector<16x256xi1>, vector<16x256xf32>
    %cst_54 = arith.constant dense<0xFF800000> : vector<16xf32>
    %183 = vector.multi_reduction <maximumf>, %182, %cst_54 [1] : vector<16x256xf32> to vector<16xf32>
    %184 = vector.shape_cast %183 : vector<16xf32> to vector<16x1xf32>
    %185 = vector.broadcast %184 : vector<16x1xf32> to vector<16x256xf32>
    %186 = arith.cmpf oeq, %182, %185 : vector<16x256xf32>
    %c256_i32_55 = arith.constant 256 : i32
    %187 = vector.broadcast %c256_i32_55 : i32 to vector<16x256xi32>
    %188 = arith.select %186, %6, %187 : vector<16x256xi1>, vector<16x256xi32>
    %cst_56 = arith.constant dense<2147483647> : vector<16xi32>
    %189 = vector.multi_reduction <minsi>, %188, %cst_56 [1] : vector<16x256xi32> to vector<16xi32>
    %190 = vector.shape_cast %189 : vector<16xi32> to vector<16x1xi32>
    %191 = vector.broadcast %190 : vector<16x1xi32> to vector<16x256xi32>
    %192 = arith.cmpi eq, %6, %191 : vector<16x256xi32>
    %193 = arith.subf %184, %168 : vector<16x1xf32>
    %194 = math.exp %193 : vector<16x1xf32>
    %195 = arith.addf %180, %194 : vector<16x1xf32>
    %cst_57 = arith.constant 0.000000e+00 : f32
    %196 = vector.shape_cast %194 : vector<16x1xf32> to vector<16x1xf32>
    %197 = vector.broadcast %196 : vector<16x1xf32> to vector<16x256xf32>
    %198 = vector.broadcast %cst_57 : f32 to vector<16x256xf32>
    %199 = arith.select %192, %197, %198 : vector<16x256xi1>, vector<16x256xf32>
    %200 = arith.addf %179, %199 : vector<16x256xf32>
    %cst_58 = arith.constant 0xFF800000 : f32
    %201 = vector.broadcast %cst_58 : f32 to vector<16x256xf32>
    %202 = arith.select %192, %201, %182 : vector<16x256xi1>, vector<16x256xf32>
    %cst_59 = arith.constant dense<0xFF800000> : vector<16xf32>
    %203 = vector.multi_reduction <maximumf>, %202, %cst_59 [1] : vector<16x256xf32> to vector<16xf32>
    %204 = vector.shape_cast %203 : vector<16xf32> to vector<16x1xf32>
    %205 = vector.broadcast %204 : vector<16x1xf32> to vector<16x256xf32>
    %206 = arith.cmpf oeq, %202, %205 : vector<16x256xf32>
    %c256_i32_60 = arith.constant 256 : i32
    %207 = vector.broadcast %c256_i32_60 : i32 to vector<16x256xi32>
    %208 = arith.select %206, %6, %207 : vector<16x256xi1>, vector<16x256xi32>
    %cst_61 = arith.constant dense<2147483647> : vector<16xi32>
    %209 = vector.multi_reduction <minsi>, %208, %cst_61 [1] : vector<16x256xi32> to vector<16xi32>
    %210 = vector.shape_cast %209 : vector<16xi32> to vector<16x1xi32>
    %211 = vector.broadcast %210 : vector<16x1xi32> to vector<16x256xi32>
    %212 = arith.cmpi eq, %6, %211 : vector<16x256xi32>
    %213 = arith.subf %204, %168 : vector<16x1xf32>
    %214 = math.exp %213 : vector<16x1xf32>
    %215 = arith.addf %195, %214 : vector<16x1xf32>
    %cst_62 = arith.constant 0.000000e+00 : f32
    %216 = vector.shape_cast %214 : vector<16x1xf32> to vector<16x1xf32>
    %217 = vector.broadcast %216 : vector<16x1xf32> to vector<16x256xf32>
    %218 = vector.broadcast %cst_62 : f32 to vector<16x256xf32>
    %219 = arith.select %212, %217, %218 : vector<16x256xi1>, vector<16x256xf32>
    %220 = arith.addf %200, %219 : vector<16x256xf32>
    %cst_63 = arith.constant 0xFF800000 : f32
    %221 = vector.broadcast %cst_63 : f32 to vector<16x256xf32>
    %222 = arith.select %212, %221, %202 : vector<16x256xi1>, vector<16x256xf32>
    %cst_64 = arith.constant dense<0xFF800000> : vector<16xf32>
    %223 = vector.multi_reduction <maximumf>, %222, %cst_64 [1] : vector<16x256xf32> to vector<16xf32>
    %224 = vector.shape_cast %223 : vector<16xf32> to vector<16x1xf32>
    %225 = vector.broadcast %224 : vector<16x1xf32> to vector<16x256xf32>
    %226 = arith.cmpf oeq, %222, %225 : vector<16x256xf32>
    %c256_i32_65 = arith.constant 256 : i32
    %227 = vector.broadcast %c256_i32_65 : i32 to vector<16x256xi32>
    %228 = arith.select %226, %6, %227 : vector<16x256xi1>, vector<16x256xi32>
    %cst_66 = arith.constant dense<2147483647> : vector<16xi32>
    %229 = vector.multi_reduction <minsi>, %228, %cst_66 [1] : vector<16x256xi32> to vector<16xi32>
    %230 = vector.shape_cast %229 : vector<16xi32> to vector<16x1xi32>
    %231 = vector.broadcast %230 : vector<16x1xi32> to vector<16x256xi32>
    %232 = arith.cmpi eq, %6, %231 : vector<16x256xi32>
    %233 = arith.subf %224, %168 : vector<16x1xf32>
    %234 = math.exp %233 : vector<16x1xf32>
    %235 = arith.addf %215, %234 : vector<16x1xf32>
    %cst_67 = arith.constant 0.000000e+00 : f32
    %236 = vector.shape_cast %234 : vector<16x1xf32> to vector<16x1xf32>
    %237 = vector.broadcast %236 : vector<16x1xf32> to vector<16x256xf32>
    %238 = vector.broadcast %cst_67 : f32 to vector<16x256xf32>
    %239 = arith.select %232, %237, %238 : vector<16x256xi1>, vector<16x256xf32>
    %240 = arith.addf %220, %239 : vector<16x256xf32>
    %241 = tpu.reciprocal %235 {approx = true} : vector<16x1xf32> -> vector<16x1xf32>
    %242 = vector.broadcast %241 : vector<16x1xf32> to vector<16x256xf32>
    %243 = arith.mulf %240, %242 : vector<16x256xf32>
    %244 = arith.addf %165, %243 : vector<16x256xf32>
    %245 = vector.extract_strided_slice %5 {offsets = [0, 768], sizes = [16, 256], strides = [1, 1]} : vector<16x1024xf32> to vector<16x256xf32>
    %cst_68 = arith.constant dense<0xFF800000> : vector<16xf32>
    %246 = vector.multi_reduction <maximumf>, %245, %cst_68 [1] : vector<16x256xf32> to vector<16xf32>
    %247 = vector.shape_cast %246 : vector<16xf32> to vector<16x1xf32>
    %248 = vector.broadcast %247 : vector<16x1xf32> to vector<16x256xf32>
    %249 = arith.cmpf oeq, %245, %248 : vector<16x256xf32>
    %c256_i32_69 = arith.constant 256 : i32
    %250 = vector.broadcast %c256_i32_69 : i32 to vector<16x256xi32>
    %251 = arith.select %249, %6, %250 : vector<16x256xi1>, vector<16x256xi32>
    %cst_70 = arith.constant dense<2147483647> : vector<16xi32>
    %252 = vector.multi_reduction <minsi>, %251, %cst_70 [1] : vector<16x256xi32> to vector<16xi32>
    %253 = vector.shape_cast %252 : vector<16xi32> to vector<16x1xi32>
    %254 = vector.broadcast %253 : vector<16x1xi32> to vector<16x256xi32>
    %255 = arith.cmpi eq, %6, %254 : vector<16x256xi32>
    %cst_71 = arith.constant 1.000000e+00 : f32
    %cst_72 = arith.constant 0.000000e+00 : f32
    %256 = vector.broadcast %cst_71 : f32 to vector<16x256xf32>
    %257 = vector.broadcast %cst_72 : f32 to vector<16x256xf32>
    %258 = arith.select %255, %256, %257 : vector<16x256xi1>, vector<16x256xf32>
    %cst_73 = arith.constant 1.000000e+00 : f32
    %259 = vector.broadcast %cst_73 : f32 to vector<16x1xf32>
    %cst_74 = arith.constant 0xFF800000 : f32
    %260 = vector.broadcast %cst_74 : f32 to vector<16x256xf32>
    %261 = arith.select %255, %260, %245 : vector<16x256xi1>, vector<16x256xf32>
    %cst_75 = arith.constant dense<0xFF800000> : vector<16xf32>
    %262 = vector.multi_reduction <maximumf>, %261, %cst_75 [1] : vector<16x256xf32> to vector<16xf32>
    %263 = vector.shape_cast %262 : vector<16xf32> to vector<16x1xf32>
    %264 = vector.broadcast %263 : vector<16x1xf32> to vector<16x256xf32>
    %265 = arith.cmpf oeq, %261, %264 : vector<16x256xf32>
    %c256_i32_76 = arith.constant 256 : i32
    %266 = vector.broadcast %c256_i32_76 : i32 to vector<16x256xi32>
    %267 = arith.select %265, %6, %266 : vector<16x256xi1>, vector<16x256xi32>
    %cst_77 = arith.constant dense<2147483647> : vector<16xi32>
    %268 = vector.multi_reduction <minsi>, %267, %cst_77 [1] : vector<16x256xi32> to vector<16xi32>
    %269 = vector.shape_cast %268 : vector<16xi32> to vector<16x1xi32>
    %270 = vector.broadcast %269 : vector<16x1xi32> to vector<16x256xi32>
    %271 = arith.cmpi eq, %6, %270 : vector<16x256xi32>
    %272 = arith.subf %263, %247 : vector<16x1xf32>
    %273 = math.exp %272 : vector<16x1xf32>
    %274 = arith.addf %259, %273 : vector<16x1xf32>
    %cst_78 = arith.constant 0.000000e+00 : f32
    %275 = vector.shape_cast %273 : vector<16x1xf32> to vector<16x1xf32>
    %276 = vector.broadcast %275 : vector<16x1xf32> to vector<16x256xf32>
    %277 = vector.broadcast %cst_78 : f32 to vector<16x256xf32>
    %278 = arith.select %271, %276, %277 : vector<16x256xi1>, vector<16x256xf32>
    %279 = arith.addf %258, %278 : vector<16x256xf32>
    %cst_79 = arith.constant 0xFF800000 : f32
    %280 = vector.broadcast %cst_79 : f32 to vector<16x256xf32>
    %281 = arith.select %271, %280, %261 : vector<16x256xi1>, vector<16x256xf32>
    %cst_80 = arith.constant dense<0xFF800000> : vector<16xf32>
    %282 = vector.multi_reduction <maximumf>, %281, %cst_80 [1] : vector<16x256xf32> to vector<16xf32>
    %283 = vector.shape_cast %282 : vector<16xf32> to vector<16x1xf32>
    %284 = vector.broadcast %283 : vector<16x1xf32> to vector<16x256xf32>
    %285 = arith.cmpf oeq, %281, %284 : vector<16x256xf32>
    %c256_i32_81 = arith.constant 256 : i32
    %286 = vector.broadcast %c256_i32_81 : i32 to vector<16x256xi32>
    %287 = arith.select %285, %6, %286 : vector<16x256xi1>, vector<16x256xi32>
    %cst_82 = arith.constant dense<2147483647> : vector<16xi32>
    %288 = vector.multi_reduction <minsi>, %287, %cst_82 [1] : vector<16x256xi32> to vector<16xi32>
    %289 = vector.shape_cast %288 : vector<16xi32> to vector<16x1xi32>
    %290 = vector.broadcast %289 : vector<16x1xi32> to vector<16x256xi32>
    %291 = arith.cmpi eq, %6, %290 : vector<16x256xi32>
    %292 = arith.subf %283, %247 : vector<16x1xf32>
    %293 = math.exp %292 : vector<16x1xf32>
    %294 = arith.addf %274, %293 : vector<16x1xf32>
    %cst_83 = arith.constant 0.000000e+00 : f32
    %295 = vector.shape_cast %293 : vector<16x1xf32> to vector<16x1xf32>
    %296 = vector.broadcast %295 : vector<16x1xf32> to vector<16x256xf32>
    %297 = vector.broadcast %cst_83 : f32 to vector<16x256xf32>
    %298 = arith.select %291, %296, %297 : vector<16x256xi1>, vector<16x256xf32>
    %299 = arith.addf %279, %298 : vector<16x256xf32>
    %cst_84 = arith.constant 0xFF800000 : f32
    %300 = vector.broadcast %cst_84 : f32 to vector<16x256xf32>
    %301 = arith.select %291, %300, %281 : vector<16x256xi1>, vector<16x256xf32>
    %cst_85 = arith.constant dense<0xFF800000> : vector<16xf32>
    %302 = vector.multi_reduction <maximumf>, %301, %cst_85 [1] : vector<16x256xf32> to vector<16xf32>
    %303 = vector.shape_cast %302 : vector<16xf32> to vector<16x1xf32>
    %304 = vector.broadcast %303 : vector<16x1xf32> to vector<16x256xf32>
    %305 = arith.cmpf oeq, %301, %304 : vector<16x256xf32>
    %c256_i32_86 = arith.constant 256 : i32
    %306 = vector.broadcast %c256_i32_86 : i32 to vector<16x256xi32>
    %307 = arith.select %305, %6, %306 : vector<16x256xi1>, vector<16x256xi32>
    %cst_87 = arith.constant dense<2147483647> : vector<16xi32>
    %308 = vector.multi_reduction <minsi>, %307, %cst_87 [1] : vector<16x256xi32> to vector<16xi32>
    %309 = vector.shape_cast %308 : vector<16xi32> to vector<16x1xi32>
    %310 = vector.broadcast %309 : vector<16x1xi32> to vector<16x256xi32>
    %311 = arith.cmpi eq, %6, %310 : vector<16x256xi32>
    %312 = arith.subf %303, %247 : vector<16x1xf32>
    %313 = math.exp %312 : vector<16x1xf32>
    %314 = arith.addf %294, %313 : vector<16x1xf32>
    %cst_88 = arith.constant 0.000000e+00 : f32
    %315 = vector.shape_cast %313 : vector<16x1xf32> to vector<16x1xf32>
    %316 = vector.broadcast %315 : vector<16x1xf32> to vector<16x256xf32>
    %317 = vector.broadcast %cst_88 : f32 to vector<16x256xf32>
    %318 = arith.select %311, %316, %317 : vector<16x256xi1>, vector<16x256xf32>
    %319 = arith.addf %299, %318 : vector<16x256xf32>
    %320 = tpu.reciprocal %314 {approx = true} : vector<16x1xf32> -> vector<16x1xf32>
    %321 = vector.broadcast %320 : vector<16x1xf32> to vector<16x256xf32>
    %322 = arith.mulf %319, %321 : vector<16x256xf32>
    %323 = arith.addf %244, %322 : vector<16x256xf32>
    %c0_89 = arith.constant 0 : index
    %c0_90 = arith.constant 0 : index
    %324 = vector.load %arg4[%c0_89, %c0_90] : memref<256x32xf32, #tpu.memory_space<vmem>>, vector<256x32xf32>
    %cst_91 = arith.constant dense<0.000000e+00> : vector<16x32xf32>
    %325 = tpu.matmul %323, %324, %cst_91 {dimension_numbers = #tpu.dot_dimension_numbers<[1], [0], [0], [1], [0, 0, 1, 1], [], []>} : vector<16x256xf32>, vector<256x32xf32>, vector<16x32xf32> -> vector<16x32xf32>
    %c0_92 = arith.constant 0 : index
    %c0_93 = arith.constant 0 : index
    %326 = vector.load %arg5[%c0_92, %c0_93] : memref<16x32xf32, #tpu.memory_space<vmem>>, vector<16x32xf32>
    tpu.vector_store %arg5[%c0_92, %c0_93], %325 {strides = array<i32>} : memref<16x32xf32, #tpu.memory_space<vmem>>, vector<16x32xf32>,
    return
  }
  func.func @transform_0(%arg0: i32) -> (i32, i32) {
    %c0_i32 = arith.constant 0 : i32
    %c0_i32_0 = arith.constant 0 : i32
    return %arg0, %c0_i32 : i32, i32
  }
  func.func @transform_1(%arg0: i32) -> (i32, i32) {
    %c0_i32 = arith.constant 0 : i32
    %c0_i32_0 = arith.constant 0 : i32
    %c0_i32_1 = arith.constant 0 : i32
    return %c0_i32, %c0_i32_0 : i32, i32
  }
  func.func @transform_2(%arg0: i32) -> (i32, i32) {
    %c0_i32 = arith.constant 0 : i32
    %c0_i32_0 = arith.constant 0 : i32
    %c0_i32_1 = arith.constant 0 : i32
    return %c0_i32, %c0_i32_0 : i32, i32
  }
  func.func @transform_3(%arg0: i32) -> (i32, i32) {
    %c0_i32 = arith.constant 0 : i32
    %c0_i32_0 = arith.constant 0 : i32
    %c0_i32_1 = arith.constant 0 : i32
    return %c0_i32, %c0_i32_0 : i32, i32
  }
  func.func @transform_4(%arg0: i32) -> (i32, i32) {
    %c0_i32 = arith.constant 0 : i32
    %c0_i32_0 = arith.constant 0 : i32
    return %arg0, %c0_i32 : i32, i32
  }
}

</mosaic_0001>

<bundles_post_ra>
// kernel: tpu_custom_call.1
= control target key start
LH: loop header
LB: loop body
LE: loop exit
PB: predicated region body
PF: predicated region fallthrough
CT: control target
= control target key end

     0   :  { %v6095_v9 = vmov 0.0   ;;  %vm6088_vm0 = vcmask 261120   ;;  %s6082_s0 = inlined_call_operand.vmem [shape: f32[16,32], index: 0, kind: input, shape index: {}]   ;;  %s6083_s1 = inlined_call_operand.vmem [shape: f32[32,1024], index: 1, kind: input, shape index: {}]   ;;  %s6084_s2 = inlined_call_operand.vmem [shape: f32[1,1024], index: 2, kind: input, shape index: {}]   ;;  %s6085_s3 = inlined_call_operand.vmem [shape: f32[256,32], index: 3, kind: input, shape index: {}]   ;;  %s6086_s4 = inlined_call_operand.hbm [shape: f32[16,32], index: 4, kind: output, shape index: {}]  }
   0x1   :  { %v21_v0 = vld [vmem:[%s6083_s1 + $0x8] sm:$0xff]  ;;  %v20_v2 = vld [vmem:[%s6083_s1] sm:$0xff]  ;;  %173 = vmatprep.mubr.f32.mxu1 %v6095_v9  ;;  %395 = vmatprep.mubr.f32.mxu0 %v6095_v9  ;;  %v23_v57 = vld [vmem:[%s6083_s1 + $0x18] sm:$0xff] }
   0x2   :  { %v29_v1 = vld [vmem:[%s6083_s1 + $0x48] sm:$0xff]  ;;  %v101_v3 = vand.u32 4294901760, %v21_v0  ;;  %v28_v5 = vld [vmem:[%s6083_s1 + $0x40] sm:$0xff]  ;;  %v103_v6 = vand.u32 4294901760, %v20_v2 }
   0x3   :  { %v105_v4 = vand.u32 4294901760, %v29_v1  ;;  %v37_v7 = vld [vmem:[%s6083_s1 + $0x88] sm:$0xff]  ;;  %v107_v10 = vand.u32 4294901760, %v28_v5  ;;  %v36_v13 = vld [vmem:[%s6083_s1 + $0x80] sm:$0xff] }
   0x4   :  { %v45_v8 = vld [vmem:[%s6083_s1 + $0xc8] sm:$0xff]  ;;  %v109_v11 = vand.u32 4294901760, %v37_v7  ;;  %v4197_v15 = vsub.f32 %v21_v0, %v101_v3  ;;  %v4201_v17 = vsub.f32 %v20_v2, %v103_v6  ;;  %v44_v18 = vld [vmem:[%s6083_s1 + $0xc0] sm:$0xff]  ;;  %v111_v27 = vand.u32 4294901760, %v36_v13 }
   0x5   :  { %v113_v12 = vand.u32 4294901760, %v45_v8  ;;  %v4195_v14 = vpack.c.bf16 %v105_v4, %v101_v3  ;;  %v4199_v16 = vsub.f32 %v29_v1, %v105_v4  ;;  %v18_v19 = vld [vmem:[%s6082_s0] sm:$0xff]  ;;  %v4209_v20 = vpack.c.bf16 %v107_v10, %v103_v6  ;;  %v19_v32 = vld [vmem:[%s6082_s0 + $0x8] sm:$0xff] }
   0x6   :  { %v4211_v21 = vsub.f32 %v28_v5, %v107_v10  ;;  %v4215_v23 = vsub.f32 %v37_v7, %v109_v11  ;;  %v204_v25 = vand.u32 4294901760, %v4201_v17  ;;  %v115_v30 = vand.u32 4294901760, %v44_v18 }
   0x7   :  { %v4213_v22 = vpack.c.bf16 %v113_v12, %v109_v11  ;;  %3732 = vmatprep.subr.bf16.mxu1 %v4195_v14  ;;  %v3747_v24 = vpack.c.bf16 %v4199_v16, %v4197_v15  ;;  %v4221_v26 = vsub.f32 %v45_v8, %v113_v12  ;;  %v96_v31 = vsel %vm6088_vm0, %v18_v19, 0 }
   0x8   :  { %3734 = vmatpush1.bf16.msra.mxu1 %v4209_v20  ;;  %v216_v28 = vand.u32 4294901760, %v4211_v21  ;;  %v3749_v29 = vpack.c.bf16 %v4211_v21, %v4201_v17  ;;  %v4232_v33 = vsub.f32 %v36_v13, %v111_v27  ;;  %v4236_v35 = vand.u32 4294901760, %v96_v31 }
   0x9   :  { %3748 = vmatprep.subr.bf16.mxu0 %v3747_v24  ;;  %3736 = vmatprep.subr.bf16.mxu1 %v4213_v22  ;;  %v3751_v34 = vpack.c.bf16 %v4221_v26, %v4215_v23  ;;  %v198_v36 = vand.u32 4294901760, %v4197_v15  ;;  %v4239_v37 = vpack.c.bf16 %v115_v30, %v111_v27  ;;  %v4241_v38 = vsub.f32 %v44_v18, %v115_v30 }
   0xa   :  { %3750 = vmatpush1.bf16.msra.mxu0 %v3749_v29  ;;  %v210_v39 = vand.u32 4294901760, %v4199_v16  ;;  %v205_v40 = vsub.f32 %v4201_v17, %v204_v25  ;;  %v4248_v41 = vsub.f32 %v96_v31, %v4236_v35  ;;  %v217_v43 = vsub.f32 %v4211_v21, %v216_v28 }
   0xb   :  { %3752 = vmatprep.subr.bf16.mxu0 %v3751_v34  ;;  %v199_v42 = vsub.f32 %v4197_v15, %v198_v36  ;;  %v99_v44 = vsel %vm6088_vm0, %v19_v32, 0  ;;  %v3753_v45 = vpack.c.bf16 %v4241_v38, %v4232_v33  ;;  %v222_v52 = vand.u32 4294901760, %v4215_v23 }
   0xc   :  { %3738 = vmatpush1.bf16.msra.mxu1 %v4239_v37  ;;  %v211_v46 = vsub.f32 %v4199_v16, %v210_v39  ;;  %v206_v47 = vand.u32 4294901760, %v205_v40  ;;  %v4263_v48 = vand.u32 4294901760, %v99_v44  ;;  %v4266_v49 = vand.u32 4294901760, %v4248_v41 }
   0xd   :  { %v200_v50 = vand.u32 4294901760, %v199_v42  ;;  %v218_v51 = vand.u32 4294901760, %v217_v43  ;;  %v234_v55 = vand.u32 4294901760, %v4221_v26  ;;  %v228_v56 = vand.u32 4294901760, %v4232_v33 }
   0xe   :  { %3754 = vmatpush1.bf16.msra.mxu0 %v3753_v45  ;;  %v212_v53 = vand.u32 4294901760, %v211_v46  ;;  %v4270_v54 = vsub.f32 %v99_v44, %v4263_v48 }
   0xf   :  { %9 = vsyncpa [#allocation3], 0  ;;  %v177_v58 = vsub.f32 %v4248_v41, %v4266_v49  ;;  %v3741_v59 = vpack.c.bf16 %v218_v51, %v206_v47  ;;  %3756 = vmatprep.subr.bf16.mxu0 %v4195_v14  ;;  %v223_v60 = vsub.f32 %v4215_v23, %v222_v52  ;;  %v240_v61 = vand.u32 4294901760, %v4241_v38  ;;  %v31_v62 = vld [vmem:[%s6083_s1 + $0x58] sm:$0xff]  ;;  %v22_v3 = vld [vmem:[%s6083_s1 + $0x10] sm:$0xff] }
  0x10   :  { %v3739_v63 = vpack.c.bf16 %v212_v53, %v200_v50  ;;  %v4288_v0 = vand.u32 4294901760, %v4270_v54  ;;  %v235_v1 = vsub.f32 %v4221_v26, %v234_v55  ;;  %v229_v2 = vsub.f32 %v4232_v33, %v228_v56  ;;  %v30_v4 = vld [vmem:[%s6083_s1 + $0x50] sm:$0xff]  ;;  %v39_v18 = vld [vmem:[%s6083_s1 + $0x98] sm:$0xff] }
  0x11   :  { %v4300_v5 = vand.u32 4294901760, %v177_v58  ;;  %398 = vmatmul.mubr.f32.vlgmr.msra.gmra.mrb[0].mxu0 %v4248_v41  ;;  %v224_v6 = vand.u32 4294901760, %v223_v60  ;;  %v241_v7 = vsub.f32 %v4241_v38, %v240_v61  ;;  %v693_v8 = vand.u32 4294901760, %v23_v57  ;;  %v47_v29 = vld [vmem:[%s6083_s1 + $0xd8] sm:$0xff]  ;;  %v38_v38 = vld [vmem:[%s6083_s1 + $0x90] sm:$0xff] }
  0x12   :  { %3740 = vmatprep.subr.bf16.mxu1 %v3739_v63  ;;  %3758 = vmatpush1.bf16.msra.mxu0 %v4209_v20  ;;  %v188_v10 = vsub.f32 %v4270_v54, %v4288_v0  ;;  %v236_v11 = vand.u32 4294901760, %v235_v1  ;;  %v230_v12 = vand.u32 4294901760, %v229_v2  ;;  %v697_v13 = vand.u32 4294901760, %v31_v62  ;;  %v46_v40 = vld [vmem:[%s6083_s1 + $0xd0] sm:$0xff] }
  0x13   :  { %179 = vmatmul.mubr.f32.vlgmr.msra.gmra.mrb[0].mxu1 %v4300_v5  ;;  %v242_v19 = vand.u32 4294901760, %v241_v7  ;;  %403 = vmatprep.mubr.f32.mxu0 %v6095_v9  ;;  %v4312_v24 = vsub.f32 %v23_v57, %v693_v8  ;;  %v695_v26 = vand.u32 4294901760, %v22_v3  ;;  %v699_v27 = vand.u32 4294901760, %v30_v4 }
  0x14   :  { %3742 = vmatpush1.bf16.msra.mxu1 %v3741_v59  ;;  %184 = vmatprep.mubr.f32.mxu1 %v6095_v9  ;;  %v4318_v30 = vand.u32 4294901760, %v188_v10  ;;  %v3743_v31 = vpack.c.bf16 %v236_v11, %v224_v6  ;;  %v4320_v32 = vpack.c.bf16 %v697_v13, %v693_v8  ;;  %v4322_v34 = vsub.f32 %v31_v62, %v697_v13  ;;  %v25_v10 = vld [vmem:[%s6083_s1 + $0x28] sm:$0xff] }
  0x15   :  { %v3745_v42 = vpack.c.bf16 %v242_v19, %v230_v12  ;;  %406 = vmatmul.mubr.f32.gmra.mrb[2].mxu0 %v4270_v54  ;;  %3760 = vmatprep.subr.bf16.mxu0 %v4213_v22  ;;  %v4332_v43 = vpack.c.bf16 %v699_v27, %v695_v26  ;;  %v4334_v44 = vsub.f32 %v22_v3, %v695_v26  ;;  %v701_v45 = vand.u32 4294901760, %v39_v18  ;;  %v33_v11 = vld [vmem:[%s6083_s1 + $0x68] sm:$0xff]  ;;  %v24_v19 = vld [vmem:[%s6083_s1 + $0x20] sm:$0xff] }
  0x16   :  { %3744 = vmatprep.subr.bf16.mxu1 %v3743_v31  ;;  %3762 = vmatpush1.bf16.msra.mxu0 %v4239_v37  ;;  %v4337_v46 = vsub.f32 %v30_v4, %v699_v27  ;;  %v3763_v47 = vpack.c.bf16 %v210_v39, %v198_v36  ;;  %v3765_v50 = vpack.c.bf16 %v216_v28, %v204_v25  ;;  %v705_v51 = vand.u32 4294901760, %v47_v29  ;;  %v32_v26 = vld [vmem:[%s6083_s1 + $0x60] sm:$0xff] }
  0x17   :  { %190 = vmatmul.mubr.f32.gmra.mrb[2].mxu1 %v4318_v30  ;;  %484 = vmatprep.mubr.f32.mxu0 %v6095_v9  ;;  %v4349_v53 = vsub.f32 %v39_v18, %v701_v45  ;;  %v703_v57 = vand.u32 4294901760, %v38_v38  ;;  %v707_v58 = vand.u32 4294901760, %v46_v40  ;;  %v3767_v15 = vpack.c.bf16 %v234_v55, %v222_v52 }
  0x18   :  { %3746 = vmatpush1.bf16.msra.mxu1 %v3745_v42  ;;  %300 = vmatprep.mubr.f32.mxu1 %v6095_v9  ;;  %v4354_v16 = vpack.c.bf16 %v705_v51, %v701_v45  ;;  %v4356_v17 = vsub.f32 %v47_v29, %v705_v51  ;;  %v3769_v21 = vpack.c.bf16 %v240_v61, %v228_v56  ;;  %v790_v25 = vand.u32 4294901760, %v4312_v24 }
  0x19   :  { %3780 = vmatprep.subr.bf16.mxu1 %v4320_v32  ;;  %488 = vmatmul.mubr.f32.vlgmr.msra.gmra.mrb[0].mxu0 %v4266_v49  ;;  %v4363_v28 = vpack.c.bf16 %v707_v58, %v703_v57  ;;  %v4365_v23 = vsub.f32 %v38_v38, %v703_v57  ;;  %v4367_v36 = vsub.f32 %v46_v40, %v707_v58  ;;  %v802_v39 = vand.u32 4294901760, %v4322_v34  ;;  %v49_v58 = vld [vmem:[%s6083_s1 + $0xe8] sm:$0xff] }
  0x1a   :  { %3764 = vmatprep.subr.bf16.mxu0 %v3763_v47  ;;  %493 = vmatprep.mubr.f32.mxu0 %v6095_v9  ;;  %v791_v33 = vsub.f32 %v4312_v24, %v790_v25  ;;  %v796_v52 = vand.u32 4294901760, %v4334_v44  ;;  %v808_v55 = vand.u32 4294901760, %v4337_v46  ;;  %v814_v56 = vand.u32 4294901760, %v4349_v53  ;;  %v41_v47 = vld [vmem:[%s6083_s1 + $0xa8] sm:$0xff] }
  0x1b   :  { %302 = vmatmul.mubr.f32.vlgmr.msra.gmra.mrb[0].mxu1 %v4236_v35  ;;  %3766 = vmatpush1.bf16.msra.mxu0 %v3765_v50  ;;  %v803_v59 = vsub.f32 %v4322_v34, %v802_v39  ;;  %v826_v60 = vand.u32 4294901760, %v4356_v17  ;;  %v820_v61 = vand.u32 4294901760, %v4365_v23  ;;  %v832_v62 = vand.u32 4294901760, %v4367_v36 }
  0x1c   :  { %3782 = vmatpush1.bf16.msra.mxu1 %v4332_v43  ;;  %307 = vmatprep.mubr.f32.mxu1 %v6095_v9  ;;  %v792_v63 = vand.u32 4294901760, %v791_v33  ;;  %v797_v1 = vsub.f32 %v4334_v44, %v796_v52  ;;  %v809_v2 = vsub.f32 %v4337_v46, %v808_v55  ;;  %v815_v3 = vsub.f32 %v4349_v53, %v814_v56 }
  0x1d   :  { %3784 = vmatprep.subr.bf16.mxu1 %v4354_v16  ;;  %497 = vmatmul.mubr.f32.gmra.mrb[2].mxu0 %v4288_v0  ;;  %v804_v4 = vand.u32 4294901760, %v803_v59  ;;  %v827_v6 = vsub.f32 %v4356_v17, %v826_v60  ;;  %v821_v7 = vsub.f32 %v4365_v23, %v820_v61  ;;  %v833_v8 = vsub.f32 %v4367_v36, %v832_v62 }
  0x1e   :  { %3768 = vmatprep.subr.bf16.mxu0 %v3767_v15  ;;  %591 = vmatprep.mubr.f32.mxu0 %v6095_v9  ;;  %v798_v12 = vand.u32 4294901760, %v797_v1  ;;  %v810_v13 = vand.u32 4294901760, %v809_v2  ;;  %v816_v18 = vand.u32 4294901760, %v815_v3  ;;  %v1285_v42 = vand.u32 4294901760, %v25_v10  ;;  %v40_v15 = vld [vmem:[%s6083_s1 + $0xa0] sm:$0xff] }
  0x1f   :  { %309 = vmatmul.mubr.f32.gmra.mrb[2].mxu1 %v4263_v48  ;;  %3770 = vmatpush1.bf16.msra.mxu0 %v3769_v21  ;;  %v3787_v27 = vpack.c.bf16 %v804_v4, %v792_v63  ;;  %v828_v29 = vand.u32 4294901760, %v827_v6  ;;  %v822_v31 = vand.u32 4294901760, %v821_v7  ;;  %v834_v38 = vand.u32 4294901760, %v833_v8  ;;  %v48_v21 = vld [vmem:[%s6083_s1 + $0xe0] sm:$0xff] }
  0x20   :  { %3786 = vmatpush1.bf16.msra.mxu1 %v4363_v28  ;;  %765 = vmatprep.mubr.f32.mxu1 %v6095_v9  ;;  %v3789_v40 = vpack.c.bf16 %v810_v13, %v798_v12  ;;  %v1289_v45 = vand.u32 4294901760, %v33_v11  ;;  %v1287_v51 = vand.u32 4294901760, %v24_v19  ;;  %v1291_v57 = vand.u32 4294901760, %v32_v26 }
  0x21   :  { %3788 = vmatprep.subr.bf16.mxu1 %v3787_v27  ;;  %3772 = vmatprep.subr.bf16.mxu0 %v4195_v14  ;;  %v3791_v50 = vpack.c.bf16 %v828_v29, %v816_v18  ;;  %v3795_v14 = vpack.c.bf16 %v4322_v34, %v4312_v24  ;;  %v3797_v33 = vpack.c.bf16 %v4337_v46, %v4334_v44  ;;  %v1293_v4 = vand.u32 4294901760, %v41_v47  ;;  %v34_v44 = vld [vmem:[%s6083_s1 + $0x70] sm:$0xff] }
  0x22   :  { %593 = vmatmul.mubr.f32.vlgmr.msra.gmra.mrb[0].mxu0 %v4236_v35  ;;  %v4440_v59 = vsub.f32 %v25_v10, %v1285_v42  ;;  %v4442_v63 = vsub.f32 %v33_v11, %v1289_v45  ;;  %v3793_v1 = vpack.c.bf16 %v834_v38, %v822_v31  ;;  %v4446_v2 = vsub.f32 %v24_v19, %v1287_v51 }
  0x23   :  { %771 = vmatmul.mubr.f32.vlgmr.msra.gmra.mrb[4].mxu1 %v4300_v5  ;;  %3774 = vmatpush1.bf16.msra.mxu0 %v4209_v20  ;;  %v4448_v3 = vsub.f32 %v32_v26, %v1291_v57  ;;  %v4451_v6 = vpack.c.bf16 %v1289_v45, %v1285_v42  ;;  %v1297_v7 = vand.u32 4294901760, %v49_v58  ;;  %v1295_v8 = vand.u32 4294901760, %v40_v15 }
  0x24   :  { %3790 = vmatpush1.bf16.msra.mxu1 %v3789_v40  ;;  %776 = vmatprep.mubr.f32.mxu1 %v6095_v9  ;;  %v1299_v10 = vand.u32 4294901760, %v48_v21  ;;  %v4454_v11 = vsub.f32 %v41_v47, %v1293_v4  ;;  %v1382_v20 = vand.u32 4294901760, %v4440_v59  ;;  %v1394_v12 = vand.u32 4294901760, %v4442_v63 }
  0x25   :  { %3792 = vmatprep.subr.bf16.mxu1 %v3791_v50  ;;  %598 = vmatprep.mubr.f32.mxu0 %v6095_v9  ;;  %v1388_v13 = vand.u32 4294901760, %v4446_v2  ;;  %v4461_v18 = vpack.c.bf16 %v1291_v57, %v1287_v51  ;;  %v3799_v19 = vpack.c.bf16 %v4356_v17, %v4349_v53  ;;  %v4465_v26 = vsub.f32 %v49_v58, %v1297_v7  ;;  %v43_v53 = vld [vmem:[%s6083_s1 + $0xb8] sm:$0xff] }
  0x26   :  { %600 = vmatmul.mubr.f32.gmra.mrb[2].mxu0 %v4263_v48  ;;  %3776 = vmatprep.subr.bf16.mxu0 %v4213_v22  ;;  %v1400_v27 = vand.u32 4294901760, %v4448_v3  ;;  %v4470_v29 = vsub.f32 %v40_v15, %v1295_v8  ;;  %v4472_v31 = vsub.f32 %v48_v21, %v1299_v10  ;;  %v1383_v22 = vsub.f32 %v4440_v59, %v1382_v20  ;;  %v51_v17 = vld [vmem:[%s6083_s1 + $0xf8] sm:$0xff] }
  0x27   :  { %782 = vmatmul.mubr.f32.gmra.mrb[6].mxu1 %v4318_v30  ;;  %3778 = vmatpush1.bf16.msra.mxu0 %v4239_v37  ;;  %v1406_v38 = vand.u32 4294901760, %v4454_v11  ;;  %v1395_v40 = vsub.f32 %v4442_v63, %v1394_v12  ;;  %v1389_v37 = vsub.f32 %v4446_v2, %v1388_v13  ;;  %v1418_v45 = vand.u32 4294901760, %v4465_v26 }
  0x28   :  { %3794 = vmatpush1.bf16.msra.mxu1 %v3793_v1  ;;  %892 = vmatprep.mubr.f32.mxu1 %v6095_v9  ;;  %v1401_v42 = vsub.f32 %v4448_v3, %v1400_v27  ;;  %v4490_v47 = vpack.c.bf16 %v1297_v7, %v1293_v4  ;;  %v4492_v50 = vpack.c.bf16 %v1299_v10, %v1295_v8  ;;  %v1412_v51 = vand.u32 4294901760, %v4470_v29 }
  0x29   :  { %3796 = vmatprep.subr.bf16.mxu1 %v3795_v14  ;;  %678 = vmatprep.mubr.f32.mxu0 %v6095_v9  ;;  %v6087_v57 = vand.u32 4294901760, %v4472_v31  ;;  %v1384_v58 = vand.u32 4294901760, %v1383_v22  ;;  %v1396_v15 = vand.u32 4294901760, %v1395_v40  ;;  %v1407_v21 = vsub.f32 %v4454_v11, %v1406_v38 }
  0x2a   :  { %680 = vmatmul.mubr.f32.vlgmr.msra.gmra.mrb[0].mxu0 %v4236_v35  ;;  %3828 = vmatprep.subr.bf16.mxu0 %v4451_v6  ;;  %v1419_v14 = vsub.f32 %v4465_v26, %v1418_v45  ;;  %v1390_v1 = vand.u32 4294901760, %v1389_v37  ;;  %v1402_v4 = vand.u32 4294901760, %v1401_v42  ;;  %v1413_v7 = vsub.f32 %v4470_v29, %v1412_v51 }
  0x2b   :  { %894 = vmatmul.mubr.f32.vlgmr.msra.gmra.mrb[4].mxu1 %v4236_v35  ;;  %3830 = vmatpush1.bf16.msra.mxu0 %v4461_v18  ;;  %v1425_v8 = vsub.f32 %v4472_v31, %v6087_v57  ;;  %v3801_v10 = vpack.c.bf16 %v4367_v36, %v4365_v23  ;;  %v3835_v22 = vpack.c.bf16 %v1396_v15, %v1384_v58  ;;  %v1408_v40 = vand.u32 4294901760, %v1407_v21  ;;  %v50_v23 = vld [vmem:[%s6083_s1 + $0xf0] sm:$0xff] }
  0x2c   :  { %3798 = vmatpush1.bf16.msra.mxu1 %v3797_v33  ;;  %899 = vmatprep.mubr.f32.mxu1 %v6095_v9  ;;  %v1420_v37 = vand.u32 4294901760, %v1419_v14  ;;  %v3837_v33 = vpack.c.bf16 %v1402_v4, %v1390_v1  ;;  %v1414_v42 = vand.u32 4294901760, %v1413_v7  ;;  %v3811_v15 = vpack.c.bf16 %v802_v39, %v790_v25  ;;  %v35_v14 = vld [vmem:[%s6083_s1 + $0x78] sm:$0xff]  ;;  %v26_v4 = vld [vmem:[%s6083_s1 + $0x30] sm:$0xff] }
  0x2d   :  { %3800 = vmatprep.subr.bf16.mxu1 %v3799_v19  ;;  %685 = vmatprep.mubr.f32.mxu0 %v6095_v9  ;;  %v1426_v57 = vand.u32 4294901760, %v1425_v8  ;;  %v3843_v21 = vpack.c.bf16 %v4442_v63, %v4440_v59  ;;  %v3845_v24 = vpack.c.bf16 %v4448_v3, %v4446_v2  ;;  %v3813_v34 = vpack.c.bf16 %v808_v55, %v796_v52 }
  0x2e   :  { %687 = vmatmul.mubr.f32.gmra.mrb[2].mxu0 %v4263_v48  ;;  %3832 = vmatprep.subr.bf16.mxu0 %v4490_v47  ;;  %v3839_v19 = vpack.c.bf16 %v1420_v37, %v1408_v40  ;;  %v3815_v25 = vpack.c.bf16 %v826_v60, %v814_v56  ;;  %v1881_v1 = vand.u32 4294901760, %v35_v14  ;;  %v3847_v46 = vpack.c.bf16 %v4465_v26, %v4454_v11  ;;  %v42_v40 = vld [vmem:[%s6083_s1 + $0xb0] sm:$0xff] }
  0x2f   :  { %901 = vmatmul.mubr.f32.gmra.mrb[6].mxu1 %v4263_v48  ;;  %3834 = vmatpush1.bf16.msra.mxu0 %v4492_v50  ;;  %v3841_v58 = vpack.c.bf16 %v1426_v57, %v1414_v42  ;;  %v27_v57 = vld [vmem:[%s6083_s1 + $0x38] sm:$0xff]  ;;  %v3849_v52 = vpack.c.bf16 %v4472_v31, %v4470_v29  ;;  %v3817_v55 = vpack.c.bf16 %v832_v62, %v820_v61  ;;  %v1879_v56 = vand.u32 4294901760, %v26_v4 }
  0x30   :  { %3802 = vmatpush1.bf16.msra.mxu1 %v3801_v10  ;;  %987 = vmatprep.mubr.f32.mxu1 %v6095_v9  ;;  %v1877_v39 = vand.u32 4294901760, %v27_v57  ;;  %v1883_v60 = vand.u32 4294901760, %v34_v44  ;;  %v4582_v8 = vsub.f32 %v35_v14, %v1881_v1  ;;  %v1885_v10 = vand.u32 4294901760, %v43_v53 }
  0x31   :  { %3804 = vmatprep.subr.bf16.mxu1 %v4320_v32  ;;  %1357 = vmatprep.mubr.f32.mxu0 %v6095_v9  ;;  %v4593_v36 = vsub.f32 %v26_v4, %v1879_v56  ;;  %v1887_v62 = vand.u32 4294901760, %v42_v40  ;;  %v1891_v37 = vand.u32 4294901760, %v50_v23 }
  0x32   :  { %1363 = vmatmul.mubr.f32.vlgmr.msra.gmra.mrb[4].mxu0 %v4300_v5  ;;  %3836 = vmatprep.subr.bf16.mxu0 %v3835_v22  ;;  %v4580_v7 = vsub.f32 %v27_v57, %v1877_v39  ;;  %v1889_v22 = vand.u32 4294901760, %v51_v17  ;;  %v4595_v61 = vsub.f32 %v34_v44, %v1883_v60 }
  0x33   :  { %990 = vmatmul.mubr.f32.vlgmr.msra.gmra.mrb[4].mxu1 %v4248_v41  ;;  %3838 = vmatpush1.bf16.msra.mxu0 %v3837_v33  ;;  %v4599_v33 = vsub.f32 %v43_v53, %v1885_v10  ;;  %v1980_v57 = vand.u32 4294901760, %v4593_v36  ;;  %v4669_v44 = vpack.c.bf16 %v1891_v37, %v1887_v62 }
  0x34   :  { %3806 = vmatpush1.bf16.msra.mxu1 %v4332_v43  ;;  %995 = vmatprep.mubr.f32.mxu1 %v6095_v9  ;;  %v4601_v42 = vsub.f32 %v51_v17, %v1889_v22  ;;  %v1992_v14 = vand.u32 4294901760, %v4595_v61  ;;  %v4643_v4 = vpack.c.bf16 %v1889_v22, %v1885_v10  ;;  %v3891_v10 = vpack.c.bf16 %v4582_v8, %v4580_v7 }
  0x35   :  { %3808 = vmatprep.subr.bf16.mxu1 %v4354_v16  ;;  %1368 = vmatprep.mubr.f32.mxu0 %v6095_v9  ;;  %v1981_v59 = vsub.f32 %v4593_v36, %v1980_v57 }
  0x36   :  { %1374 = vmatmul.mubr.f32.gmra.mrb[6].mxu0 %v4318_v30  ;;  %3840 = vmatprep.subr.bf16.mxu0 %v3839_v19  ;;  %v1974_v19 = vand.u32 4294901760, %v4580_v7  ;;  %v1993_v63 = vsub.f32 %v4595_v61, %v1992_v14 }
  0x37   :  { %998 = vmatmul.mubr.f32.gmra.mrb[6].mxu1 %v4270_v54  ;;  %3842 = vmatpush1.bf16.msra.mxu0 %v3841_v58  ;;  %v1986_v58 = vand.u32 4294901760, %v4582_v8  ;;  %v1982_v17 = vand.u32 4294901760, %v1981_v59 }
  0x38   :  { %3810 = vmatpush1.bf16.msra.mxu1 %v4363_v28  ;;  %1076 = vmatprep.mubr.f32.mxu1 %v6095_v9 }
  0x39   :  { %3812 = vmatprep.subr.bf16.mxu1 %v3811_v15  ;;  %1484 = vmatprep.mubr.f32.mxu0 %v6095_v9  ;;  %v4609_v15 = vpack.c.bf16 %v1881_v1, %v1877_v39  ;;  %v4637_v39 = vpack.c.bf16 %v1883_v60, %v1879_v56  ;;  %v3861_v1 = vpack.c.bf16 %v1400_v27, %v1388_v13 }
  0x3a   :  { %1486 = vmatmul.mubr.f32.vlgmr.msra.gmra.mrb[4].mxu0 %v4236_v35  ;;  %3844 = vmatprep.subr.bf16.mxu0 %v3843_v21  ;;  %v4615_v21 = vsub.f32 %v50_v23, %v1891_v37  ;;  %v3863_v27 = vpack.c.bf16 %v1418_v45, %v1406_v38  ;;  %v52_v23 = vld [vmem:[%s6084_s2] sm:$0xff] }
  0x3b   :  { %1080 = vmatmul.mubr.f32.vlgmr.msra.gmra.mrb[4].mxu1 %v4266_v49  ;;  %3846 = vmatpush1.bf16.msra.mxu0 %v3845_v24  ;;  %v1975_v24 = vsub.f32 %v4580_v7, %v1974_v19 }
  0x3c   :  { %3814 = vmatpush1.bf16.msra.mxu1 %v3813_v34  ;;  %1085 = vmatprep.mubr.f32.mxu1 %v6095_v9  ;;  %v1998_v34 = vand.u32 4294901760, %v4599_v33  ;;  %v2016_v2 = vand.u32 4294901760, %v4615_v21 }
  0x3d   :  { %3816 = vmatprep.subr.bf16.mxu1 %v3815_v25  ;;  %1491 = vmatprep.mubr.f32.mxu0 %v6095_v9  ;;  %v2010_v25 = vand.u32 4294901760, %v4601_v42  ;;  %v1976_v3 = vand.u32 4294901760, %v1975_v24 }
  0x3e   :  { %1493 = vmatmul.mubr.f32.gmra.mrb[6].mxu0 %v4263_v48  ;;  %3848 = vmatprep.subr.bf16.mxu0 %v3847_v46  ;;  %v6114_v46 = vand.u32 4294901760, %v4472_v31  ;;  %v2017_v26 = vsub.f32 %v4615_v21, %v2016_v2 }
  0x3f   :  { %1089 = vmatmul.mubr.f32.gmra.mrb[6].mxu1 %v4288_v0  ;;  %3850 = vmatpush1.bf16.msra.mxu0 %v3849_v52  ;;  %v2011_v13 = vsub.f32 %v4601_v42, %v2010_v25  ;;  %v1994_v52 = vand.u32 4294901760, %v1993_v63 }
  0x40   :  { %3818 = vmatpush1.bf16.msra.mxu1 %v3817_v55  ;;  %1183 = vmatprep.mubr.f32.mxu1 %v6095_v9  ;;  %v3865_v53 = vpack.c.bf16 %v6114_v46, %v1412_v51  ;;  %v2018_v55 = vand.u32 4294901760, %v2017_v26 }
  0x41   :  { %3820 = vmatprep.subr.bf16.mxu1 %v4320_v32  ;;  %1579 = vmatprep.mubr.f32.mxu0 %v6095_v9  ;;  %v4613_v32 = vsub.f32 %v42_v40, %v1887_v62  ;;  %v2012_v38 = vand.u32 4294901760, %v2011_v13  ;;  %v3885_v45 = vpack.c.bf16 %v1994_v52, %v1982_v17 }
  0x42   :  { %1582 = vmatmul.mubr.f32.vlgmr.msra.gmra.mrb[4].mxu0 %v4248_v41  ;;  %3852 = vmatprep.subr.bf16.mxu0 %v4451_v6 }
  0x43   :  { %1185 = vmatmul.mubr.f32.vlgmr.msra.gmra.mrb[4].mxu1 %v4236_v35  ;;  %3854 = vmatpush1.bf16.msra.mxu0 %v4461_v18 }
  0x44   :  { %3822 = vmatpush1.bf16.msra.mxu1 %v4332_v43  ;;  %1190 = vmatprep.mubr.f32.mxu1 %v6095_v9  ;;  %v1987_v43 = vsub.f32 %v4582_v8, %v1986_v58 }
  0x45   :  { %3824 = vmatprep.subr.bf16.mxu1 %v4354_v16  ;;  %1587 = vmatprep.mubr.f32.mxu0 %v6095_v9  ;;  %v3859_v16 = vpack.c.bf16 %v1394_v12, %v1382_v20  ;;  %v2004_v20 = vand.u32 4294901760, %v4613_v32  ;;  %v1999_v12 = vsub.f32 %v4599_v33, %v1998_v34 }
  0x46   :  { %1590 = vmatmul.mubr.f32.gmra.mrb[6].mxu0 %v4270_v54  ;;  %3856 = vmatprep.subr.bf16.mxu0 %v4490_v47 }
  0x47   :  { %1192 = vmatmul.mubr.f32.gmra.mrb[6].mxu1 %v4263_v48  ;;  %3858 = vmatpush1.bf16.msra.mxu0 %v4492_v50  ;;  %v2005_v11 = vsub.f32 %v4613_v32, %v2004_v20  ;;  %v2000_v31 = vand.u32 4294901760, %v1999_v12 }
  0x48   :  { %3826 = vmatpush1.bf16.msra.mxu1 %v4363_v28  ;;  %1270 = vmatprep.mubr.f32.mxu1 %v6095_v9  ;;  %v1988_v28 = vand.u32 4294901760, %v1987_v43 }
  0x49   :  { %3876 = vmatprep.subr.bf16.mxu1 %v4609_v15  ;;  %1668 = vmatprep.mubr.f32.mxu0 %v6095_v9  ;;  %v2006_v51 = vand.u32 4294901760, %v2005_v11  ;;  %v3887_v56 = vpack.c.bf16 %v2012_v38, %v2000_v31 }
  0x4a   :  { %1672 = vmatmul.mubr.f32.vlgmr.msra.gmra.mrb[4].mxu0 %v4266_v49  ;;  %3860 = vmatprep.subr.bf16.mxu0 %v3859_v16  ;;  %v3883_v29 = vpack.c.bf16 %v1988_v28, %v1976_v3 }
  0x4b   :  { %1272 = vmatmul.mubr.f32.vlgmr.msra.gmra.mrb[4].mxu1 %v4236_v35  ;;  %3862 = vmatpush1.bf16.msra.mxu0 %v3861_v1  ;;  %v3889_v60 = vpack.c.bf16 %v2018_v55, %v2006_v51 }
  0x4c   :  { %3878 = vmatpush1.bf16.msra.mxu1 %v4637_v39  ;;  %1277 = vmatprep.mubr.f32.mxu1 %v6095_v9 }
  0x4d   :  { %3880 = vmatprep.subr.bf16.mxu1 %v4643_v4  ;;  %1677 = vmatprep.mubr.f32.mxu0 %v6095_v9 }
  0x4e   :  { %1681 = vmatmul.mubr.f32.gmra.mrb[6].mxu0 %v4288_v0  ;;  %3864 = vmatprep.subr.bf16.mxu0 %v3863_v27 }
  0x4f   :  { %1279 = vmatmul.mubr.f32.gmra.mrb[6].mxu1 %v4263_v48  ;;  %3866 = vmatpush1.bf16.msra.mxu0 %v3865_v53 }
  0x50   :  { %3882 = vmatpush1.bf16.msra.mxu1 %v4669_v44  ;;  %1949 = vmatprep.mubr.f32.mxu1 %v6095_v9 }
  0x51   :  { %3884 = vmatprep.subr.bf16.mxu1 %v3883_v29  ;;  %1775 = vmatprep.mubr.f32.mxu0 %v6095_v9 }
  0x52   :  { %1777 = vmatmul.mubr.f32.vlgmr.msra.gmra.mrb[4].mxu0 %v4236_v35  ;;  %3868 = vmatprep.subr.bf16.mxu0 %v4451_v6  ;;  %v3895_v6 = vpack.c.bf16 %v4601_v42, %v4599_v33 }
  0x53   :  { %1955 = vmatmul.mubr.f32.vlgmr.msra.gmra.mrb[8].mxu1 %v4300_v5  ;;  %3870 = vmatpush1.bf16.msra.mxu0 %v4461_v18  ;;  %v3893_v5 = vpack.c.bf16 %v4595_v61, %v4593_v36  ;;  %v3907_v18 = vpack.c.bf16 %v1986_v58, %v1974_v19 }
  0x54   :  { %3886 = vmatpush1.bf16.msra.mxu1 %v3885_v45  ;;  %1960 = vmatprep.mubr.f32.mxu1 %v6095_v9 }
  0x55   :  { %3888 = vmatprep.subr.bf16.mxu1 %v3887_v56  ;;  %1782 = vmatprep.mubr.f32.mxu0 %v6095_v9 }
  0x56   :  { %1784 = vmatmul.mubr.f32.gmra.mrb[6].mxu0 %v4263_v48  ;;  %3872 = vmatprep.subr.bf16.mxu0 %v4490_v47  ;;  %v3911_v47 = vpack.c.bf16 %v2010_v25, %v1998_v34 }
  0x57   :  { %1966 = vmatmul.mubr.f32.gmra.mrb[10].mxu1 %v4318_v30  ;;  %3874 = vmatpush1.bf16.msra.mxu0 %v4492_v50  ;;  %v3897_v30 = vpack.c.bf16 %v4615_v21, %v4613_v32 }
  0x58   :  { %3890 = vmatpush1.bf16.msra.mxu1 %v3889_v60  ;;  %2076 = vmatprep.mubr.f32.mxu1 %v6095_v9 }
  0x59   :  { %3892 = vmatprep.subr.bf16.mxu1 %v3891_v10  ;;  %1862 = vmatprep.mubr.f32.mxu0 %v6095_v9 }
  0x5a   :  { %1864 = vmatmul.mubr.f32.vlgmr.msra.gmra.mrb[4].mxu0 %v4236_v35 }
  0x5b   :  { %2078 = vmatmul.mubr.f32.vlgmr.msra.gmra.mrb[8].mxu1 %v4236_v35  ;;  %1869 = vmatprep.mubr.f32.mxu0 %v6095_v9 }
  0x5c   :  { %3894 = vmatpush1.bf16.msra.mxu1 %v3893_v5  ;;  %2083 = vmatprep.mubr.f32.mxu1 %v6095_v9 }
  0x5d   :  { %3896 = vmatprep.subr.bf16.mxu1 %v3895_v6 }
  0x5e   :  { %1871 = vmatmul.mubr.f32.gmra.mrb[6].mxu0 %v4263_v48 }
  0x5f   :  { %2085 = vmatmul.mubr.f32.gmra.mrb[10].mxu1 %v4263_v48 }
  0x60   :  { %3898 = vmatpush1.bf16.msra.mxu1 %v3897_v30  ;;  %2171 = vmatprep.mubr.f32.mxu1 %v6095_v9 }
  0x61   :  { %3900 = vmatprep.subr.bf16.mxu1 %v4609_v15 }
  0x63   :  { %2174 = vmatmul.mubr.f32.vlgmr.msra.gmra.mrb[8].mxu1 %v4248_v41  ;;  %v3909_v41 = vpack.c.bf16 %v1992_v14, %v1980_v57 }
  0x64   :  { %3902 = vmatpush1.bf16.msra.mxu1 %v4637_v39  ;;  %2179 = vmatprep.mubr.f32.mxu1 %v6095_v9 }
  0x65   :  { %3904 = vmatprep.subr.bf16.mxu1 %v4643_v4 }
  0x67   :  { %2182 = vmatmul.mubr.f32.gmra.mrb[10].mxu1 %v4270_v54  ;;  %v3913_v54 = vpack.c.bf16 %v2016_v2, %v2004_v20 }
  0x68   :  { %3906 = vmatpush1.bf16.msra.mxu1 %v4669_v44  ;;  %2260 = vmatprep.mubr.f32.mxu1 %v6095_v9 }
  0x69   :  { %3908 = vmatprep.subr.bf16.mxu1 %v3907_v18 }
  0x6b   :  { %2264 = vmatmul.mubr.f32.vlgmr.msra.gmra.mrb[8].mxu1 %v4266_v49  ;;  %v54_v49 = vlaneseq }
  0x6c   :  { %3910 = vmatpush1.bf16.msra.mxu1 %v3909_v41  ;;  %2269 = vmatprep.mubr.f32.mxu1 %v6095_v9 }
  0x6d   :  { %3912 = vmatprep.subr.bf16.mxu1 %v3911_v47  ;;  %v55_v7 = vshrl.u32 %v54_v49, 7 }
  0x6f   :  { %2273 = vmatmul.mubr.f32.gmra.mrb[10].mxu1 %v4288_v0  ;;  %v56_v40 = vsub.s32 0, %v55_v7  ;;  %v60_v36 = vsub.s32 1, %v55_v7  ;;  %v64_v34 = vsub.s32 2, %v55_v7  ;;  %v68_v25 = vsub.s32 3, %v55_v7 }
  0x70   :  { %3914 = vmatpush1.bf16.msra.mxu1 %v3913_v54  ;;  %2367 = vmatprep.mubr.f32.mxu1 %v6095_v9  ;;  %v72_v27 = vsub.s32 4, %v55_v7  ;;  %v80_v56 = vsub.s32 6, %v55_v7  ;;  %v84_v60 = vsub.s32 7, %v55_v7 }
  0x71   :  { %3916 = vmatprep.subr.bf16.mxu1 %v4609_v15  ;;  %v57_v61 = vrot.slane %v52_v23, %v56_v40  ;;  %v61_v62 = vrot.slane %v52_v23, %v60_v36  ;;  %v65_v16 = vrot.slane %v52_v23, %v64_v34 }
  0x72   :  { %v73_v46 = vrot.slane %v52_v23, %v72_v27  ;;  %v81_v10 = vrot.slane %v52_v23, %v80_v56  ;;  %v85_v5 = vrot.slane %v52_v23, %v84_v60 }
  0x73   :  { %2369 = vmatmul.mubr.f32.vlgmr.msra.gmra.mrb[8].mxu1 %v4236_v35 }
  0x74   :  { %3918 = vmatpush1.bf16.msra.mxu1 %v4637_v39  ;;  %2374 = vmatprep.mubr.f32.mxu1 %v6095_v9  ;;  %v69_v39 = vrot.slane %v52_v23, %v68_v25 }
  0x75   :  { %3920 = vmatprep.subr.bf16.mxu1 %v4643_v4 }
  0x77   :  { %2376 = vmatmul.mubr.f32.gmra.mrb[10].mxu1 %v4263_v48 }
  0x78   :  { %3922 = vmatpush1.bf16.msra.mxu1 %v4669_v44  ;;  %2454 = vmatprep.mubr.f32.mxu1 %v6095_v9  ;;  %v76_v44 = vsub.s32 5, %v55_v7 }
  0x7a   :  { %v77_v53 = vrot.slane %v52_v23, %v76_v44 }
  0x7b   :  { %2456 = vmatmul.mubr.f32.vlgmr.msra.gmra.mrb[8].mxu1 %v4236_v35 }
  0x7c   :  { %2461 = vmatprep.mubr.f32.mxu1 %v6095_v9 }
  0x7f   :  { %2463 = vmatmul.mubr.f32.gmra.mrb[10].mxu1 %v4263_v48 }
  0xee   :  { %v303_v0 = vpop.f32.mrb[0].mxu1 }
  0xef   :  { %v305_v50 = vpop.f32.mrb[1].mxu1  ;;  %v3955_v35 = vadd.f32 %v303_v0, %v57_v61 }
  0xf0   :  { %v3957_v37 = vadd.f32 %v305_v50, %v61_v62 }
  0xf2   :  { %v310_v8 = vpop.f32.mrb[2].mxu1 }
  0xf3   :  { %v312_v22 = vpop.f32.mrb[3].mxu1  ;;  %v3959_v58 = vadd.f32 %v310_v8, %v57_v61 }
  0xf4   :  { %v3961_v15 = vadd.f32 %v312_v22, %v61_v62  ;;  %v4809_v22 = vand.u32 127, %v54_v49 }
  0xf6   :  { %v4812_v40 = vadd.s32 128, %v4809_v22 }
  0xfd   :  { %v681_v33 = vpop.f32.mrb[0].mxu0 }
  0xfe   :  { %v4760_v42 = vadd.f32 %v3955_v35, %v681_v33  ;;  %v683_v48 = vpop.f32.mrb[1].mxu0 }
  0xff   :  { %v4762_v19 = vadd.f32 %v3957_v37, %v683_v48 }
 0x101   :  { %v688_v32 = vpop.f32.mrb[2].mxu0  ;;  %v2472_v21 = vmax.f32 %v4760_v42, %v4762_v19 }
 0x102   :  { %v4766_v57 = vadd.f32 %v3959_v58, %v688_v32  ;;  %v690_v14 = vpop.f32.mrb[3].mxu0 }
 0x103   :  { %v4768_v24 = vadd.f32 %v3961_v15, %v690_v14  ;;  %2473 = vmax.xlane.f32.xlu0 %v2472_v21 }
 0x105   :  { %v2475_v43 = vmax.f32 %v4766_v57, %v4768_v24 }
 0x107   :  { %2476 = vmax.xlane.f32.xlu1 %v2475_v43 }
 0x11e   :  { %v1273_v1 = vpop.f32.mrb[4].mxu1 }
 0x11f   :  { %v4772_v4 = vadd.f32 %v1273_v1, %v65_v16  ;;  %v1275_v59 = vpop.f32.mrb[5].mxu1 }
 0x120   :  { %v4774_v63 = vadd.f32 %v1275_v59, %v69_v39 }
 0x122   :  { %v1280_v20 = vpop.f32.mrb[6].mxu1  ;;  %v2746_v2 = vmax.f32 %v4772_v4, %v4774_v63 }
 0x123   :  { %v4778_v3 = vadd.f32 %v1280_v20, %v65_v16  ;;  %v1282_v28 = vpop.f32.mrb[7].mxu1 }
 0x124   :  { %v4780_v12 = vadd.f32 %v1282_v28, %v69_v39  ;;  %2747 = vmax.xlane.f32.xlu0 %v2746_v2 }
 0x126   :  { %v2749_v13 = vmax.f32 %v4778_v3, %v4780_v12 }
 0x128   :  { %2750 = vmax.xlane.f32.xlu0 %v2749_v13 }
 0x12d   :  { %v1865_v17 = vpop.f32.mrb[4].mxu0 }
 0x12e   :  { %v4784_v52 = vadd.f32 %v1865_v17, %v73_v46  ;;  %v1867_v11 = vpop.f32.mrb[5].mxu0 }
 0x12f   :  { %v4786_v26 = vadd.f32 %v1867_v11, %v77_v53 }
 0x131   :  { %v1872_v29 = vpop.f32.mrb[6].mxu0  ;;  %v3020_v31 = vmax.f32 %v4784_v52, %v4786_v26 }
 0x132   :  { %v4790_v38 = vadd.f32 %v1872_v29, %v73_v46  ;;  %v1874_v45 = vpop.f32.mrb[7].mxu0 }
 0x133   :  { %v4792_v51 = vadd.f32 %v1874_v45, %v77_v53  ;;  %3021 = vmax.xlane.f32.xlu1 %v3020_v31 }
 0x135   :  { %v3023_v55 = vmax.f32 %v4790_v38, %v4792_v51 }
 0x137   :  { %3024 = vmax.xlane.f32.xlu0 %v3023_v55 }
 0x14e   :  { %v2457_v6 = vpop.f32.mrb[8].mxu1 }
 0x14f   :  { %v4796_v30 = vadd.f32 %v2457_v6, %v81_v10  ;;  %v2459_v18 = vpop.f32.mrb[9].mxu1 }
 0x150   :  { %v4798_v41 = vadd.f32 %v2459_v18, %v85_v5 }
 0x152   :  { %v2464_v47 = vpop.f32.mrb[10].mxu1  ;;  %v3294_v54 = vmax.f32 %v4796_v30, %v4798_v41 }
 0x153   :  { %v4802_v0 = vadd.f32 %v2464_v47, %v81_v10  ;;  %v2466_v50 = vpop.f32.mrb[11].mxu1 }
 0x154   :  { %v4804_v8 = vadd.f32 %v2466_v50, %v85_v5  ;;  %3295 = vmax.xlane.f32.xlu1 %v3294_v54 }
 0x156   :  { %v3297_v7 = vmax.f32 %v4802_v0, %v4804_v8 }
 0x158   :  { %3298 = vmax.xlane.f32.xlu1 %v3297_v7 }
 0x190   :  { %v4814_v23 = vpop.xlane.xlu0 %2473 }
 0x191   :  { %6115 = vst [vmem:[#allocation5_spill] sm:$0xff] %v4814_v23  ;;  %vm2478_vm1 = vcmp.eq.f32.partialorder %v4760_v42, %v4814_v23  ;;  %vm2479_vm2 = vcmp.eq.f32.partialorder %v4762_v19, %v4814_v23 }
 0x192   :  { %v2482_v36 = vsel %vm2478_vm1, %v4809_v22, 256  ;;  %v2483_v61 = vsel %vm2479_vm2, %v4812_v40, 256 }
 0x193   :  { %vm2486_vm3 = vcmp.lt.s32.totalorder %v2482_v36, %v2483_v61 }
 0x194   :  { %v4822_v62 = vpop.xlane.xlu1 %2476  ;;  %v4824_v49 = vsel %vm2486_vm3, %v2482_v36, %v2483_v61 }
 0x195   :  { %6116 = vst [vmem:[#allocation6_spill] sm:$0xff] %v4822_v62  ;;  %v2489_v35 = vshra.s32 %v4824_v49, 16  ;;  %vm2480_vm4 = vcmp.eq.f32.partialorder %v4766_v57, %v4822_v62  ;;  %vm2481_vm5 = vcmp.eq.f32.partialorder %v4768_v24, %v4822_v62 }
 0x196   :  { %v2484_v37 = vsel %vm2480_vm4, %v4809_v22, 256  ;;  %v2485_v33 = vsel %vm2481_vm5, %v4812_v40, 256 }
 0x197   :  { %v4833_v48 = vcvt.s32.f32 %v2489_v35  ;;  %vm2502_vm6 = vcmp.lt.s32.totalorder %v2484_v37, %v2485_v33 }
 0x198   :  { %v4835_v58 = vsel %vm2502_vm6, %v2484_v37, %v2485_v33  ;;  %v2488_v37 = vand.u32 65535, %v4824_v49 }
 0x199   :  { %2492 = vmin.xlane.f32.xlu0 %v4833_v48  ;;  %v2505_v15 = vshra.s32 %v4835_v58, 16 }
 0x19b   :  { %v4839_v32 = vcvt.s32.f32 %v2505_v15  ;;  %v2490_v15 = vcvt.s32.f32 %v2488_v37 }
 0x19d   :  { %2508 = vmin.xlane.f32.xlu1 %v4839_v32 }
 0x1b1   :  { %v4842_v21 = vpop.xlane.xlu0 %2747 }
 0x1b2   :  { %6117 = vst [vmem:[#allocation7_spill] sm:$0xff] %v4842_v21  ;;  %vm2752_vm7 = vcmp.eq.f32.partialorder %v4772_v4, %v4842_v21  ;;  %vm2753_vm8 = vcmp.eq.f32.partialorder %v4774_v63, %v4842_v21 }
 0x1b3   :  { %v2756_v14 = vsel %vm2752_vm7, %v4809_v22, 256  ;;  %v2757_v43 = vsel %vm2753_vm8, %v4812_v40, 256 }
 0x1b4   :  { %vm2760_vm9 = vcmp.lt.s32.totalorder %v2756_v14, %v2757_v43 }
 0x1b5   :  { %v4850_v34 = vpop.xlane.xlu0 %2750  ;;  %v4852_v25 = vsel %vm2760_vm9, %v2756_v14, %v2757_v43  ;;  %v2504_v14 = vand.u32 65535, %v4835_v58 }
 0x1b6   :  { %6118 = vst [vmem:[#allocation8_spill] sm:$0xff] %v4850_v34  ;;  %v2763_v16 = vshra.s32 %v4852_v25, 16  ;;  %vm2754_vm10 = vcmp.eq.f32.partialorder %v4778_v3, %v4850_v34  ;;  %vm2755_vm11 = vcmp.eq.f32.partialorder %v4780_v12, %v4850_v34 }
 0x1b7   :  { %v2758_v39 = vsel %vm2754_vm10, %v4809_v22, 256  ;;  %v2759_v1 = vsel %vm2755_vm11, %v4812_v40, 256 }
 0x1b8   :  { %v4861_v59 = vcvt.s32.f32 %v2763_v16  ;;  %vm2776_vm12 = vcmp.lt.s32.totalorder %v2758_v39, %v2759_v1 }
 0x1b9   :  { %v4863_v20 = vsel %vm2776_vm12, %v2758_v39, %v2759_v1  ;;  %v2506_v39 = vcvt.s32.f32 %v2504_v14 }
 0x1ba   :  { %2766 = vmin.xlane.f32.xlu1 %v4861_v59  ;;  %v2779_v2 = vshra.s32 %v4863_v20, 16  ;;  %v2778_v49 = vand.u32 65535, %v4863_v20 }
 0x1bc   :  { %v4867_v28 = vcvt.s32.f32 %v2779_v2  ;;  %v2762_v2 = vand.u32 65535, %v4852_v25 }
 0x1be   :  { %2782 = vmin.xlane.f32.xlu0 %v4867_v28 }
 0x1c0   :  { %v4870_v13 = vpop.xlane.xlu1 %3021 }
 0x1c1   :  { %6119 = vst [vmem:[#allocation9_spill] sm:$0xff] %v4870_v13  ;;  %vm3026_vm13 = vcmp.eq.f32.partialorder %v4784_v52, %v4870_v13  ;;  %vm3027_vm14 = vcmp.eq.f32.partialorder %v4786_v26, %v4870_v13 }
 0x1c2   :  { %v3030_v27 = vsel %vm3026_vm13, %v4809_v22, 256  ;;  %v3031_v44 = vsel %vm3027_vm14, %v4812_v40, 256 }
 0x1c3   :  { %vm3034_vm15 = vcmp.lt.s32.totalorder %v3030_v27, %v3031_v44 }
 0x1c4   :  { %v4878_v46 = vpop.xlane.xlu0 %3024  ;;  %v3035_v53 = vsel %vm3034_vm15, %v3030_v27, %v3031_v44  ;;  %v2764_v44 = vcvt.s32.f32 %v2762_v2 }
 0x1c5   :  { %v3037_v17 = vshra.s32 %v3035_v53, 16  ;;  %vm3028_vm1 = vcmp.eq.f32.partialorder %v4790_v38, %v4878_v46  ;;  %vm3029_vm2 = vcmp.eq.f32.partialorder %v4792_v51, %v4878_v46 }
 0x1c6   :  { %v3032_v11 = vsel %vm3028_vm1, %v4809_v22, 256  ;;  %v3033_v29 = vsel %vm3029_vm2, %v4812_v40, 256 }
 0x1c7   :  { %v3039_v31 = vcvt.s32.f32 %v3037_v17  ;;  %vm3050_vm3 = vcmp.lt.s32.totalorder %v3032_v11, %v3033_v29 }
 0x1c8   :  { %v3051_v45 = vsel %vm3050_vm3, %v3032_v11, %v3033_v29  ;;  %v3036_v29 = vand.u32 65535, %v3035_v53 }
 0x1c9   :  { %3040 = vmin.xlane.f32.xlu0 %v3039_v31  ;;  %v3053_v55 = vshra.s32 %v3051_v45, 16 }
 0x1cb   :  { %v3055_v56 = vcvt.s32.f32 %v3053_v55  ;;  %v3038_v55 = vcvt.s32.f32 %v3036_v29 }
 0x1cd   :  { %3056 = vmin.xlane.f32.xlu0 %v3055_v56 }
 0x1e1   :  { %v4886_v60 = vpop.xlane.xlu1 %3295 }
 0x1e2   :  { %6120 = vst [vmem:[#allocation10_spill] sm:$0xff] %v4886_v60  ;;  %vm3300_vm4 = vcmp.eq.f32.partialorder %v4796_v30, %v4886_v60  ;;  %vm3301_vm5 = vcmp.eq.f32.partialorder %v4798_v41, %v4886_v60 }
 0x1e3   :  { %v3304_v10 = vsel %vm3300_vm4, %v4809_v22, 256  ;;  %v3305_v5 = vsel %vm3301_vm5, %v4812_v40, 256 }
 0x1e4   :  { %vm3308_vm6 = vcmp.lt.s32.totalorder %v3304_v10, %v3305_v5 }
 0x1e5   :  { %v4894_v6 = vpop.xlane.xlu1 %3298  ;;  %v3309_v18 = vsel %vm3308_vm6, %v3304_v10, %v3305_v5  ;;  %v3052_v10 = vand.u32 65535, %v3051_v45 }
 0x1e6   :  { %v3311_v47 = vshra.s32 %v3309_v18, 16  ;;  %vm3302_vm7 = vcmp.eq.f32.partialorder %v4802_v0, %v4894_v6  ;;  %vm3303_vm8 = vcmp.eq.f32.partialorder %v4804_v8, %v4894_v6 }
 0x1e7   :  { %v3306_v54 = vsel %vm3302_vm7, %v4809_v22, 256  ;;  %v3307_v50 = vsel %vm3303_vm8, %v4812_v40, 256 }
 0x1e8   :  { %v3313_v7 = vcvt.s32.f32 %v3311_v47  ;;  %vm3324_vm9 = vcmp.lt.s32.totalorder %v3306_v54, %v3307_v50  ;;  %v3310_v47 = vand.u32 65535, %v3309_v18 }
 0x1e9   :  { %v3325_v36 = vsel %vm3324_vm9, %v3306_v54, %v3307_v50 }
 0x1ea   :  { %3314 = vmin.xlane.f32.xlu1 %v3313_v7  ;;  %v3327_v61 = vshra.s32 %v3325_v36, 16  ;;  %v3312_v54 = vcvt.s32.f32 %v3310_v47  ;;  %v3326_v53 = vand.u32 65535, %v3325_v36 }
 0x1ec   :  { %v3329_v35 = vcvt.s32.f32 %v3327_v61 }
 0x1ee   :  { %3330 = vmin.xlane.f32.xlu1 %v3329_v35 }
 0x226   :  { %v2493_v33 = vpop.xlane.xlu0 %2492 }
 0x227   :  { %vm2494_vm10 = vcmp.eq.f32.partialorder %v4833_v48, %v2493_v33  ;;  %v2780_v48 = vcvt.s32.f32 %v2778_v49  ;;  %v2499_v37 = vcvt.f32.s32 %v2493_v33 }
 0x228   :  { %v2495_v43 = vsel %vm2494_vm10, %v2490_v15, inf }
 0x229   :  { %2496 = vmin.xlane.f32.xlu0 %v2495_v43  ;;  %v2500_v15 = vshll.u32 %v2499_v37, 16 }
 0x22a   :  { %v2509_v16 = vpop.xlane.xlu1 %2508 }
 0x22b   :  { %vm2510_vm11 = vcmp.eq.f32.partialorder %v4839_v32, %v2509_v16  ;;  %v2515_v14 = vcvt.f32.s32 %v2509_v16 }
 0x22c   :  { %v2511_v1 = vsel %vm2510_vm11, %v2506_v39, inf }
 0x22d   :  { %2512 = vmin.xlane.f32.xlu1 %v2511_v1  ;;  %v2516_v36 = vshll.u32 %v2515_v14, 16 }
 0x247   :  { %v2767_v27 = vpop.xlane.xlu1 %2766 }
 0x248   :  { %vm2768_vm12 = vcmp.eq.f32.partialorder %v4861_v59, %v2767_v27  ;;  %v3054_v59 = vcvt.s32.f32 %v3052_v10 }
 0x249   :  { %v2769_v17 = vsel %vm2768_vm12, %v2764_v44, inf  ;;  %v2773_v44 = vcvt.f32.s32 %v2767_v27 }
 0x24a   :  { %2770 = vmin.xlane.f32.xlu1 %v2769_v17 }
 0x24b   :  { %v2783_v58 = vpop.xlane.xlu0 %2782  ;;  %v2774_v17 = vshll.u32 %v2773_v44, 16 }
 0x24c   :  { %vm2784_vm13 = vcmp.eq.f32.partialorder %v4867_v28, %v2783_v58 }
 0x24d   :  { %v2785_v11 = vsel %vm2784_vm13, %v2780_v48, inf  ;;  %v2789_v48 = vcvt.f32.s32 %v2783_v58 }
 0x24e   :  { %2786 = vmin.xlane.f32.xlu0 %v2785_v11 }
 0x256   :  { %v4910_v32 = vpop.xlane.xlu0 %3040 }
 0x257   :  { %vm3042_vm14 = vcmp.eq.f32.partialorder %v3039_v31, %v4910_v32  ;;  %v3328_v31 = vcvt.s32.f32 %v3326_v53 }
 0x258   :  { %v3043_v25 = vsel %vm3042_vm14, %v3038_v55, inf }
 0x259   :  { %3044 = vmin.xlane.f32.xlu0 %v3043_v25 }
 0x25a   :  { %v4913_v20 = vpop.xlane.xlu0 %3056 }
 0x25b   :  { %vm3058_vm15 = vcmp.eq.f32.partialorder %v3055_v56, %v4913_v20  ;;  %v3063_v53 = vcvt.f32.s32 %v4913_v20 }
 0x25c   :  { %v3059_v5 = vsel %vm3058_vm15, %v3054_v59, inf }
 0x25d   :  { %3060 = vmin.xlane.f32.xlu0 %v3059_v5  ;;  %v3047_v5 = vcvt.f32.s32 %v4910_v32 }
 0x277   :  { %v4916_v28 = vpop.xlane.xlu1 %3314 }
 0x278   :  { %vm3316_vm1 = vcmp.eq.f32.partialorder %v3313_v7, %v4916_v28  ;;  %v3321_v14 = vcvt.f32.s32 %v4916_v28 }
 0x279   :  { %v3317_v50 = vsel %vm3316_vm1, %v3312_v54, inf  ;;  %v3048_v54 = vshll.u32 %v3047_v5, 16 }
 0x27a   :  { %3318 = vmin.xlane.f32.xlu1 %v3317_v50 }
 0x27b   :  { %v4919_v45 = vpop.xlane.xlu1 %3330 }
 0x27c   :  { %vm3332_vm2 = vcmp.eq.f32.partialorder %v3329_v35, %v4919_v45 }
 0x27d   :  { %v3333_v61 = vsel %vm3332_vm2, %v3328_v31, inf }
 0x27e   :  { %3334 = vmin.xlane.f32.xlu1 %v3333_v61  ;;  %v3064_v61 = vshll.u32 %v3063_v53, 16 }
 0x2b6   :  { %v2497_v56 = vpop.xlane.xlu0 %2496 }
 0x2b7   :  { %v2498_v18 = vcvt.f32.s32 %v2497_v56 }
 0x2b9   :  { %v4922_v43 = vadd.s32 %v2500_v15, %v2498_v18 }
 0x2ba   :  { %v2513_v39 = vpop.xlane.xlu1 %2512 }
 0x2bb   :  { %vm2518_vm3 = vcmp.eq.s32.totalorder %v4809_v22, %v4922_v43  ;;  %vm2519_vm4 = vcmp.eq.s32.totalorder %v4812_v40, %v4922_v43  ;;  %v2514_v7 = vcvt.f32.s32 %v2513_v39  ;;  %v3322_v39 = vshll.u32 %v3321_v14, 16 }
 0x2bc   :  { %v4932_v35 = vsel %vm2518_vm3, -inf, %v4760_v42  ;;  %v4938_v33 = vsel %vm2519_vm4, -inf, %v4762_v19 }
 0x2bd   :  { %v4940_v16 = vadd.s32 %v2516_v36, %v2514_v7  ;;  %v2530_v1 = vmax.f32 %v4932_v35, %v4938_v33  ;;  %v3337_v36 = vcvt.f32.s32 %v4919_v45 }
 0x2bf   :  { %vm2520_vm5 = vcmp.eq.s32.totalorder %v4809_v22, %v4940_v16  ;;  %vm2521_vm6 = vcmp.eq.s32.totalorder %v4812_v40, %v4940_v16  ;;  %2531 = vmax.xlane.f32.xlu0 %v2530_v1 }
 0x2c0   :  { %v4952_v42 = vsel %vm2520_vm5, -inf, %v4766_v57  ;;  %v4958_v19 = vsel %vm2521_vm6, -inf, %v4768_v24  ;;  %v2790_v57 = vshll.u32 %v2789_v48, 16 }
 0x2c1   :  { %v2533_v2 = vmax.f32 %v4952_v42, %v4958_v19 }
 0x2c3   :  { %2534 = vmax.xlane.f32.xlu1 %v2533_v2  ;;  %v3338_v2 = vshll.u32 %v3337_v36, 16 }
 0x2d7   :  { %v2771_v49 = vpop.xlane.xlu1 %2770 }
 0x2d8   :  { %v2772_v11 = vcvt.f32.s32 %v2771_v49 }
 0x2da   :  { %v4962_v29 = vadd.s32 %v2774_v17, %v2772_v11 }
 0x2db   :  { %v2787_v55 = vpop.xlane.xlu0 %2786 }
 0x2dc   :  { %vm2792_vm7 = vcmp.eq.s32.totalorder %v4809_v22, %v4962_v29  ;;  %vm2793_vm8 = vcmp.eq.s32.totalorder %v4812_v40, %v4962_v29  ;;  %v2788_v24 = vcvt.f32.s32 %v2787_v55 }
 0x2dd   :  { %v4972_v27 = vsel %vm2792_vm7, -inf, %v4772_v4  ;;  %v4978_v58 = vsel %vm2793_vm8, -inf, %v4774_v63 }
 0x2de   :  { %v4980_v10 = vadd.s32 %v2790_v57, %v2788_v24  ;;  %v2804_v25 = vmax.f32 %v4972_v27, %v4978_v58 }
 0x2e0   :  { %vm2794_vm9 = vcmp.eq.s32.totalorder %v4809_v22, %v4980_v10  ;;  %vm2795_vm10 = vcmp.eq.s32.totalorder %v4812_v40, %v4980_v10  ;;  %2805 = vmax.xlane.f32.xlu1 %v2804_v25 }
 0x2e1   :  { %v4992_v4 = vsel %vm2794_vm9, -inf, %v4778_v3  ;;  %v4998_v63 = vsel %vm2795_vm10, -inf, %v4780_v12 }
 0x2e2   :  { %v2807_v59 = vmax.f32 %v4992_v4, %v4998_v63 }
 0x2e4   :  { %2808 = vmax.xlane.f32.xlu0 %v2807_v59 }
 0x2e6   :  { %v3045_v47 = vpop.xlane.xlu0 %3044 }
 0x2e7   :  { %v3046_v50 = vcvt.f32.s32 %v3045_v47 }
 0x2e9   :  { %v5004_v31 = vadd.s32 %v3048_v54, %v3046_v50 }
 0x2ea   :  { %v3061_v3 = vpop.xlane.xlu0 %3060 }
 0x2eb   :  { %vm3066_vm11 = vcmp.eq.s32.totalorder %v4809_v22, %v5004_v31  ;;  %vm3067_vm12 = vcmp.eq.s32.totalorder %v4812_v40, %v5004_v31  ;;  %v3062_v12 = vcvt.f32.s32 %v3061_v3 }
 0x2ec   :  { %v5014_v32 = vsel %vm3066_vm11, -inf, %v4784_v52  ;;  %v5020_v20 = vsel %vm3067_vm12, -inf, %v4786_v26 }
 0x2ed   :  { %v5022_v37 = vadd.s32 %v3064_v61, %v3062_v12  ;;  %v3078_v56 = vmax.f32 %v5014_v32, %v5020_v20 }
 0x2ef   :  { %vm6094_vm13 = vcmp.eq.s32.totalorder %v4809_v22, %v5022_v37  ;;  %vm6093_vm14 = vcmp.eq.s32.totalorder %v4812_v40, %v5022_v37  ;;  %3079 = vmax.xlane.f32.xlu0 %v3078_v56 }
 0x2f0   :  { %v5034_v52 = vsel %vm6094_vm13, -inf, %v4790_v38  ;;  %v5040_v26 = vsel %vm6093_vm14, -inf, %v4792_v51 }
 0x2f1   :  { %v3081_v15 = vmax.f32 %v5034_v52, %v5040_v26 }
 0x2f3   :  { %3082 = vmax.xlane.f32.xlu0 %v3081_v15 }
 0x307   :  { %v3319_v18 = vpop.xlane.xlu1 %3318 }
 0x308   :  { %v3320_v7 = vcvt.f32.s32 %v3319_v18 }
 0x30a   :  { %v5046_v1 = vadd.s32 %v3322_v39, %v3320_v7 }
 0x30b   :  { %v3335_v38 = vpop.xlane.xlu1 %3334 }
 0x30c   :  { %vm6090_vm15 = vcmp.eq.s32.totalorder %v4809_v22, %v5046_v1  ;;  %vm6089_vm1 = vcmp.eq.s32.totalorder %v4812_v40, %v5046_v1  ;;  %v3336_v51 = vcvt.f32.s32 %v3335_v38 }
 0x30d   :  { %v5056_v28 = vsel %vm6090_vm15, -inf, %v4796_v30  ;;  %v5062_v45 = vsel %vm6089_vm1, -inf, %v4798_v41 }
 0x30e   :  { %6121 = vst [vmem:[#allocation11_spill] sm:$0xff] %v5056_v28  ;;  %6122 = vst [vmem:[#allocation12_spill] sm:$0xff] %v5062_v45  ;;  %v5064_v44 = vadd.s32 %v3338_v2, %v3336_v51  ;;  %v3352_v49 = vmax.f32 %v5056_v28, %v5062_v45 }
 0x310   :  { %6123 = vst [vmem:[#allocation13_spill] sm:$0xff] %v5064_v44  ;;  %vm6091_vm2 = vcmp.eq.s32.totalorder %v4809_v22, %v5064_v44  ;;  %vm6092_vm0 = vcmp.eq.s32.totalorder %v4812_v40, %v5064_v44  ;;  %3353 = vmax.xlane.f32.xlu1 %v3352_v49 }
 0x311   :  { %v5076_v30 = vsel %vm6091_vm2, -inf, %v4802_v0  ;;  %v5082_v41 = vsel %vm6092_vm0, -inf, %v4804_v8 }
 0x312   :  { %6124 = vst [vmem:[#allocation14_spill] sm:$0xff] %v5076_v30  ;;  %6125 = vst [vmem:[#allocation15_spill] sm:$0xff] %v5082_v41  ;;  %v3355_v17 = vmax.f32 %v5076_v30, %v5082_v41 }
 0x314   :  { %3356 = vmax.xlane.f32.xlu1 %v3355_v17 }
 0x34c   :  { %v5086_v48 = vpop.xlane.xlu0 %2531 }
 0x34d   :  { %vm2536_vm1 = vcmp.eq.f32.partialorder %v4932_v35, %v5086_v48  ;;  %vm2537_vm15 = vcmp.eq.f32.partialorder %v4938_v33, %v5086_v48 }
 0x34e   :  { %v2540_v0 = vsel %vm2536_vm1, %v4809_v22, 256  ;;  %v2541_v11 = vsel %vm2537_vm15, %v4812_v40, 256 }
 0x34f   :  { %vm2544_vm2 = vcmp.lt.s32.totalorder %v2540_v0, %v2541_v11 }
 0x350   :  { %v5094_v55 = vpop.xlane.xlu1 %2534  ;;  %v5096_v8 = vsel %vm2544_vm2, %v2540_v0, %v2541_v11 }
 0x351   :  { %vm2538_vm0 = vcmp.eq.f32.partialorder %v4952_v42, %v5094_v55  ;;  %vm2539_vm14 = vcmp.eq.f32.partialorder %v4958_v19, %v5094_v55  ;;  %v2547_v25 = vshra.s32 %v5096_v8, 16 }
 0x352   :  { %v2542_v57 = vsel %vm2538_vm0, %v4809_v22, 256  ;;  %v2543_v24 = vsel %vm2539_vm14, %v4812_v40, 256 }
 0x353   :  { %vm2560_vm1 = vcmp.lt.s32.totalorder %v2542_v57, %v2543_v24  ;;  %v5105_v59 = vcvt.s32.f32 %v2547_v25 }
 0x354   :  { %v5107_v5 = vsel %vm2560_vm1, %v2542_v57, %v2543_v24 }
 0x355   :  { %v2563_v47 = vshra.s32 %v5107_v5, 16  ;;  %2550 = vmin.xlane.f32.xlu0 %v5105_v59 }
 0x357   :  { %v5111_v54 = vcvt.s32.f32 %v2563_v47 }
 0x359   :  { %2566 = vmin.xlane.f32.xlu1 %v5111_v54 }
 0x36d   :  { %v5114_v53 = vpop.xlane.xlu1 %2805 }
 0x36e   :  { %vm2810_vm0 = vcmp.eq.f32.partialorder %v4972_v27, %v5114_v53  ;;  %vm2811_vm14 = vcmp.eq.f32.partialorder %v4978_v58, %v5114_v53 }
 0x36f   :  { %v2814_v50 = vsel %vm2810_vm0, %v4809_v22, 256  ;;  %v2815_v3 = vsel %vm2811_vm14, %v4812_v40, 256 }
 0x370   :  { %vm2818_vm15 = vcmp.lt.s32.totalorder %v2814_v50, %v2815_v3 }
 0x371   :  { %v5122_v61 = vpop.xlane.xlu0 %2808  ;;  %v5124_v12 = vsel %vm2818_vm15, %v2814_v50, %v2815_v3 }
 0x372   :  { %vm2812_vm2 = vcmp.eq.f32.partialorder %v4992_v4, %v5122_v61  ;;  %vm2813_vm1 = vcmp.eq.f32.partialorder %v4998_v63, %v5122_v61  ;;  %v2821_v14 = vshra.s32 %v5124_v12, 16 }
 0x373   :  { %v2816_v56 = vsel %vm2812_vm2, %v4809_v22, 256  ;;  %v2817_v15 = vsel %vm2813_vm1, %v4812_v40, 256 }
 0x374   :  { %vm2834_vm0 = vcmp.lt.s32.totalorder %v2816_v56, %v2817_v15  ;;  %v5133_v18 = vcvt.s32.f32 %v2821_v14 }
 0x375   :  { %v5135_v39 = vsel %vm2834_vm0, %v2816_v56, %v2817_v15 }
 0x376   :  { %v2837_v36 = vshra.s32 %v5135_v39, 16  ;;  %2824 = vmin.xlane.f32.xlu1 %v5133_v18 }
 0x378   :  { %v5139_v7 = vcvt.s32.f32 %v2837_v36 }
 0x37a   :  { %2840 = vmin.xlane.f32.xlu0 %v5139_v7 }
 0x37c   :  { %v5142_v38 = vpop.xlane.xlu0 %3079 }
 0x37d   :  { %vm3084_vm14 = vcmp.eq.f32.partialorder %v5014_v32, %v5142_v38  ;;  %vm3085_vm15 = vcmp.eq.f32.partialorder %v5020_v20, %v5142_v38 }
 0x37e   :  { %v3088_v2 = vsel %vm3084_vm14, %v4809_v22, 256  ;;  %v3089_v51 = vsel %vm3085_vm15, %v4812_v40, 256 }
 0x37f   :  { %vm3092_vm2 = vcmp.lt.s32.totalorder %v3088_v2, %v3089_v51 }
 0x380   :  { %v5150_v49 = vpop.xlane.xlu0 %3082  ;;  %v3093_v17 = vsel %vm3092_vm2, %v3088_v2, %v3089_v51 }
 0x381   :  { %vm3086_vm1 = vcmp.eq.f32.partialorder %v5034_v52, %v5150_v49  ;;  %vm3087_vm0 = vcmp.eq.f32.partialorder %v5040_v26, %v5150_v49  ;;  %v3095_v57 = vshra.s32 %v3093_v17, 16 }
 0x382   :  { %v3090_v0 = vsel %vm3086_vm1, %v4809_v22, 256  ;;  %v3091_v11 = vsel %vm3087_vm0, %v4812_v40, 256 }
 0x383   :  { %vm3108_vm13 = vcmp.lt.s32.totalorder %v3090_v0, %v3091_v11  ;;  %v3097_v24 = vcvt.s32.f32 %v3095_v57 }
 0x384   :  { %v3109_v25 = vsel %vm3108_vm13, %v3090_v0, %v3091_v11 }
 0x385   :  { %v3111_v47 = vshra.s32 %v3109_v25, 16  ;;  %3098 = vmin.xlane.f32.xlu0 %v3097_v24 }
 0x387   :  { %v3113_v50 = vcvt.s32.f32 %v3111_v47 }
 0x389   :  { %3114 = vmin.xlane.f32.xlu0 %v3113_v50 }
 0x39d   :  { %v5158_v3 = vpop.xlane.xlu1 %3353 }
 0x39e   :  { %vm3358_vm14 = vcmp.eq.f32.partialorder %v5056_v28, %v5158_v3  ;;  %vm3359_vm15 = vcmp.eq.f32.partialorder %v5062_v45, %v5158_v3 }
 0x39f   :  { %v3362_v56 = vsel %vm3358_vm14, %v4809_v22, 256  ;;  %v3363_v15 = vsel %vm3359_vm15, %v4812_v40, 256 }
 0x3a0   :  { %vm3366_vm2 = vcmp.lt.s32.totalorder %v3362_v56, %v3363_v15 }
 0x3a1   :  { %v5166_v14 = vpop.xlane.xlu1 %3356  ;;  %v3367_v36 = vsel %vm3366_vm2, %v3362_v56, %v3363_v15  ;;  %v2546_v56 = vand.u32 65535, %v5096_v8  ;;  %v2562_v15 = vand.u32 65535, %v5107_v5 }
 0x3a2   :  { %vm3360_vm13 = vcmp.eq.f32.partialorder %v5076_v30, %v5166_v14  ;;  %vm3361_vm1 = vcmp.eq.f32.partialorder %v5082_v41, %v5166_v14  ;;  %v3369_v0 = vshra.s32 %v3367_v36, 16 }
 0x3a3   :  { %v3364_v2 = vsel %vm3360_vm13, %v4809_v22, 256  ;;  %v3365_v51 = vsel %vm3361_vm1, %v4812_v40, 256  ;;  %v2548_v44 = vcvt.s32.f32 %v2546_v56  ;;  %v2564_v28 = vcvt.s32.f32 %v2562_v15 }
 0x3a4   :  { %vm3382_vm0 = vcmp.lt.s32.totalorder %v3364_v2, %v3365_v51  ;;  %v3371_v11 = vcvt.s32.f32 %v3369_v0 }
 0x3a5   :  { %v3383_v57 = vsel %vm3382_vm0, %v3364_v2, %v3365_v51  ;;  %v2820_v2 = vand.u32 65535, %v5124_v12  ;;  %v2836_v51 = vand.u32 65535, %v5135_v39  ;;  %v3110_v39 = vand.u32 65535, %v3109_v25 }
 0x3a6   :  { %v3385_v47 = vshra.s32 %v3383_v57, 16  ;;  %3372 = vmin.xlane.f32.xlu1 %v3371_v11 }
 0x3a7   :  { %v2822_v8 = vcvt.s32.f32 %v2820_v2  ;;  %v3112_v15 = vcvt.s32.f32 %v3110_v39  ;;  %v3368_v2 = vand.u32 65535, %v3367_v36  ;;  %v2581_v36 = vsub.f32 %v5094_v55, %v4822_v62 }
 0x3a8   :  { %v3387_v9 = vcvt.s32.f32 %v3385_v47 }
 0x3aa   :  { %3388 = vmin.xlane.f32.xlu1 %v3387_v9 }
 0x3e2   :  { %v2551_v30 = vpop.xlane.xlu0 %2550 }
 0x3e3   :  { %vm2552_vm14 = vcmp.eq.f32.partialorder %v5105_v59, %v2551_v30  ;;  %v3094_v59 = vand.u32 65535, %v3093_v17  ;;  %v3384_v17 = vand.u32 65535, %v3383_v57  ;;  %v2557_v57 = vcvt.f32.s32 %v2551_v30 }
 0x3e4   :  { %v2553_v41 = vsel %vm2552_vm14, %v2548_v44, inf }
 0x3e5   :  { %2554 = vmin.xlane.f32.xlu0 %v2553_v41  ;;  %v2838_v41 = vcvt.s32.f32 %v2836_v51  ;;  %v3096_v12 = vcvt.s32.f32 %v3094_v59  ;;  %v3370_v51 = vcvt.s32.f32 %v3368_v2 }
 0x3e6   :  { %v2567_v45 = vpop.xlane.xlu1 %2566 }
 0x3e7   :  { %vm2568_vm15 = vcmp.eq.f32.partialorder %v5111_v54, %v2567_v45 }
 0x3e8   :  { %v2569_v0 = vsel %vm2568_vm15, %v2564_v28, inf }
 0x3e9   :  { %2570 = vmin.xlane.f32.xlu1 %v2569_v0 }
 0x403   :  { %v5180_v47 = vpop.xlane.xlu1 %2824 }
 0x404   :  { %vm2826_vm2 = vcmp.eq.f32.partialorder %v5133_v18, %v5180_v47 }
 0x405   :  { %v2827_v5 = vsel %vm2826_vm2, %v2822_v8, inf }
 0x406   :  { %2828 = vmin.xlane.f32.xlu1 %v2827_v5 }
 0x407   :  { %v5184_v44 = vpop.xlane.xlu0 %2840 }
 0x408   :  { %vm2842_vm13 = vcmp.eq.f32.partialorder %v5139_v7, %v5184_v44 }
 0x409   :  { %v2843_v28 = vsel %vm2842_vm13, %v2838_v41, inf }
 0x40a   :  { %2844 = vmin.xlane.f32.xlu0 %v2843_v28  ;;  %v2584_v28 = vmul.f32 1.442695, %v2581_v36 }
 0x412   :  { %v5188_v54 = vpop.xlane.xlu0 %3098 }
 0x413   :  { %vm3100_vm1 = vcmp.eq.f32.partialorder %v3097_v24, %v5188_v54  ;;  %v3386_v24 = vcvt.s32.f32 %v3384_v17 }
 0x414   :  { %v3101_v56 = vsel %vm3100_vm1, %v3096_v12, inf  ;;  %v2558_v12 = vshll.u32 %v2557_v57, 16 }
 0x415   :  { %3102 = vmin.xlane.f32.xlu0 %v3101_v56 }
 0x416   :  { %v5191_v18 = vpop.xlane.xlu0 %3114 }
 0x417   :  { %vm3116_vm0 = vcmp.eq.f32.partialorder %v3113_v50, %v5191_v18  ;;  %v2580_v50 = vsub.f32 %v5086_v48, %v4814_v23 }
 0x418   :  { %v3117_v0 = vsel %vm3116_vm0, %v3112_v15, inf }
 0x419   :  { %3118 = vmin.xlane.f32.xlu0 %v3117_v0  ;;  %v2582_v41 = vmul.f32 1.442695, %v2580_v50 }
 0x41b   :  { %4055 = vpow2.f32 %v2582_v41 }
 0x41c   :  { %4057 = vpow2.f32 %v2584_v28 }
 0x425   :  { %v5204_v2 = vpop.eup %4055 }
 0x426   :  { %v5232_v36 = vpop.eup %4057 }
 0x433   :  { %v5194_v7 = vpop.xlane.xlu1 %3372 }
 0x434   :  { %vm3374_vm14 = vcmp.eq.f32.partialorder %v3371_v11, %v5194_v7  ;;  %v2573_v11 = vcvt.f32.s32 %v2567_v45 }
 0x435   :  { %v3375_v8 = vsel %vm3374_vm14, %v3370_v51, inf  ;;  %v6126_v51 = vmov 0.0   ;;  %vm6130_vm14 = vcmp.eq.s32.totalorder %v4809_v22, %v5046_v1 }
 0x436   :  { %3376 = vmin.xlane.f32.xlu1 %v3375_v8  ;;  %v2522_v48 = vsel %vm2518_vm3, 1.0, %v6126_v51  ;;  %v2523_v30 = vsel %vm2519_vm4, 1.0, %v6126_v51 }
 0x437   :  { %v5197_v25 = vpop.xlane.xlu1 %3388 }
 0x438   :  { %vm3390_vm15 = vcmp.eq.f32.partialorder %v3387_v9, %v5197_v25  ;;  %v2574_v9 = vshll.u32 %v2573_v11, 16 }
 0x439   :  { %v3391_v5 = vsel %vm3390_vm15, %v3386_v24, inf  ;;  %v2524_v24 = vsel %vm2520_vm5, 1.0, %v6126_v51  ;;  %vm6131_vm15 = vcmp.eq.s32.totalorder %v4812_v40, %v5046_v1 }
 0x43a   :  { %3392 = vmin.xlane.f32.xlu1 %v3391_v5 }
 0x472   :  { %v2555_v59 = vpop.xlane.xlu0 %2554 }
 0x473   :  { %v2556_v39 = vcvt.f32.s32 %v2555_v59 }
 0x475   :  { %v2559_v56 = vadd.s32 %v2558_v12, %v2556_v39  ;;  %v2854_v39 = vsub.f32 %v5114_v53, %v4842_v21  ;;  %v2796_v53 = vsel %vm2792_vm7, 1.0, %v6126_v51 }
 0x476   :  { %v2571_v15 = vpop.xlane.xlu1 %2570 }
 0x477   :  { %v2572_v0 = vcvt.f32.s32 %v2571_v15  ;;  %vm2576_vm2 = vcmp.eq.s32.totalorder %v4809_v22, %v2559_v56  ;;  %vm2577_vm13 = vcmp.eq.s32.totalorder %v4812_v40, %v2559_v56  ;;  %v2855_v56 = vsub.f32 %v5122_v61, %v4850_v34 }
 0x478   :  { %v2588_v45 = vsel %vm2576_vm2, %v5204_v2, 0.0  ;;  %v2589_v55 = vsel %vm2577_vm13, %v5204_v2, 0.0  ;;  %v5219_v8 = vsel %vm2576_vm2, -inf, %v4932_v35  ;;  %v5230_v50 = vsel %vm2577_vm13, -inf, %v4938_v33 }
 0x479   :  { %v2575_v17 = vadd.s32 %v2574_v9, %v2572_v0  ;;  %v5225_v5 = vadd.f32 %v2588_v45, %v2522_v48  ;;  %v5227_v43 = vadd.f32 %v2589_v55, %v2523_v30  ;;  %v2525_v35 = vsel %vm2521_vm6, 1.0, %v6126_v51 }
 0x47a   :  { %v2600_v41 = vmax.f32 %v5219_v8, %v5230_v50  ;;  %v2858_v15 = vmul.f32 1.442695, %v2855_v56  ;;  %v3128_v9 = vsub.f32 %v5142_v38, %v4870_v13  ;;  %v2847_v0 = vcvt.f32.s32 %v5184_v44 }
 0x47b   :  { %vm2578_vm3 = vcmp.eq.s32.totalorder %v4809_v22, %v2575_v17  ;;  %vm2579_vm4 = vcmp.eq.s32.totalorder %v4812_v40, %v2575_v17  ;;  %v2798_v44 = vsel %vm2794_vm9, 1.0, %v6126_v51 }
 0x47c   :  { %v2590_v28 = vsel %vm2578_vm3, %v5232_v36, 0.0  ;;  %v2591_v57 = vsel %vm2579_vm4, %v5232_v36, 0.0  ;;  %v5245_v33 = vsel %vm2578_vm3, -inf, %v4952_v42  ;;  %v5248_v11 = vsel %vm2579_vm4, -inf, %v4958_v19  ;;  %2601 = vmax.xlane.f32.xlu0 %v2600_v41 }
 0x47d   :  { %v5250_v59 = vadd.f32 %v2590_v28, %v2524_v24  ;;  %v5252_v16 = vadd.f32 %v2591_v57, %v2525_v35  ;;  %v2603_v12 = vmax.f32 %v5245_v33, %v5248_v11  ;;  %v2856_v42 = vmul.f32 1.442695, %v2854_v39 }
 0x47e   :  { %v2831_v19 = vcvt.f32.s32 %v5180_v47  ;;  %v2797_v47 = vsel %vm2793_vm8, 1.0, %v6126_v51  ;;  %v3130_v17 = vmul.f32 1.442695, %v3128_v9  ;;  %v2848_v24 = vshll.u32 %v2847_v0, 16 }
 0x47f   :  { %2604 = vmax.xlane.f32.xlu1 %v2603_v12  ;;  %4059 = vpow2.f32 %v2856_v42  ;;  %v3129_v41 = vsub.f32 %v5150_v49, %v4878_v46  ;;  %v2799_v39 = vsel %vm2795_vm10, 1.0, %v6126_v51 }
 0x480   :  { %4061 = vpow2.f32 %v2858_v15  ;;  %v2832_v30 = vshll.u32 %v2831_v19, 16 }
 0x481   :  { %4063 = vpow2.f32 %v3130_v17  ;;  %v3132_v0 = vmul.f32 1.442695, %v3129_v41 }
 0x483   :  { %4065 = vpow2.f32 %v3132_v0 }
 0x489   :  { %v5272_v35 = vpop.eup %4059 }
 0x48a   :  { %v5298_v15 = vpop.eup %4061 }
 0x493   :  { %v2829_v48 = vpop.xlane.xlu1 %2828 }
 0x494   :  { %v2830_v45 = vcvt.f32.s32 %v2829_v48 }
 0x496   :  { %v2833_v61 = vadd.s32 %v2832_v30, %v2830_v45 }
 0x497   :  { %v2845_v55 = vpop.xlane.xlu0 %2844 }
 0x498   :  { %v2846_v38 = vcvt.f32.s32 %v2845_v55  ;;  %vm2850_vm5 = vcmp.eq.s32.totalorder %v4809_v22, %v2833_v61  ;;  %vm2851_vm6 = vcmp.eq.s32.totalorder %v4812_v40, %v2833_v61 }
 0x499   :  { %v2862_v29 = vsel %vm2850_vm5, %v5272_v35, 0.0  ;;  %v2863_v28 = vsel %vm2851_vm6, %v5272_v35, 0.0  ;;  %v5285_v12 = vsel %vm2850_vm5, -inf, %v4972_v27  ;;  %v5296_v42 = vsel %vm2851_vm6, -inf, %v4978_v58 }
 0x49a   :  { %v2849_v57 = vadd.s32 %v2848_v24, %v2846_v38  ;;  %v5291_v56 = vadd.f32 %v2862_v29, %v2796_v53  ;;  %v5293_v49 = vadd.f32 %v2863_v28, %v2797_v47  ;;  %v2874_v27 = vmax.f32 %v5285_v12, %v5296_v42 }
 0x49b   :  { %v3105_v53 = vcvt.f32.s32 %v5188_v54  ;;  %v3070_v24 = vsel %vm3066_vm11, 1.0, %v6126_v51  ;;  %v3071_v54 = vsel %vm3067_vm12, 1.0, %v6126_v51  ;;  %vm6128_vm11 = vcmp.eq.s32.totalorder %v4809_v22, %v5022_v37 }
 0x49c   :  { %vm2852_vm7 = vcmp.eq.s32.totalorder %v4809_v22, %v2849_v57  ;;  %vm2853_vm8 = vcmp.eq.s32.totalorder %v4812_v40, %v2849_v57  ;;  %2875 = vmax.xlane.f32.xlu1 %v2874_v27  ;;  %v3072_v0 = vsel %vm6128_vm11, 1.0, %v6126_v51  ;;  %vm6129_vm12 = vcmp.eq.s32.totalorder %v4812_v40, %v5022_v37 }
 0x49d   :  { %v2864_v10 = vsel %vm2852_vm7, %v5298_v15, 0.0  ;;  %v2865_v19 = vsel %vm2853_vm8, %v5298_v15, 0.0  ;;  %v5307_v9 = vsel %vm2852_vm7, -inf, %v4992_v4  ;;  %v5310_v58 = vsel %vm2853_vm8, -inf, %v4998_v63  ;;  %v5320_v63 = vpop.eup %4063 }
 0x49e   :  { %v5312_v48 = vadd.f32 %v2864_v10, %v2798_v44  ;;  %v5314_v30 = vadd.f32 %v2865_v19, %v2799_v39  ;;  %v2877_v45 = vmax.f32 %v5307_v9, %v5310_v58  ;;  %v3106_v55 = vshll.u32 %v3105_v53, 16  ;;  %v5346_v19 = vpop.eup %4065 }
 0x49f   :  { %v3121_v4 = vcvt.f32.s32 %v5191_v18  ;;  %6127 = vst [vmem:[#allocation16_spill] sm:$0xff] %v5346_v19 }
 0x4a0   :  { %2878 = vmax.xlane.f32.xlu0 %v2877_v45 }
 0x4a1   :  { %v3122_v44 = vshll.u32 %v3121_v4, 16 }
 0x4a2   :  { %v3103_v61 = vpop.xlane.xlu0 %3102 }
 0x4a3   :  { %v3104_v47 = vcvt.f32.s32 %v3103_v61 }
 0x4a5   :  { %v3107_v17 = vadd.s32 %v3106_v55, %v3104_v47  ;;  %v3402_v47 = vsub.f32 %v5158_v3, %v4886_v60  ;;  %v3344_v3 = vsel %vm6130_vm14, 1.0, %v6126_v51 }
 0x4a6   :  { %v3119_v38 = vpop.xlane.xlu0 %3118 }
 0x4a7   :  { %vm3124_vm9 = vcmp.eq.s32.totalorder %v4809_v22, %v3107_v17  ;;  %vm3125_vm10 = vcmp.eq.s32.totalorder %v4812_v40, %v3107_v17  ;;  %v3120_v18 = vcvt.f32.s32 %v3119_v38  ;;  %v3404_v17 = vmul.f32 1.442695, %v3402_v47 }
 0x4a8   :  { %v3136_v41 = vsel %vm3124_vm9, %v5320_v63, 0.0  ;;  %v3137_v29 = vsel %vm3125_vm10, %v5320_v63, 0.0  ;;  %v5335_v28 = vsel %vm3124_vm9, -inf, %v5014_v32  ;;  %v5338_v57 = vsel %vm3125_vm10, -inf, %v5020_v20 }
 0x4a9   :  { %v5340_v39 = vadd.f32 %v3136_v41, %v3070_v24  ;;  %v5342_v31 = vadd.f32 %v3137_v29, %v3071_v54  ;;  %v3123_v27 = vadd.s32 %v3122_v44, %v3120_v18  ;;  %v3148_v10 = vmax.f32 %v5335_v28, %v5338_v57 }
 0x4aa   :  { %v3073_v32 = vsel %vm6129_vm12, 1.0, %v6126_v51  ;;  %v3403_v24 = vsub.f32 %v5166_v14, %v4894_v6  ;;  %4067 = vpow2.f32 %v3404_v17  ;;  %v3395_v44 = vcvt.f32.s32 %v5197_v25 }
 0x4ab   :  { %vm3126_vm1 = vcmp.eq.s32.totalorder %v4809_v22, %v3123_v27  ;;  %vm3127_vm0 = vcmp.eq.s32.totalorder %v4812_v40, %v3123_v27  ;;  %3149 = vmax.xlane.f32.xlu0 %v3148_v10  ;;  %v3345_v14 = vsel %vm6131_vm15, 1.0, %v6126_v51 }
 0x4ac   :  { %v3138_v20 = vsel %vm3126_vm1, %v5346_v19, 0.0  ;;  %v3139_v45 = vsel %vm3127_vm0, %v5346_v19, 0.0  ;;  %v5361_v53 = vsel %vm3126_vm1, -inf, %v5034_v52  ;;  %v5364_v61 = vsel %vm3127_vm0, -inf, %v5040_v26 }
 0x4ad   :  { %v5366_v55 = vadd.f32 %v3138_v20, %v3072_v0  ;;  %v5368_v4 = vadd.f32 %v3139_v45, %v3073_v32  ;;  %v3151_v37 = vmax.f32 %v5361_v53, %v5364_v61  ;;  %v3406_v52 = vmul.f32 1.442695, %v3403_v24  ;;  %v6132_v32 = vld [vmem:[#allocation11_spill] sm:$0xff]  ;;  %v6133_v45 = vld [vmem:[#allocation12_spill] sm:$0xff] }
 0x4ae   :  { %v3379_v26 = vcvt.f32.s32 %v5194_v7  ;;  %v3396_v7 = vshll.u32 %v3395_v44, 16 }
 0x4af   :  { %3152 = vmax.xlane.f32.xlu0 %v3151_v37  ;;  %4069 = vpow2.f32 %v3406_v52 }
 0x4b0   :  { %v3380_v38 = vshll.u32 %v3379_v26, 16  ;;  %v6138_v26 = vld [vmem:[#allocation13_spill] sm:$0xff] }
 0x4b1   :  { %vm6139_vm3 = vcmp.eq.s32.totalorder %v4809_v22, %v6138_v26  ;;  %vm6140_vm4 = vcmp.eq.s32.totalorder %v4812_v40, %v6138_v26 }
 0x4b4   :  { %v5386_v27 = vpop.eup %4067 }
 0x4b9   :  { %v5404_v52 = vpop.eup %4069 }
 0x4ba   :  { %6137 = vst [vmem:[#allocation18_spill] sm:$0xff] %v5404_v52 }
 0x4c3   :  { %v3377_v54 = vpop.xlane.xlu1 %3376 }
 0x4c4   :  { %v3378_v18 = vcvt.f32.s32 %v3377_v54  ;;  %v3346_v54 = vsel %vm6139_vm3, 1.0, %v6126_v51 }
 0x4c6   :  { %v3381_v41 = vadd.s32 %v3380_v38, %v3378_v18  ;;  %v3347_v38 = vsel %vm6140_vm4, 1.0, %v6126_v51 }
 0x4c7   :  { %v3393_v29 = vpop.xlane.xlu1 %3392 }
 0x4c8   :  { %vm3398_vm2 = vcmp.eq.s32.totalorder %v4809_v22, %v3381_v41  ;;  %vm3399_vm13 = vcmp.eq.s32.totalorder %v4812_v40, %v3381_v41  ;;  %v3394_v25 = vcvt.f32.s32 %v3393_v29  ;;  %v6141_v41 = vld [vmem:[#allocation14_spill] sm:$0xff] }
 0x4c9   :  { %v3410_v10 = vsel %vm3398_vm2, %v5386_v27, 0.0  ;;  %v3411_v0 = vsel %vm3399_vm13, %v5386_v27, 0.0  ;;  %v5393_v20 = vsel %vm3398_vm2, -inf, %v6132_v32  ;;  %v5396_v37 = vsel %vm3399_vm13, -inf, %v6133_v45 }
 0x4ca   :  { %6134 = vst [vmem:[#allocation11_spill] sm:$0xff] %v5396_v37  ;;  %v5398_v1 = vadd.f32 %v3410_v10, %v3344_v3  ;;  %v5400_v47 = vadd.f32 %v3411_v0, %v3345_v14  ;;  %v3397_v17 = vadd.s32 %v3396_v7, %v3394_v25  ;;  %v3422_v24 = vmax.f32 %v5393_v20, %v5396_v37  ;;  %v6143_v14 = vld [vmem:[#allocation15_spill] sm:$0xff] }
 0x4cc   :  { %6135 = vst [vmem:[#allocation12_spill] sm:$0xff] %v5398_v1  ;;  %6136 = vst [vmem:[#allocation17_spill] sm:$0xff] %v5400_v47  ;;  %vm3400_vm5 = vcmp.eq.s32.totalorder %v4809_v22, %v3397_v17  ;;  %vm3401_vm6 = vcmp.eq.s32.totalorder %v4812_v40, %v3397_v17  ;;  %3423 = vmax.xlane.f32.xlu1 %v3422_v24 }
 0x4cd   :  { %v3412_v44 = vsel %vm3400_vm5, %v5404_v52, 0.0  ;;  %v3413_v18 = vsel %vm3401_vm6, %v5404_v52, 0.0  ;;  %v5419_v3 = vsel %vm3400_vm5, -inf, %v6141_v41  ;;  %v5422_v29 = vsel %vm3401_vm6, -inf, %v6143_v14 }
 0x4ce   :  { %6142 = vst [vmem:[#allocation13_spill] sm:$0xff] %v5419_v3  ;;  %6144 = vst [vmem:[#allocation14_spill] sm:$0xff] %v5422_v29  ;;  %v5424_v7 = vadd.f32 %v3412_v44, %v3346_v54  ;;  %v5426_v25 = vadd.f32 %v3413_v18, %v3347_v38  ;;  %v3425_v51 = vmax.f32 %v5419_v3, %v5422_v29 }
 0x4d0   :  { %6145 = vst [vmem:[#allocation15_spill] sm:$0xff] %v5424_v7  ;;  %6146 = vst [vmem:[#allocation19_spill] sm:$0xff] %v5426_v25  ;;  %3426 = vmax.xlane.f32.xlu1 %v3425_v51 }
 0x509   :  { %v2602_v10 = vpop.xlane.xlu0 %2601 }
 0x50a   :  { %vm2606_vm7 = vcmp.eq.f32.partialorder %v5219_v8, %v2602_v10  ;;  %vm2607_vm8 = vcmp.eq.f32.partialorder %v5230_v50, %v2602_v10  ;;  %v2650_v0 = vsub.f32 %v2602_v10, %v4814_v23 }
 0x50b   :  { %v2610_v32 = vsel %vm2606_vm7, %v4809_v22, 256  ;;  %v2611_v45 = vsel %vm2607_vm8, %v4812_v40, 256 }
 0x50c   :  { %v2605_v17 = vpop.xlane.xlu1 %2604  ;;  %v2652_v24 = vmul.f32 1.442695, %v2650_v0  ;;  %vm2614_vm11 = vcmp.lt.s32.totalorder %v2610_v32, %v2611_v45 }
 0x50d   :  { %vm2608_vm9 = vcmp.eq.f32.partialorder %v5245_v33, %v2605_v17  ;;  %vm2609_vm10 = vcmp.eq.f32.partialorder %v5248_v11, %v2605_v17  ;;  %v2651_v26 = vsub.f32 %v2605_v17, %v4822_v62  ;;  %v5440_v18 = vsel %vm2614_vm11, %v2610_v32, %v2611_v45 }
 0x50e   :  { %v2612_v54 = vsel %vm2608_vm9, %v4809_v22, 256  ;;  %v2613_v38 = vsel %vm2609_vm10, %v4812_v40, 256  ;;  %4071 = vpow2.f32 %v2652_v24  ;;  %v2617_v41 = vshra.s32 %v5440_v18, 16 }
 0x50f   :  { %v2654_v44 = vmul.f32 1.442695, %v2651_v26  ;;  %vm2630_vm12 = vcmp.lt.s32.totalorder %v2612_v54, %v2613_v38  ;;  %v2586_v17 = vadd.f32 1.0, %v5204_v2  ;;  %v2587_v24 = vadd.f32 1.0, %v5232_v36 }
 0x510   :  { %v5443_v14 = vsel %vm2630_vm12, %v2612_v54, %v2613_v38  ;;  %v5446_v10 = vcvt.s32.f32 %v2617_v41 }
 0x511   :  { %4073 = vpow2.f32 %v2654_v44  ;;  %v2633_v51 = vshra.s32 %v5443_v14, 16 }
 0x512   :  { %2620 = vmin.xlane.f32.xlu0 %v5446_v10 }
 0x513   :  { %v5448_v0 = vcvt.s32.f32 %v2633_v51 }
 0x515   :  { %2636 = vmin.xlane.f32.xlu1 %v5448_v0 }
 0x518   :  { %v5453_v32 = vpop.eup %4071 }
 0x519   :  { %v5456_v45 = vadd.f32 %v5453_v32, %v2586_v17 }
 0x51b   :  { %6147 = vst [vmem:[#allocation20_spill] sm:$0xff] %v5456_v45  ;;  %v5459_v26 = vpop.eup %4073 }
 0x51c   :  { %v5462_v54 = vadd.f32 %v5459_v26, %v2587_v24 }
 0x51e   :  { %6148 = vst [vmem:[#allocation21_spill] sm:$0xff] %v5462_v54 }
 0x529   :  { %v2876_v38 = vpop.xlane.xlu1 %2875 }
 0x52a   :  { %vm2880_vm1 = vcmp.eq.f32.partialorder %v5285_v12, %v2876_v38  ;;  %vm2881_vm0 = vcmp.eq.f32.partialorder %v5296_v42, %v2876_v38  ;;  %v2924_v44 = vsub.f32 %v2876_v38, %v4842_v21 }
 0x52b   :  { %v2884_v2 = vsel %vm2880_vm1, %v4809_v22, 256  ;;  %v2885_v41 = vsel %vm2881_vm0, %v4812_v40, 256 }
 0x52c   :  { %v2926_v17 = vmul.f32 1.442695, %v2924_v44  ;;  %vm2888_vm2 = vcmp.lt.s32.totalorder %v2884_v2, %v2885_v41 }
 0x52d   :  { %v2879_v51 = vpop.xlane.xlu0 %2878  ;;  %v5474_v38 = vsel %vm2888_vm2, %v2884_v2, %v2885_v41  ;;  %v2860_v2 = vadd.f32 1.0, %v5272_v35 }
 0x52e   :  { %vm2882_vm14 = vcmp.eq.f32.partialorder %v5307_v9, %v2879_v51  ;;  %vm2883_vm15 = vcmp.eq.f32.partialorder %v5310_v58, %v2879_v51  ;;  %v2925_v36 = vsub.f32 %v2879_v51, %v4850_v34  ;;  %4075 = vpow2.f32 %v2926_v17 }
 0x52f   :  { %v2886_v24 = vsel %vm2882_vm14, %v4809_v22, 256  ;;  %v2887_v52 = vsel %vm2883_vm15, %v4812_v40, 256  ;;  %v2891_v21 = vshra.s32 %v5474_v38, 16 }
 0x530   :  { %v2928_v19 = vmul.f32 1.442695, %v2925_v36  ;;  %vm2904_vm13 = vcmp.lt.s32.totalorder %v2886_v24, %v2887_v52 }
 0x531   :  { %v5477_v54 = vsel %vm2904_vm13, %v2886_v24, %v2887_v52  ;;  %v5480_v45 = vcvt.s32.f32 %v2891_v21  ;;  %v2861_v24 = vadd.f32 1.0, %v5298_v15 }
 0x532   :  { %4077 = vpow2.f32 %v2928_v19  ;;  %v2907_v44 = vshra.s32 %v5477_v54, 16 }
 0x533   :  { %2894 = vmin.xlane.f32.xlu1 %v5480_v45 }
 0x534   :  { %v5482_v51 = vcvt.s32.f32 %v2907_v44 }
 0x536   :  { %2910 = vmin.xlane.f32.xlu0 %v5482_v51 }
 0x538   :  { %v3150_v17 = vpop.xlane.xlu0 %3149  ;;  %v5487_v41 = vpop.eup %4075 }
 0x539   :  { %vm3154_vm3 = vcmp.eq.f32.partialorder %v5335_v28, %v3150_v17  ;;  %vm3155_vm4 = vcmp.eq.f32.partialorder %v5338_v57, %v3150_v17  ;;  %v3198_v19 = vsub.f32 %v3150_v17, %v4870_v13  ;;  %v5495_v36 = vadd.f32 %v5487_v41, %v2860_v2 }
 0x53a   :  { %v3158_v21 = vsel %vm3154_vm3, %v4809_v22, 256  ;;  %v3159_v52 = vsel %vm3155_vm4, %v4812_v40, 256 }
 0x53b   :  { %6149 = vst [vmem:[#allocation22_spill] sm:$0xff] %v5495_v36  ;;  %v3200_v35 = vmul.f32 1.442695, %v3198_v19  ;;  %vm3162_vm5 = vcmp.lt.s32.totalorder %v3158_v21, %v3159_v52 }
 0x53c   :  { %v5498_v44 = vpop.eup %4077  ;;  %v5500_v34 = vpop.xlane.xlu0 %3152  ;;  %v5502_v62 = vsel %vm3162_vm5, %v3158_v21, %v3159_v52 }
 0x53d   :  { %v5505_v23 = vadd.f32 %v5498_v44, %v2861_v24  ;;  %4079 = vpow2.f32 %v3200_v35  ;;  %vm3156_vm6 = vcmp.eq.f32.partialorder %v5361_v53, %v5500_v34  ;;  %vm3157_vm7 = vcmp.eq.f32.partialorder %v5364_v61, %v5500_v34 }
 0x53e   :  { %v3160_v15 = vsel %vm3156_vm6, %v4809_v22, 256  ;;  %v3161_v17 = vsel %vm3157_vm7, %v4812_v40, 256  ;;  %v3165_v2 = vshra.s32 %v5502_v62, 16  ;;  %v3134_v35 = vadd.f32 1.0, %v5320_v63 }
 0x53f   :  { %6150 = vst [vmem:[#allocation23_spill] sm:$0xff] %v5505_v23  ;;  %vm3178_vm8 = vcmp.lt.s32.totalorder %v3160_v15, %v3161_v17 }
 0x540   :  { %v5514_v19 = vcvt.s32.f32 %v3165_v2  ;;  %v5516_v21 = vsel %vm3178_vm8, %v3160_v15, %v3161_v17 }
 0x541   :  { %v3181_v52 = vshra.s32 %v5516_v21, 16 }
 0x542   :  { %3168 = vmin.xlane.f32.xlu0 %v5514_v19 }
 0x543   :  { %v5520_v24 = vcvt.s32.f32 %v3181_v52 }
 0x546   :  { %3184 = vmin.xlane.f32.xlu0 %v5520_v24 }
 0x547   :  { %v5524_v23 = vpop.eup %4079 }
 0x548   :  { %v5527_v36 = vadd.f32 %v5524_v23, %v3134_v35 }
 0x54a   :  { %6151 = vst [vmem:[#allocation24_spill] sm:$0xff] %v5527_v36 }
 0x559   :  { %v3424_v13 = vpop.xlane.xlu1 %3423 }
 0x55a   :  { %vm3428_vm9 = vcmp.eq.f32.partialorder %v5393_v20, %v3424_v13  ;;  %vm3429_vm10 = vcmp.eq.f32.partialorder %v5396_v37, %v3424_v13  ;;  %v3472_v15 = vsub.f32 %v3424_v13, %v4886_v60 }
 0x55b   :  { %v3432_v17 = vsel %vm3428_vm9, %v4809_v22, 256  ;;  %v3433_v2 = vsel %vm3429_vm10, %v4812_v40, 256 }
 0x55c   :  { %v3474_v52 = vmul.f32 1.442695, %v3472_v15  ;;  %vm3436_vm11 = vcmp.lt.s32.totalorder %v3432_v17, %v3433_v2 }
 0x55d   :  { %v5534_v7 = vpop.xlane.xlu1 %3426  ;;  %v3437_v63 = vsel %vm3436_vm11, %v3432_v17, %v3433_v2  ;;  %v3408_v17 = vadd.f32 1.0, %v5386_v27 }
 0x55e   :  { %4081 = vpow2.f32 %v3474_v52  ;;  %vm3430_vm12 = vcmp.eq.f32.partialorder %v5419_v3, %v5534_v7  ;;  %vm3431_vm1 = vcmp.eq.f32.partialorder %v5422_v29, %v5534_v7  ;;  %v3439_v60 = vshra.s32 %v3437_v63, 16 }
 0x55f   :  { %v3434_v35 = vsel %vm3430_vm12, %v4809_v22, 256  ;;  %v3435_v13 = vsel %vm3431_vm1, %v4812_v40, 256  ;;  %v2616_v29 = vand.u32 65535, %v5440_v18  ;;  %v2632_v3 = vand.u32 65535, %v5443_v14 }
 0x560   :  { %vm3452_vm0 = vcmp.lt.s32.totalorder %v3434_v35, %v3435_v13  ;;  %v3441_v36 = vcvt.s32.f32 %v3439_v60 }
 0x561   :  { %v3453_v25 = vsel %vm3452_vm0, %v3434_v35, %v3435_v13  ;;  %v2618_v37 = vcvt.s32.f32 %v2616_v29  ;;  %v2634_v35 = vcvt.s32.f32 %v2632_v3 }
 0x562   :  { %v3455_v15 = vshra.s32 %v3453_v25, 16  ;;  %3442 = vmin.xlane.f32.xlu1 %v3441_v36 }
 0x564   :  { %v3457_v1 = vcvt.s32.f32 %v3455_v15  ;;  %v2890_v15 = vand.u32 65535, %v5474_v38  ;;  %v3180_v38 = vand.u32 65535, %v5516_v21 }
 0x566   :  { %3458 = vmin.xlane.f32.xlu1 %v3457_v1  ;;  %v2892_v18 = vcvt.s32.f32 %v2890_v15 }
 0x568   :  { %v5543_v2 = vpop.eup %4081 }
 0x569   :  { %v5546_v52 = vadd.f32 %v5543_v2, %v3408_v17  ;;  %v2906_v17 = vand.u32 65535, %v5477_v54 }
 0x56b   :  { %6152 = vst [vmem:[#allocation25_spill] sm:$0xff] %v5546_v52  ;;  %v2908_v14 = vcvt.s32.f32 %v2906_v17  ;;  %v3454_v17 = vand.u32 65535, %v3453_v25 }
 0x59f   :  { %v2621_v47 = vpop.xlane.xlu0 %2620 }
 0x5a0   :  { %vm2622_vm14 = vcmp.eq.f32.partialorder %v5446_v10, %v2621_v47  ;;  %v3164_v10 = vand.u32 65535, %v5502_v62 }
 0x5a1   :  { %v2623_v13 = vsel %vm2622_vm14, %v2618_v37, inf }
 0x5a2   :  { %v2637_v60 = vpop.xlane.xlu1 %2636  ;;  %2624 = vmin.xlane.f32.xlu0 %v2623_v13  ;;  %v3166_v54 = vcvt.s32.f32 %v3164_v10  ;;  %v3182_v13 = vcvt.s32.f32 %v3180_v38 }
 0x5a3   :  { %vm2638_vm15 = vcmp.eq.f32.partialorder %v5448_v0, %v2637_v60 }
 0x5a4   :  { %v2639_v27 = vsel %vm2638_vm15, %v2634_v35, inf }
 0x5a5   :  { %2640 = vmin.xlane.f32.xlu1 %v2639_v27  ;;  %v3438_v27 = vand.u32 65535, %v3437_v63 }
 0x5a7   :  { %v3440_v15 = vcvt.s32.f32 %v3438_v27 }
 0x5c0   :  { %v5554_v52 = vpop.xlane.xlu1 %2894 }
 0x5c1   :  { %vm2896_vm2 = vcmp.eq.f32.partialorder %v5480_v45, %v5554_v52 }
 0x5c2   :  { %v2897_v3 = vsel %vm2896_vm2, %v2892_v18, inf  ;;  %v3456_v18 = vcvt.s32.f32 %v3454_v17 }
 0x5c3   :  { %v5558_v29 = vpop.xlane.xlu0 %2910  ;;  %2898 = vmin.xlane.f32.xlu1 %v2897_v3  ;;  %v2627_v3 = vcvt.f32.s32 %v2621_v47 }
 0x5c4   :  { %vm2912_vm13 = vcmp.eq.f32.partialorder %v5482_v51, %v5558_v29 }
 0x5c5   :  { %v2913_v37 = vsel %vm2912_vm13, %v2908_v14, inf  ;;  %v2628_v10 = vshll.u32 %v2627_v3, 16 }
 0x5c6   :  { %2914 = vmin.xlane.f32.xlu0 %v2913_v37 }
 0x5cf   :  { %v5563_v0 = vpop.xlane.xlu0 %3168 }
 0x5d0   :  { %vm3170_vm3 = vcmp.eq.f32.partialorder %v5514_v19, %v5563_v0 }
 0x5d1   :  { %v3171_v45 = vsel %vm3170_vm3, %v3166_v54, inf }
 0x5d2   :  { %3172 = vmin.xlane.f32.xlu0 %v3171_v45 }
 0x5d3   :  { %v5568_v35 = vpop.xlane.xlu0 %3184 }
 0x5d4   :  { %vm3186_vm4 = vcmp.eq.f32.partialorder %v5520_v24, %v5568_v35  ;;  %v2643_v24 = vcvt.f32.s32 %v2637_v60 }
 0x5d5   :  { %v3187_v51 = vsel %vm3186_vm4, %v3182_v13, inf }
 0x5d6   :  { %3188 = vmin.xlane.f32.xlu0 %v3187_v51  ;;  %v2644_v38 = vshll.u32 %v2643_v24, 16 }
 0x5ef   :  { %v5572_v62 = vpop.xlane.xlu1 %3442 }
 0x5f0   :  { %vm3444_vm5 = vcmp.eq.f32.partialorder %v3441_v36, %v5572_v62 }
 0x5f1   :  { %v3445_v21 = vsel %vm3444_vm5, %v3440_v15, inf }
 0x5f2   :  { %3446 = vmin.xlane.f32.xlu1 %v3445_v21 }
 0x5f3   :  { %v5575_v19 = vpop.xlane.xlu1 %3458 }
 0x5f4   :  { %vm3460_vm6 = vcmp.eq.f32.partialorder %v3457_v1, %v5575_v19 }
 0x5f5   :  { %v3461_v14 = vsel %vm3460_vm6, %v3456_v18, inf  ;;  %v2917_v18 = vcvt.f32.s32 %v5558_v29 }
 0x5f6   :  { %3462 = vmin.xlane.f32.xlu1 %v3461_v14 }
 0x62f   :  { %v2625_v37 = vpop.xlane.xlu0 %2624 }
 0x630   :  { %v2626_v63 = vcvt.f32.s32 %v2625_v37 }
 0x632   :  { %v2641_v54 = vpop.xlane.xlu1 %2640  ;;  %v2629_v25 = vadd.s32 %v2628_v10, %v2626_v63 }
 0x633   :  { %v2642_v45 = vcvt.f32.s32 %v2641_v54 }
 0x634   :  { %vm2646_vm7 = vcmp.eq.s32.totalorder %v4809_v22, %v2629_v25  ;;  %vm2647_vm8 = vcmp.eq.s32.totalorder %v4812_v40, %v2629_v25 }
 0x635   :  { %v2645_v13 = vadd.s32 %v2644_v38, %v2642_v45  ;;  %v2659_v36 = vsel %vm2647_vm8, %v5453_v32, 0.0  ;;  %v5582_v1 = vsel %vm2646_vm7, -inf, %v5219_v8  ;;  %v5585_v47 = vsel %vm2647_vm8, -inf, %v5230_v50 }
 0x636   :  { %v2658_v60 = vsel %vm2646_vm7, %v5453_v32, 0.0  ;;  %v5589_v51 = vadd.f32 %v2659_v36, %v5227_v43  ;;  %v2670_v27 = vmax.f32 %v5582_v1, %v5585_v47 }
 0x637   :  { %v5594_v15 = vadd.f32 %v2658_v60, %v5225_v5  ;;  %vm2648_vm9 = vcmp.eq.s32.totalorder %v4809_v22, %v2645_v13  ;;  %vm2649_vm10 = vcmp.eq.s32.totalorder %v4812_v40, %v2645_v13 }
 0x638   :  { %v5599_v8 = vsel %vm2648_vm9, -inf, %v5245_v33  ;;  %v2660_v50 = vsel %vm2648_vm9, %v5459_v26, 0.0  ;;  %2671 = vmax.xlane.f32.xlu0 %v2670_v27  ;;  %v2661_v32 = vsel %vm2649_vm10, %v5459_v26, 0.0  ;;  %v5604_v43 = vsel %vm2649_vm10, -inf, %v5248_v11 }
 0x639   :  { %v5607_v17 = vadd.f32 %v2660_v50, %v5250_v59  ;;  %v5610_v5 = vadd.f32 %v2661_v32, %v5252_v16  ;;  %v2673_v21 = vmax.f32 %v5599_v8, %v5604_v43  ;;  %v2901_v33 = vcvt.f32.s32 %v5554_v52 }
 0x63a   :  { %v2918_v11 = vshll.u32 %v2917_v18, 16  ;;  %v3199_v16 = vsub.f32 %v5500_v34, %v4878_v46 }
 0x63b   :  { %2674 = vmax.xlane.f32.xlu1 %v2673_v21  ;;  %v2902_v3 = vshll.u32 %v2901_v33, 16 }
 0x63c   :  { %v3202_v25 = vmul.f32 1.442695, %v3199_v16 }
 0x63e   :  { %4083 = vpow2.f32 %v3202_v25 }
 0x650   :  { %v2899_v14 = vpop.xlane.xlu1 %2898 }
 0x651   :  { %v2900_v26 = vcvt.f32.s32 %v2899_v14 }
 0x653   :  { %v2915_v24 = vpop.xlane.xlu0 %2914  ;;  %v2903_v10 = vadd.s32 %v2902_v3, %v2900_v26 }
 0x654   :  { %v2916_v37 = vcvt.f32.s32 %v2915_v24  ;;  %v5674_v24 = vpop.eup %4083 }
 0x655   :  { %vm2920_vm11 = vcmp.eq.s32.totalorder %v4809_v22, %v2903_v10  ;;  %vm2921_vm12 = vcmp.eq.s32.totalorder %v4812_v40, %v2903_v10  ;;  %v3473_v10 = vsub.f32 %v5534_v7, %v4894_v6 }
 0x656   :  { %v2919_v59 = vadd.s32 %v2918_v11, %v2916_v37  ;;  %v2933_v63 = vsel %vm2921_vm12, %v5487_v41, 0.0  ;;  %v5622_v52 = vsel %vm2920_vm11, -inf, %v5285_v12  ;;  %v5625_v29 = vsel %vm2921_vm12, -inf, %v5296_v42 }
 0x657   :  { %v2932_v54 = vsel %vm2920_vm11, %v5487_v41, 0.0  ;;  %v5629_v38 = vadd.f32 %v2933_v63, %v5293_v49  ;;  %v2944_v34 = vmax.f32 %v5622_v52, %v5625_v29  ;;  %v3465_v63 = vcvt.f32.s32 %v5575_v19 }
 0x658   :  { %v5634_v45 = vadd.f32 %v2932_v54, %v5291_v56  ;;  %vm2922_vm1 = vcmp.eq.s32.totalorder %v4809_v22, %v2919_v59  ;;  %vm2923_vm0 = vcmp.eq.s32.totalorder %v4812_v40, %v2919_v59  ;;  %v3449_v59 = vcvt.f32.s32 %v5572_v62  ;;  %v6153_v62 = vld [vmem:[#allocation11_spill] sm:$0xff] }
 0x659   :  { %v5639_v12 = vsel %vm2922_vm1, -inf, %v5307_v9  ;;  %v2934_v42 = vsel %vm2922_vm1, %v5498_v44, 0.0  ;;  %2945 = vmax.xlane.f32.xlu1 %v2944_v34  ;;  %v2935_v49 = vsel %vm2923_vm0, %v5498_v44, 0.0  ;;  %v5644_v41 = vsel %vm2923_vm0, -inf, %v5310_v58 }
 0x65a   :  { %v5647_v13 = vadd.f32 %v2934_v42, %v5312_v48  ;;  %v5650_v56 = vadd.f32 %v2935_v49, %v5314_v30  ;;  %v2947_v36 = vmax.f32 %v5639_v12, %v5644_v41  ;;  %v3175_v9 = vcvt.f32.s32 %v5563_v0 }
 0x65b   :  { %v3191_v44 = vcvt.f32.s32 %v5568_v35  ;;  %v3450_v16 = vshll.u32 %v3449_v59, 16  ;;  %v3466_v42 = vshll.u32 %v3465_v63, 16 }
 0x65c   :  { %2948 = vmax.xlane.f32.xlu0 %v2947_v36  ;;  %v3176_v27 = vshll.u32 %v3175_v9, 16  ;;  %v6154_v9 = vld [vmem:[#allocation17_spill] sm:$0xff] }
 0x65d   :  { %v3192_v21 = vshll.u32 %v3191_v44, 16  ;;  %v6155_v44 = vld [vmem:[#allocation12_spill] sm:$0xff] }
 0x65f   :  { %v3173_v60 = vpop.xlane.xlu0 %3172 }
 0x660   :  { %v3174_v50 = vcvt.f32.s32 %v3173_v60 }
 0x662   :  { %v3177_v58 = vadd.s32 %v3176_v27, %v3174_v50 }
 0x663   :  { %v3189_v32 = vpop.xlane.xlu0 %3188 }
 0x664   :  { %v3190_v48 = vcvt.f32.s32 %v3189_v32  ;;  %vm3194_vm14 = vcmp.eq.s32.totalorder %v4809_v22, %v3177_v58  ;;  %vm3195_vm15 = vcmp.eq.s32.totalorder %v4812_v40, %v3177_v58 }
 0x665   :  { %v3207_v30 = vsel %vm3195_vm15, %v5524_v23, 0.0  ;;  %v5660_v33 = vsel %vm3194_vm14, -inf, %v5335_v28  ;;  %v5663_v0 = vsel %vm3195_vm15, -inf, %v5338_v57  ;;  %v3206_v18 = vsel %vm3194_vm14, %v5524_v23, 0.0 }
 0x666   :  { %v3193_v35 = vadd.s32 %v3192_v21, %v3190_v48  ;;  %v5667_v14 = vadd.f32 %v3207_v30, %v5342_v31  ;;  %v3218_v3 = vmax.f32 %v5660_v33, %v5663_v0  ;;  %v5672_v26 = vadd.f32 %v3206_v18, %v5340_v39  ;;  %v6157_v21 = vld [vmem:[#allocation14_spill] sm:$0xff]  ;;  %v6158_v18 = vld [vmem:[#allocation19_spill] sm:$0xff] }
 0x668   :  { %3219 = vmax.xlane.f32.xlu0 %v3218_v3  ;;  %vm3196_vm2 = vcmp.eq.s32.totalorder %v4809_v22, %v3193_v35  ;;  %vm3197_vm13 = vcmp.eq.s32.totalorder %v4812_v40, %v3193_v35 }
 0x669   :  { %v3209_v28 = vsel %vm3197_vm13, %v5674_v24, 0.0  ;;  %v5680_v23 = vsel %vm3196_vm2, -inf, %v5361_v53  ;;  %v5683_v57 = vsel %vm3197_vm13, -inf, %v5364_v61  ;;  %v3208_v31 = vsel %vm3196_vm2, %v5674_v24, 0.0 }
 0x66a   :  { %v5687_v39 = vadd.f32 %v3209_v28, %v5368_v4  ;;  %v3221_v11 = vmax.f32 %v5680_v23, %v5683_v57  ;;  %v5692_v37 = vadd.f32 %v3208_v31, %v5366_v55  ;;  %v3476_v53 = vmul.f32 1.442695, %v3473_v10  ;;  %v6159_v28 = vld [vmem:[#allocation15_spill] sm:$0xff]  ;;  %v6160_v10 = vld [vmem:[#allocation5_spill] sm:$0xff] }
 0x66c   :  { %3222 = vmax.xlane.f32.xlu0 %v3221_v11  ;;  %4085 = vpow2.f32 %v3476_v53 }
 0x676   :  { %v5716_v58 = vpop.eup %4085 }
 0x67f   :  { %v3447_v61 = vpop.xlane.xlu1 %3446 }
 0x680   :  { %v3448_v4 = vcvt.f32.s32 %v3447_v61 }
 0x682   :  { %v3451_v54 = vadd.s32 %v3450_v16, %v3448_v4  ;;  %v6161_v4 = vld [vmem:[#allocation6_spill] sm:$0xff] }
 0x683   :  { %v3463_v34 = vpop.xlane.xlu1 %3462 }
 0x684   :  { %v3464_v25 = vcvt.f32.s32 %v3463_v34  ;;  %vm3468_vm3 = vcmp.eq.s32.totalorder %v4809_v22, %v3451_v54  ;;  %vm3469_vm4 = vcmp.eq.s32.totalorder %v4812_v40, %v3451_v54 }
 0x685   :  { %v3481_v55 = vsel %vm3469_vm4, %v5543_v2, 0.0  ;;  %v5702_v7 = vsel %vm3468_vm3, -inf, %v5393_v20  ;;  %v5705_v49 = vsel %vm3469_vm4, -inf, %v6153_v62  ;;  %v3480_v36 = vsel %vm3468_vm3, %v5543_v2, 0.0  ;;  %v6156_v2 = vld [vmem:[#allocation13_spill] sm:$0xff] }
 0x686   :  { %v3467_v19 = vadd.s32 %v3466_v42, %v3464_v25  ;;  %v5709_v60 = vadd.f32 %v3481_v55, %v6154_v9  ;;  %v3492_v27 = vmax.f32 %v5702_v7, %v5705_v49  ;;  %v5714_v50 = vadd.f32 %v3480_v36, %v6155_v44  ;;  %v6163_v44 = vld [vmem:[#allocation21_spill] sm:$0xff] }
 0x688   :  { %3493 = vmax.xlane.f32.xlu1 %v3492_v27  ;;  %vm3470_vm5 = vcmp.eq.s32.totalorder %v4809_v22, %v3467_v19  ;;  %vm3471_vm6 = vcmp.eq.s32.totalorder %v4812_v40, %v3467_v19  ;;  %v6162_v19 = vld [vmem:[#allocation20_spill] sm:$0xff] }
 0x689   :  { %v3483_v20 = vsel %vm3471_vm6, %v5716_v58, 0.0  ;;  %v5722_v32 = vsel %vm3470_vm5, -inf, %v6156_v2  ;;  %v5725_v48 = vsel %vm3471_vm6, -inf, %v6157_v21  ;;  %v3482_v30 = vsel %vm3470_vm5, %v5716_v58, 0.0  ;;  %v6164_v21 = vld [vmem:[#allocation7_spill] sm:$0xff] }
 0x68a   :  { %v5729_v35 = vadd.f32 %v3483_v20, %v6158_v18  ;;  %v3495_v3 = vmax.f32 %v5722_v32, %v5725_v48  ;;  %v5734_v31 = vadd.f32 %v3482_v30, %v6159_v28 }
 0x68c   :  { %3496 = vmax.xlane.f32.xlu1 %v3495_v3 }
 0x6c5   :  { %v2672_v11 = vpop.xlane.xlu0 %2671 }
 0x6c6   :  { %vm2676_vm7 = vcmp.eq.f32.partialorder %v5582_v1, %v2672_v11  ;;  %vm2677_vm8 = vcmp.eq.f32.partialorder %v5585_v47, %v2672_v11  ;;  %v2720_v53 = vsub.f32 %v2672_v11, %v6160_v10  ;;  %v6165_v10 = vld [vmem:[#allocation8_spill] sm:$0xff] }
 0x6c7   :  { %v2680_v59 = vsel %vm2676_vm7, %v4809_v22, 256  ;;  %v2681_v61 = vsel %vm2677_vm8, %v4812_v40, 256 }
 0x6c8   :  { %v2722_v16 = vmul.f32 1.442695, %v2720_v53  ;;  %v2675_v63 = vpop.xlane.xlu1 %2674  ;;  %vm2684_vm9 = vcmp.lt.s32.totalorder %v2680_v59, %v2681_v61 }
 0x6c9   :  { %vm2678_vm10 = vcmp.eq.f32.partialorder %v5599_v8, %v2675_v63  ;;  %vm2679_vm11 = vcmp.eq.f32.partialorder %v5604_v43, %v2675_v63  ;;  %v2721_v54 = vsub.f32 %v2675_v63, %v6161_v4  ;;  %v5744_v34 = vsel %vm2684_vm9, %v2680_v59, %v2681_v61 }
 0x6ca   :  { %4087 = vpow2.f32 %v2722_v16  ;;  %v2682_v1 = vsel %vm2678_vm10, %v4809_v22, 256  ;;  %v2683_v47 = vsel %vm2679_vm11, %v4812_v40, 256  ;;  %v2687_v42 = vshra.s32 %v5744_v34, 16 }
 0x6cb   :  { %v2724_v25 = vmul.f32 1.442695, %v2721_v54  ;;  %vm2700_vm12 = vcmp.lt.s32.totalorder %v2682_v1, %v2683_v47 }
 0x6cc   :  { %v5749_v55 = vcvt.s32.f32 %v2687_v42  ;;  %v5751_v62 = vsel %vm2700_vm12, %v2682_v1, %v2683_v47  ;;  %v6166_v47 = vld [vmem:[#allocation9_spill] sm:$0xff] }
 0x6cd   :  { %4089 = vpow2.f32 %v2724_v25  ;;  %v2703_v8 = vshra.s32 %v5751_v62, 16 }
 0x6ce   :  { %2690 = vmin.xlane.f32.xlu0 %v5749_v55 }
 0x6cf   :  { %v5755_v43 = vcvt.s32.f32 %v2703_v8 }
 0x6d1   :  { %2706 = vmin.xlane.f32.xlu1 %v5755_v43 }
 0x6d4   :  { %v5758_v36 = vpop.eup %4087 }
 0x6d5   :  { %v5762_v9 = vadd.f32 %v5758_v36, %v6162_v19  ;;  %v6167_v19 = vld [vmem:[#allocation22_spill] sm:$0xff] }
 0x6d7   :  { %v5764_v27 = vpop.eup %4089 }
 0x6d8   :  { %v5768_v20 = vadd.f32 %v5764_v27, %v6163_v44 }
 0x6e6   :  { %v2946_v2 = vpop.xlane.xlu1 %2945 }
 0x6e7   :  { %vm2950_vm1 = vcmp.eq.f32.partialorder %v5622_v52, %v2946_v2  ;;  %vm2951_vm0 = vcmp.eq.f32.partialorder %v5625_v29, %v2946_v2  ;;  %v2994_v30 = vsub.f32 %v2946_v2, %v6164_v21 }
 0x6e8   :  { %v2954_v18 = vsel %vm2950_vm1, %v4809_v22, 256  ;;  %v2955_v3 = vsel %vm2951_vm0, %v4812_v40, 256 }
 0x6e9   :  { %v2996_v28 = vmul.f32 1.442695, %v2994_v30  ;;  %v2949_v11 = vpop.xlane.xlu0 %2948  ;;  %vm2958_vm14 = vcmp.lt.s32.totalorder %v2954_v18, %v2955_v3 }
 0x6ea   :  { %vm2952_vm15 = vcmp.eq.f32.partialorder %v5639_v12, %v2949_v11  ;;  %vm2953_vm2 = vcmp.eq.f32.partialorder %v5644_v41, %v2949_v11  ;;  %v2995_v53 = vsub.f32 %v2949_v11, %v6165_v10  ;;  %v5778_v59 = vsel %vm2958_vm14, %v2954_v18, %v2955_v3 }
 0x6eb   :  { %4091 = vpow2.f32 %v2996_v28  ;;  %v2956_v52 = vsel %vm2952_vm15, %v4809_v22, 256  ;;  %v2957_v29 = vsel %vm2953_vm2, %v4812_v40, 256  ;;  %v2961_v61 = vshra.s32 %v5778_v59, 16  ;;  %v6168_v28 = vld [vmem:[#allocation23_spill] sm:$0xff] }
 0x6ec   :  { %v2998_v16 = vmul.f32 1.442695, %v2995_v53  ;;  %vm2974_vm13 = vcmp.lt.s32.totalorder %v2956_v52, %v2957_v29 }
 0x6ed   :  { %v5783_v63 = vcvt.s32.f32 %v2961_v61  ;;  %v5785_v4 = vsel %vm2974_vm13, %v2956_v52, %v2957_v29  ;;  %v6169_v29 = vld [vmem:[#allocation24_spill] sm:$0xff] }
 0x6ee   :  { %4093 = vpow2.f32 %v2998_v16  ;;  %v2977_v12 = vshra.s32 %v5785_v4, 16 }
 0x6ef   :  { %2964 = vmin.xlane.f32.xlu1 %v5783_v63 }
 0x6f0   :  { %v5789_v41 = vcvt.s32.f32 %v2977_v12  ;;  %v6170_v12 = vld [vmem:[#allocation10_spill] sm:$0xff] }
 0x6f2   :  { %2980 = vmin.xlane.f32.xlu0 %v5789_v41 }
 0x6f5   :  { %v3220_v54 = vpop.xlane.xlu0 %3219  ;;  %v5792_v1 = vpop.eup %4091 }
 0x6f6   :  { %vm3224_vm3 = vcmp.eq.f32.partialorder %v5660_v33, %v3220_v54  ;;  %vm3225_vm4 = vcmp.eq.f32.partialorder %v5663_v0, %v3220_v54  ;;  %v3268_v42 = vsub.f32 %v3220_v54, %v6166_v47  ;;  %v5801_v44 = vadd.f32 %v5792_v1, %v6167_v19 }
 0x6f7   :  { %v3228_v25 = vsel %vm3224_vm3, %v4809_v22, 256  ;;  %v3229_v8 = vsel %vm3225_vm4, %v4812_v40, 256 }
 0x6f8   :  { %v3270_v2 = vmul.f32 1.442695, %v3268_v42  ;;  %vm3232_vm5 = vcmp.lt.s32.totalorder %v3228_v25, %v3229_v8  ;;  %v5803_v21 = vpop.eup %4093 }
 0x6f9   :  { %v5805_v30 = vpop.xlane.xlu0 %3222  ;;  %v5807_v18 = vsel %vm3232_vm5, %v3228_v25, %v3229_v8  ;;  %v5818_v11 = vadd.f32 %v5803_v21, %v6168_v28 }
 0x6fa   :  { %4095 = vpow2.f32 %v3270_v2  ;;  %vm3226_vm6 = vcmp.eq.f32.partialorder %v5680_v23, %v5805_v30  ;;  %vm3227_vm7 = vcmp.eq.f32.partialorder %v5683_v57, %v5805_v30  ;;  %v3235_v3 = vshra.s32 %v5807_v18, 16 }
 0x6fb   :  { %v3230_v33 = vsel %vm3226_vm6, %v4809_v22, 256  ;;  %v3231_v0 = vsel %vm3227_vm7, %v4812_v40, 256 }
 0x6fc   :  { %vm3248_vm8 = vcmp.lt.s32.totalorder %v3230_v33, %v3231_v0  ;;  %v5820_v10 = vcvt.s32.f32 %v3235_v3 }
 0x6fd   :  { %v5822_v53 = vsel %vm3248_vm8, %v3230_v33, %v3231_v0 }
 0x6fe   :  { %v3251_v23 = vshra.s32 %v5822_v53, 16  ;;  %3238 = vmin.xlane.f32.xlu0 %v5820_v10 }
 0x700   :  { %v5826_v57 = vcvt.s32.f32 %v3251_v23 }
 0x702   :  { %3254 = vmin.xlane.f32.xlu0 %v5826_v57 }
 0x704   :  { %v5829_v52 = vpop.eup %4095 }
 0x705   :  { %v5833_v61 = vadd.f32 %v5829_v52, %v6169_v29  ;;  %v2686_v29 = vand.u32 65535, %v5744_v34  ;;  %v2960_v34 = vand.u32 65535, %v5778_v59  ;;  %v3234_v59 = vand.u32 65535, %v5807_v18 }
 0x715   :  { %v3494_v16 = vpop.xlane.xlu1 %3493 }
 0x716   :  { %vm3498_vm9 = vcmp.eq.f32.partialorder %v5702_v7, %v3494_v16  ;;  %vm3499_vm10 = vcmp.eq.f32.partialorder %v5705_v49, %v3494_v16  ;;  %v3542_v54 = vsub.f32 %v3494_v16, %v6170_v12  ;;  %v2702_v16 = vand.u32 65535, %v5751_v62 }
 0x717   :  { %v3502_v47 = vsel %vm3498_vm9, %v4809_v22, 256  ;;  %v3503_v42 = vsel %vm3499_vm10, %v4812_v40, 256  ;;  %v2976_v62 = vand.u32 65535, %v5785_v4  ;;  %v3236_v4 = vcvt.s32.f32 %v3234_v59  ;;  %v3589_v59 = vld [vmem:[%s6085_s3 + $0xa8] sm:$0xff] }
 0x718   :  { %v3544_v25 = vmul.f32 1.442695, %v3542_v54  ;;  %vm3506_vm11 = vcmp.lt.s32.totalorder %v3502_v47, %v3503_v42  ;;  %v2688_v54 = vcvt.s32.f32 %v2686_v29 }
 0x719   :  { %v5840_v8 = vpop.xlane.xlu1 %3496  ;;  %v5842_v19 = vsel %vm3506_vm11, %v3502_v47, %v3503_v42 }
 0x71a   :  { %4097 = vpow2.f32 %v3544_v25  ;;  %vm3500_vm12 = vcmp.eq.f32.partialorder %v5722_v32, %v5840_v8  ;;  %vm3501_vm1 = vcmp.eq.f32.partialorder %v5725_v48, %v5840_v8  ;;  %v3509_v2 = vshra.s32 %v5842_v19, 16  ;;  %v6171_v48 = vld [vmem:[#allocation25_spill] sm:$0xff] }
 0x71b   :  { %v3504_v7 = vsel %vm3500_vm12, %v4809_v22, 256  ;;  %v3505_v49 = vsel %vm3501_vm1, %v4812_v40, 256  ;;  %v2704_v25 = vcvt.s32.f32 %v2702_v16  ;;  %v3250_v16 = vand.u32 65535, %v5822_v53  ;;  %v3568_v53 = vld [vmem:[%s6085_s3] sm:$0xff] }
 0x71c   :  { %vm3522_vm0 = vcmp.lt.s32.totalorder %v3504_v7, %v3505_v49  ;;  %v5851_v33 = vcvt.s32.f32 %v3509_v2  ;;  %v2962_v2 = vcvt.s32.f32 %v2960_v34  ;;  %v3508_v18 = vand.u32 65535, %v5842_v19  ;;  %v3586_v19 = vld [vmem:[%s6085_s3 + $0x90] sm:$0xff]  ;;  %v3587_v34 = vld [vmem:[%s6085_s3 + $0x98] sm:$0xff] }
 0x71d   :  { %v5853_v0 = vsel %vm3522_vm0, %v3504_v7, %v3505_v49  ;;  %4099 = vrcp.f32 %v5762_v9 }
 0x71e   :  { %v3525_v3 = vshra.s32 %v5853_v0, 16  ;;  %3512 = vmin.xlane.f32.xlu1 %v5851_v33  ;;  %4101 = vrcp.f32 %v5768_v20 }
 0x71f   :  { %4103 = vrcp.f32 %v5801_v44 }
 0x720   :  { %v5857_v28 = vcvt.s32.f32 %v3525_v3 }
 0x722   :  { %3528 = vmin.xlane.f32.xlu1 %v5857_v28 }
 0x724   :  { %v5860_v32 = vpop.eup %4097 }
 0x725   :  { %v5864_v23 = vadd.f32 %v5860_v32, %v6171_v48  ;;  %v2978_v48 = vcvt.s32.f32 %v2976_v62 }
 0x75b   :  { %v5868_v12 = vpop.xlane.xlu0 %2690 }
 0x75c   :  { %vm2692_vm14 = vcmp.eq.f32.partialorder %v5749_v55, %v5868_v12 }
 0x75d   :  { %v2693_v47 = vsel %vm2692_vm14, %v2688_v54, inf }
 0x75e   :  { %2694 = vmin.xlane.f32.xlu0 %v2693_v47  ;;  %v5872_v42 = vpop.xlane.xlu1 %2706  ;;  %v3252_v47 = vcvt.s32.f32 %v3250_v16  ;;  %v3510_v16 = vcvt.s32.f32 %v3508_v18  ;;  %v3591_v18 = vld [vmem:[%s6085_s3 + $0xb8] sm:$0xff] }
 0x75f   :  { %vm2708_vm15 = vcmp.eq.f32.partialorder %v5755_v43, %v5872_v42 }
 0x760   :  { %v2709_v7 = vsel %vm2708_vm15, %v2704_v25, inf  ;;  %v3584_v25 = vld [vmem:[%s6085_s3 + $0x80] sm:$0xff] }
 0x761   :  { %2710 = vmin.xlane.f32.xlu1 %v2709_v7 }
 0x77c   :  { %v5878_v49 = vpop.xlane.xlu1 %2964 }
 0x77d   :  { %vm2966_vm2 = vcmp.eq.f32.partialorder %v5783_v63, %v5878_v49 }
 0x77e   :  { %v2967_v55 = vsel %vm2966_vm2, %v2962_v2, inf  ;;  %v3927_v2 = vpack.c.bf16 %v3587_v34, %v3586_v19  ;;  %v3574_v34 = vld [vmem:[%s6085_s3 + $0x30] sm:$0xff] }
 0x77f   :  { %2968 = vmin.xlane.f32.xlu1 %v2967_v55  ;;  %v5882_v3 = vpop.xlane.xlu0 %2980  ;;  %v3570_v55 = vld [vmem:[%s6085_s3 + $0x10] sm:$0xff] }
 0x780   :  { %vm2982_vm13 = vcmp.eq.f32.partialorder %v5789_v41, %v5882_v3 }
 0x781   :  { %v2983_v43 = vsel %vm2982_vm13, %v2978_v48, inf  ;;  %v3571_v48 = vld [vmem:[%s6085_s3 + $0x18] sm:$0xff] }
 0x782   :  { %2984 = vmin.xlane.f32.xlu0 %v2983_v43  ;;  %v3588_v43 = vld [vmem:[%s6085_s3 + $0xa0] sm:$0xff] }
 0x78b   :  { %v5887_v29 = vpop.xlane.xlu0 %3238 }
 0x78c   :  { %vm3240_vm3 = vcmp.eq.f32.partialorder %v5820_v10, %v5887_v29  ;;  %v3585_v10 = vld [vmem:[%s6085_s3 + $0x88] sm:$0xff] }
 0x78d   :  { %v3241_v63 = vsel %vm3240_vm3, %v3236_v4, inf  ;;  %v3923_v7 = vpack.c.bf16 %v3585_v10, %v3584_v25  ;;  %v3572_v25 = vld [vmem:[%s6085_s3 + $0x20] sm:$0xff]  ;;  %v3573_v10 = vld [vmem:[%s6085_s3 + $0x28] sm:$0xff] }
 0x78e   :  { %3242 = vmin.xlane.f32.xlu0 %v3241_v63  ;;  %v3524_v63 = vand.u32 65535, %v5853_v0  ;;  %v3590_v0 = vld [vmem:[%s6085_s3 + $0xb0] sm:$0xff] }
 0x78f   :  { %v5892_v54 = vpop.xlane.xlu0 %3254  ;;  %3924 = vmatprep.subr.bf16.mxu0 %v3923_v7  ;;  %v3935_v19 = vpack.c.bf16 %v3591_v18, %v3590_v0  ;;  %v3596_v18 = vld [vmem:[%s6085_s3 + $0xe0] sm:$0xff] }
 0x790   :  { %vm3256_vm4 = vcmp.eq.f32.partialorder %v5826_v57, %v5892_v54  ;;  %v3569_v57 = vld [vmem:[%s6085_s3 + $0x8] sm:$0xff]  ;;  %v3526_v7 = vcvt.s32.f32 %v3524_v63 }
 0x791   :  { %v3257_v41 = vsel %vm3256_vm4, %v3252_v47, inf  ;;  %v3925_v62 = vpack.c.bf16 %v3569_v57, %v3568_v53  ;;  %v3929_v47 = vpack.c.bf16 %v3571_v48, %v3570_v55  ;;  %v3933_v57 = vpack.c.bf16 %v3573_v10, %v3572_v25  ;;  %v3592_v55 = vld [vmem:[%s6085_s3 + $0xc0] sm:$0xff]  ;;  %v3593_v48 = vld [vmem:[%s6085_s3 + $0xc8] sm:$0xff]  ;;  %v3578_v10 = vld [vmem:[%s6085_s3 + $0x50] sm:$0xff] }
 0x792   :  { %3258 = vmin.xlane.f32.xlu0 %v3257_v41  ;;  %v3931_v41 = vpack.c.bf16 %v3589_v59, %v3588_v43  ;;  %v3939_v43 = vpack.c.bf16 %v3593_v48, %v3592_v55  ;;  %v3576_v59 = vld [vmem:[%s6085_s3 + $0x40] sm:$0xff]  ;;  %v3599_v55 = vld [vmem:[%s6085_s3 + $0xf8] sm:$0xff] }
 0x793   :  { %3926 = vmatpush3.bf16.msra.mxu0 %v3925_v62  ;;  %v3575_v62 = vld [vmem:[%s6085_s3 + $0x38] sm:$0xff] }
 0x794   :  { %3928 = vmatprep.subr.bf16.mxu0 %v3927_v2 }
 0x797   :  { %3930 = vmatpush3.bf16.msra.mxu0 %v3929_v47  ;;  %v3594_v47 = vld [vmem:[%s6085_s3 + $0xd0] sm:$0xff] }
 0x798   :  { %3932 = vmatprep.subr.bf16.mxu0 %v3931_v41  ;;  %v3595_v41 = vld [vmem:[%s6085_s3 + $0xd8] sm:$0xff] }
 0x799   :  { %v3943_v25 = vpack.c.bf16 %v3595_v41, %v3594_v47 }
 0x79b   :  { %3934 = vmatpush3.bf16.msra.mxu0 %v3933_v57 }
 0x79c   :  { %3936 = vmatprep.subr.bf16.mxu0 %v3935_v19  ;;  %v3580_v19 = vld [vmem:[%s6085_s3 + $0x60] sm:$0xff] }
 0x7ab   :  { %v5927_v4 = vpop.xlane.xlu1 %3512 }
 0x7ac   :  { %vm3514_vm5 = vcmp.eq.f32.partialorder %v5851_v33, %v5927_v4 }
 0x7ad   :  { %v3515_v53 = vsel %vm3514_vm5, %v3510_v16, inf  ;;  %v3577_v16 = vld [vmem:[%s6085_s3 + $0x48] sm:$0xff] }
 0x7ae   :  { %3516 = vmin.xlane.f32.xlu1 %v3515_v53  ;;  %v3941_v63 = vpack.c.bf16 %v3577_v16, %v3576_v59  ;;  %v3579_v53 = vld [vmem:[%s6085_s3 + $0x58] sm:$0xff]  ;;  %v2697_v16 = vcvt.f32.s32 %v5868_v12 }
 0x7af   :  { %v5944_v33 = vpop.xlane.xlu1 %3528  ;;  %v3945_v0 = vpack.c.bf16 %v3579_v53, %v3578_v10 }
 0x7b0   :  { %vm3530_vm6 = vcmp.eq.f32.partialorder %v5857_v28, %v5944_v33  ;;  %v3937_v28 = vpack.c.bf16 %v3575_v62, %v3574_v34  ;;  %v3581_v34 = vld [vmem:[%s6085_s3 + $0x68] sm:$0xff]  ;;  %v2698_v41 = vshll.u32 %v2697_v16, 16  ;;  %v2987_v16 = vcvt.f32.s32 %v5882_v3 }
 0x7b1   :  { %v3531_v2 = vsel %vm3530_vm6, %v3526_v7, inf  ;;  %v3597_v7 = vld [vmem:[%s6085_s3 + $0xe8] sm:$0xff]  ;;  %v3949_v62 = vpack.c.bf16 %v3581_v34, %v3580_v19  ;;  %v4100_v19 = vpop.eup %4099 }
 0x7b2   :  { %3532 = vmin.xlane.f32.xlu1 %v3531_v2  ;;  %3938 = vmatpush3.bf16.msra.mxu0 %v3937_v28  ;;  %v3947_v57 = vpack.c.bf16 %v3597_v7, %v3596_v18  ;;  %v3598_v2 = vld [vmem:[%s6085_s3 + $0xf0] sm:$0xff] }
 0x7b3   :  { %3940 = vmatprep.subr.bf16.mxu0 %v3939_v43  ;;  %v3951_v48 = vpack.c.bf16 %v3599_v55, %v3598_v2  ;;  %v3582_v28 = vld [vmem:[%s6085_s3 + $0x70] sm:$0xff]  ;;  %v3583_v43 = vld [vmem:[%s6085_s3 + $0x78] sm:$0xff]  ;;  %s4144_s3 = smov [#allocation2]  }
 0x7b4   :  { %v3953_v59 = vpack.c.bf16 %v3583_v43, %v3582_v28  ;;  %s3682_s0 = sshll.u32 %s4144_s3, 4  ;;  %s3683_s0 = int_to_ptr.vmem [resolvable:$true] %s3682_s0 }
 0x7b5   :  { %s4119_s9 = scalar_lea.vmem %s3683_s0, 256  ;;  %p4124_p1 = scmp.lt.s32.totalorder %s3683_s0, %s3683_s0 }
 0x7b6   :  { %3942 = vmatpush3.bf16.msra.mxu0 %v3941_v63  ;;  %v2713_v63 = vcvt.f32.s32 %v5872_v42  ;;  %p4120_p0 = scmp.ne.s32.totalorder %s3683_s0, %s4119_s9  ;;  %p4125_p2 = scmp.lt.s32.totalorder %s4119_s9, %s4119_s9 }
 0x7b7   :  { %3944 = vmatprep.subr.bf16.mxu0 %v3943_v25 }
 0x7b8   :  { %p4126_p3 = por %p4125_p2, %p4124_p1 }
 0x7ba   :  { %3946 = vmatpush3.bf16.msra.mxu0 %v3945_v0  ;;  %v2714_v0 = vshll.u32 %v2713_v63, 16  ;;  %p4127_p4 = pnand %p4126_p3, %p4120_p0 }
 0x7bb   :  { %3948 = vmatprep.subr.bf16.mxu0 %v3947_v57 }
 0x7be   :  { %3950 = vmatpush3.bf16.msra.mxu0 %v3949_v62 }
 0x7bf   :  { %3952 = vmatprep.subr.bf16.mxu0 %v3951_v48  ;;  %v4102_v48 = vpop.eup %4101 }
 0x7c2   :  { %3954 = vmatpush3.bf16.msra.mxu0 %v3953_v59  ;;  %v2971_v59 = vcvt.f32.s32 %v5878_v49 }
 0x7eb   :  { %v2695_v47 = vpop.xlane.xlu0 %2694 }
 0x7ec   :  { %v2696_v25 = vcvt.f32.s32 %v2695_v47 }
 0x7ee   :  { %v2699_v10 = vadd.s32 %v2698_v41, %v2696_v25  ;;  %v2711_v53 = vpop.xlane.xlu1 %2710  ;;  %v2988_v41 = vshll.u32 %v2987_v16, 16 }
 0x7ef   :  { %v2712_v18 = vcvt.f32.s32 %v2711_v53 }
 0x7f0   :  { %vm2716_vm7 = vcmp.eq.s32.totalorder %v4809_v22, %v2699_v10  ;;  %vm2717_vm8 = vcmp.eq.s32.totalorder %v4812_v40, %v2699_v10  ;;  %v4104_v10 = vpop.eup %4103 }
 0x7f1   :  { %v2728_v7 = vsel %vm2716_vm7, %v5758_v36, 0.0  ;;  %v2729_v12 = vsel %vm2717_vm8, %v5758_v36, 0.0  ;;  %v2715_v9 = vadd.s32 %v2714_v0, %v2712_v18  ;;  %vm6174_vm7 = vcmask 261120  }
 0x7f2   :  { %v2732_v42 = vadd.f32 %v2728_v7, %v5594_v15  ;;  %v2733_v57 = vadd.f32 %v2729_v12, %v5589_v51  ;;  %v3269_v51 = vsub.f32 %v5805_v30, %v4878_v46  ;;  %vm6175_vm8 = vmmov %vm6174_vm7 }
 0x7f3   :  { %vm2718_vm9 = vcmp.eq.s32.totalorder %v4809_v22, %v2715_v9  ;;  %vm2719_vm10 = vcmp.eq.s32.totalorder %v4812_v40, %v2715_v9 }
 0x7f4   :  { %v2738_v20 = vmul.f32 %v4100_v19, %v2732_v42  ;;  %v2739_v34 = vmul.f32 %v4100_v19, %v2733_v57  ;;  %v2730_v62 = vsel %vm2718_vm9, %v5764_v27, 0.0  ;;  %v2731_v2 = vsel %vm2719_vm10, %v5764_v27, 0.0 }
 0x7f5   :  { %v2734_v55 = vadd.f32 %v2730_v62, %v5607_v17  ;;  %v2735_v36 = vadd.f32 %v2731_v2, %v5610_v5  ;;  %v3272_v43 = vmul.f32 1.442695, %v3269_v51  ;;  %v2972_v27 = vshll.u32 %v2971_v59, 16 }
 0x7f6   :  { %v3245_v62 = vcvt.f32.s32 %v5887_v29 }
 0x7f7   :  { %v2740_v28 = vmul.f32 %v4102_v48, %v2734_v55  ;;  %v2741_v15 = vmul.f32 %v4102_v48, %v2735_v36  ;;  %4105 = vpow2.f32 %v3272_v43 }
 0x7f8   :  { %4107 = vrcp.f32 %v5818_v11  ;;  %v6172_v11 = vld [vmem:[#allocation16_spill] sm:$0xff]  ;;  %v3246_v43 = vshll.u32 %v3245_v62, 16 }
 0x7f9   :  { %v3135_v53 = vadd.f32 1.0, %v6172_v11  ;;  %4109 = vrcp.f32 %v5833_v61 }
 0x7fb   :  { %v3205_v57 = vadd.f32 %v5674_v24, %v3135_v53 }
 0x801   :  { %v4106_v9 = vpop.eup %4105 }
 0x802   :  { %v4108_v42 = vpop.eup %4107  ;;  %v3275_v36 = vadd.f32 %v4106_v9, %v3205_v57 }
 0x804   :  { %4111 = vrcp.f32 %v3275_v36 }
 0x80c   :  { %v2969_v63 = vpop.xlane.xlu1 %2968 }
 0x80d   :  { %v2970_v47 = vcvt.f32.s32 %v2969_v63 }
 0x80f   :  { %v2973_v17 = vadd.s32 %v2972_v27, %v2970_v47  ;;  %v2985_v5 = vpop.xlane.xlu0 %2984  ;;  %v3543_v47 = vsub.f32 %v5840_v8, %v4894_v6  ;;  %v3519_v8 = vcvt.f32.s32 %v5927_v4 }
 0x810   :  { %v2986_v25 = vcvt.f32.s32 %v2985_v5 }
 0x811   :  { %vm2990_vm11 = vcmp.eq.s32.totalorder %v4809_v22, %v2973_v17  ;;  %vm2991_vm12 = vcmp.eq.s32.totalorder %v4812_v40, %v2973_v17 }
 0x812   :  { %v3002_v46 = vsel %vm2990_vm11, %v5792_v1, 0.0  ;;  %v3003_v44 = vsel %vm2991_vm12, %v5792_v1, 0.0  ;;  %v2989_v30 = vadd.s32 %v2988_v41, %v2986_v25 }
 0x813   :  { %v3006_v49 = vadd.f32 %v3002_v46, %v5634_v45  ;;  %v3007_v3 = vadd.f32 %v3003_v44, %v5629_v38 }
 0x814   :  { %vm2992_vm1 = vcmp.eq.s32.totalorder %v4809_v22, %v2989_v30  ;;  %vm2993_vm0 = vcmp.eq.s32.totalorder %v4812_v40, %v2989_v30  ;;  %v3546_v30 = vmul.f32 1.442695, %v3543_v47 }
 0x815   :  { %v3012_v0 = vmul.f32 %v4104_v10, %v3006_v49  ;;  %v3013_v18 = vmul.f32 %v4104_v10, %v3007_v3  ;;  %v3004_v7 = vsel %vm2992_vm1, %v5803_v21, 0.0  ;;  %v3005_v12 = vsel %vm2993_vm0, %v5803_v21, 0.0  ;;  %v6173_v10 = vld [vmem:[#allocation18_spill] sm:$0xff] }
 0x816   :  { %v3008_v1 = vadd.f32 %v3004_v7, %v5647_v13  ;;  %v3009_v45 = vadd.f32 %v3005_v12, %v5650_v56  ;;  %v3261_v13 = vcvt.f32.s32 %v5892_v54  ;;  %v4110_v54 = vpop.eup %4109  ;;  %4113 = vpow2.f32 %v3546_v30 }
 0x817   :  { %v3016_v38 = vadd.f32 %v3012_v0, %v2738_v20  ;;  %v3017_v19 = vadd.f32 %v3013_v18, %v2739_v34  ;;  %v3409_v11 = vadd.f32 1.0, %v6173_v10  ;;  %4115 = vrcp.f32 %v5864_v23 }
 0x818   :  { %v3014_v2 = vmul.f32 %v4108_v42, %v3008_v1  ;;  %v3015_v55 = vmul.f32 %v4108_v42, %v3009_v45  ;;  %v3262_v16 = vshll.u32 %v3261_v13, 16  ;;  %v3535_v18 = vcvt.f32.s32 %v5944_v33 }
 0x819   :  { %v3479_v6 = vadd.f32 %v5716_v58, %v3409_v11 }
 0x81a   :  { %v3019_v48 = vadd.f32 %v3015_v55, %v2741_v15  ;;  %v3018_v51 = vadd.f32 %v3014_v2, %v2740_v28  ;;  %v3536_v1 = vshll.u32 %v3535_v18, 16 }
 0x81b   :  { %v3243_v21 = vpop.xlane.xlu0 %3242 }
 0x81c   :  { %v3244_v59 = vcvt.f32.s32 %v3243_v21 }
 0x81e   :  { %v3247_v56 = vadd.s32 %v3246_v43, %v3244_v59 }
 0x81f   :  { %v3259_v20 = vpop.xlane.xlu0 %3258 }
 0x820   :  { %vm3264_vm14 = vcmp.eq.s32.totalorder %v4809_v22, %v3247_v56  ;;  %vm3265_vm15 = vcmp.eq.s32.totalorder %v4812_v40, %v3247_v56  ;;  %v3260_v24 = vcvt.f32.s32 %v3259_v20 }
 0x821   :  { %v3276_v29 = vsel %vm3264_vm14, %v5829_v52, 0.0  ;;  %v3277_v61 = vsel %vm3265_vm15, %v5829_v52, 0.0 }
 0x822   :  { %v3280_v34 = vadd.f32 %v3276_v29, %v5672_v26  ;;  %v3281_v28 = vadd.f32 %v3277_v61, %v5667_v14  ;;  %v3263_v15 = vadd.s32 %v3262_v16, %v3260_v24  ;;  %v4112_v14 = vpop.eup %4111 }
 0x823   :  { %v4114_v53 = vpop.eup %4113 }
 0x824   :  { %v3286_v63 = vmul.f32 %v4110_v54, %v3280_v34  ;;  %vm3266_vm2 = vcmp.eq.s32.totalorder %v4809_v22, %v3263_v15  ;;  %vm3267_vm13 = vcmp.eq.s32.totalorder %v4812_v40, %v3263_v15  ;;  %v3287_v27 = vmul.f32 %v4110_v54, %v3281_v28  ;;  %v4116_v33 = vpop.eup %4115 }
 0x825   :  { %v3278_v17 = vsel %vm3266_vm2, %v4106_v9, 0.0  ;;  %v3279_v5 = vsel %vm3267_vm13, %v4106_v9, 0.0 }
 0x826   :  { %v3290_v41 = vadd.f32 %v3286_v63, %v3016_v38  ;;  %v3282_v52 = vadd.f32 %v3278_v17, %v5692_v37  ;;  %v3283_v26 = vadd.f32 %v3279_v5, %v5687_v39  ;;  %v3291_v25 = vadd.f32 %v3287_v27, %v3017_v19 }
 0x827   :  { %v3549_v37 = vadd.f32 %v4114_v53, %v3479_v6  ;;  %v3520_v39 = vshll.u32 %v3519_v8, 16 }
 0x828   :  { %v3288_v46 = vmul.f32 %v4112_v14, %v3282_v52  ;;  %v3289_v44 = vmul.f32 %v4112_v14, %v3283_v26 }
 0x829   :  { %4117 = vrcp.f32 %v3549_v37 }
 0x82a   :  { %v3293_v49 = vadd.f32 %v3289_v44, %v3019_v48  ;;  %v3292_v3 = vadd.f32 %v3288_v46, %v3018_v51 }
 0x833   :  { %v4118_v51 = vpop.eup %4117 }
 0x83b   :  { %v3517_v0 = vpop.xlane.xlu1 %3516 }
 0x83c   :  { %v3518_v7 = vcvt.f32.s32 %v3517_v0 }
 0x83e   :  { %v3521_v12 = vadd.s32 %v3520_v39, %v3518_v7 }
 0x83f   :  { %v3533_v9 = vpop.xlane.xlu1 %3532 }
 0x840   :  { %vm3538_vm3 = vcmp.eq.s32.totalorder %v4809_v22, %v3521_v12  ;;  %vm3539_vm4 = vcmp.eq.s32.totalorder %v4812_v40, %v3521_v12  ;;  %v3534_v45 = vcvt.f32.s32 %v3533_v9 }
 0x841   :  { %v3550_v58 = vsel %vm3538_vm3, %v5860_v32, 0.0  ;;  %v3551_v4 = vsel %vm3539_vm4, %v5860_v32, 0.0 }
 0x842   :  { %v3554_v23 = vadd.f32 %v3550_v58, %v5714_v50  ;;  %v3555_v42 = vadd.f32 %v3551_v4, %v5709_v60  ;;  %v3537_v38 = vadd.s32 %v3536_v1, %v3534_v45 }
 0x844   :  { %v3560_v57 = vmul.f32 %v4116_v33, %v3554_v23  ;;  %vm3540_vm5 = vcmp.eq.s32.totalorder %v4809_v22, %v3537_v38  ;;  %vm3541_vm6 = vcmp.eq.s32.totalorder %v4812_v40, %v3537_v38  ;;  %v3561_v19 = vmul.f32 %v4116_v33, %v3555_v42 }
 0x845   :  { %v3552_v62 = vsel %vm3540_vm5, %v4114_v53, 0.0  ;;  %v3553_v2 = vsel %vm3541_vm6, %v4114_v53, 0.0 }
 0x846   :  { %v3564_v55 = vadd.f32 %v3560_v57, %v3290_v41  ;;  %v3556_v36 = vadd.f32 %v3552_v62, %v5734_v31  ;;  %v3557_v48 = vadd.f32 %v3553_v2, %v5729_v35  ;;  %v3565_v32 = vadd.f32 %v3561_v19, %v3291_v25 }
 0x848   :  { %3664 = vmatprep.mubr.f32.mxu0 %v3565_v32  ;;  %v3563_v50 = vmul.f32 %v4118_v51, %v3557_v48  ;;  %v3562_v60 = vmul.f32 %v4118_v51, %v3556_v36 }
 0x849   :  { %3665 = vmatmul.mubr.f32.vlgmr.msra.gmra.mrb[8].mxu0 %v3564_v55 }
 0x84a   :  { %v3567_v21 = vadd.f32 %v3563_v50, %v3293_v49  ;;  %v3566_v43 = vadd.f32 %v3562_v60, %v3292_v3 }
 0x84c   :  { %3669 = vmatprep.mubr.f32.mxu0 %v3567_v21 }
 0x84d   :  { %3670 = vmatmul.mubr.f32.gmra.mrb[10].mxu0 %v3566_v43 }
 0x91c   :  { %v3725_v22 = vpop.f32.mrb[8].mxu0 }
 0x91d   :  { %v3726_v40 = vpop.f32.mrb[9].mxu0 }
 0x91e   :  { %v3727_v13 = vadd.f32 %v3726_v40, %v3725_v22 }
 0x920   :  { %3675 = vst.msk [vmem:[#allocation2] sm:$0xff] %vm6174_vm7, %v3727_v13  ;;  %v3728_v31 = vpop.f32.mrb[10].mxu0 }
 0x921   :  { %v3729_v59 = vpop.f32.mrb[11].mxu0 }
 0x922   :  { %v3730_v35 = vadd.f32 %v3729_v59, %v3728_v31 }
 0x924   :  { %3676 = vst.msk [vmem:[#allocation2 + $0x8] sm:$0xff] %vm6175_vm8, %v3730_v35 }
 0x925   :  { %4130 = shalt.err (!%p4127_p4)
}
 0x926   :  { %s4131_s12 = scalar_lea.hbm %s6086_s4, 256 }
 0x927   :  { %p4132_p5 = scmp.ne.s32.totalorder %s6086_s4, %s4131_s12  ;;  %p4135_p6 = scmp.lt.u32.totalorder %s4131_s12, %s6086_s4 }
 0x929   :  { %p4137_p7 = pnand %p4135_p6, %p4132_p5 }
 0x92b   :  { %4140 = shalt.err (!%p4137_p7)
}
 0x92c   :  { %s4145_s17 = smov 128   ;;  %s4146_s18 = smov 8  }
 0x92d   :  { %3688 = dma.vmem_to_hbm [thread:$0]  %s3683_s0, 256, %s6086_s4, [#allocation3], %s4145_s17, %s4145_s17, %s4146_s18  }
 0x92e   :  { %4141 = dma.done.wait [#allocation3], 256  }
 0x92f   :  { %4142 = vsyncadd [#allocation3], 4294967040 }
 0x930   :  { %3692 = vsyncpa [#allocation3], 1 }

</bundles_post_ra>
